<compile_context>
chip_gen: v5e
topology: v5e:2x2
jax: 0.10.0
libtpu: 0.0.40
codegen_flags: <defaults>
</compile_context>

<pallas_src>
import functools

import jax
import jax.numpy as jnp
from jax import lax
from jax.experimental import pallas as pl
from jax.experimental.pallas import tpu as pltpu

EPS = 1e-6


def edablock_kernel(
    row_ref, col_ref,              # (1, HW) int32 spatial coords of each pixel
    inp_ref,                       # (1, C, HW)   VMEM
    ln1_w, ln1_b,                  # (C, 1)
    w1, b1,                        # (2C, C), (2C, 1)   conv1 (1x1)
    w2, b2,                        # (2C, 9), (2C, 1)   conv2 (depthwise 3x3)
    ssa_w,                         # (2, 49)            ssa 7x7 weights (SMEM)
    ssa_b,                         # (1, 1)
    sca_w, sca_b,                  # (C, C), (C, 1)     sca 1x1
    w3, b3,                        # (C, C), (C, 1)     conv3 (1x1)
    ln2_w, ln2_b,                  # (C, 1)
    w4, b4,                        # (2C, C), (2C, 1)   conv4 (1x1)
    w5, b5,                        # (C, C), (C, 1)     conv5 (1x1)
    beta, gamma,                   # (C, 1)
    out_ref,                       # (1, C, HW)
    *, H, W,
):
    C = inp_ref.shape[1]
    HW = inp_ref.shape[2]
    C2 = 2 * C

    row = row_ref[...]
    col = col_ref[...]

    # Boundary-validity masks per offset (offset 0 is all-ones and skipped).
    row_ok = {d: ((row + d >= 0) & (row + d < H)).astype(jnp.float32)
              for d in (-3, -2, -1, 1, 2, 3)}
    col_ok = {d: ((col + d >= 0) & (col + d < W)).astype(jnp.float32)
              for d in (-3, -2, -1, 1, 2, 3)}

    def col_shift(a, dx):
        # Value of `a` at column offset +dx; zero outside the image. One XLU
        # roll over the flattened HW lane axis + a (1,HW) mask multiply.
        if dx == 0:
            return a
        return pltpu.roll(a, (-dx) % HW, axis=1) * col_ok[dx]

    def row_shift(a, dy):
        # Value of `a` at row offset +dy; zero outside the image. Rolling by a
        # multiple of W leaves every lane's column unchanged, so column masks
        # already baked into `a` stay valid.
        if dy == 0:
            return a
        return pltpu.roll(a, (-(dy * W)) % HW, axis=1) * row_ok[dy]

    # Ones vectors: cross-sublane / cross-lane means go to the (idle) MXU
    # instead of the XLU, which the roll-based convs saturate.
    ones_c = jnp.full((1, C), 1.0 / C, jnp.float32)
    ones_c2 = jnp.full((1, C2), 1.0 / C2, jnp.float32)
    ones_hw = jnp.full((HW, 1), 1.0 / HW, jnp.float32)

    def layernorm_c(x, w, b):
        # Channel LayerNorm with biased variance (matches LayerNorm2d).
        mu = jnp.dot(ones_c, x, preferred_element_type=jnp.float32)       # (1,HW)
        xc = x - mu
        var = jnp.dot(ones_c, xc * xc, preferred_element_type=jnp.float32)
        return xc * lax.rsqrt(var + EPS) * w + b

    # ---- norm1 + conv1 (1x1): lane-dense (2C, HW) output ----
    xn = layernorm_c(inp_ref[0], ln1_w[...], ln1_b[...])
    h1 = jnp.dot(w1[...], xn, preferred_element_type=jnp.float32) + b1[...]

    # ---- conv2: depthwise 3x3, padding=1, column pass + row pass ----
    # 2 column rolls + 2 row rolls on the (2C,HW) array (was 8 per-tap rolls).
    # NOTE: keeps 2 extra (2C,HW) temporaries live — revisit with band tiling.
    w2v = w2[...]
    cols3 = {dx: col_shift(h1, dx) for dx in (-1, 0, 1)}
    acc = b2[...]
    for dy in (-1, 0, 1):
        s = None
        for dx in (-1, 0, 1):
            k = (dy + 1) * 3 + (dx + 1)
            t = cols3[dx] * w2v[:, k:k + 1]
            s = t if s is None else s + t
        acc = acc + row_shift(s, dy)                                       # (2C,HW)

    # ---- ssa: 7x7 conv (pad=3) over [channel-mean, channel-max] planes ----
    # Channel mean on the MXU; max stays on the XLU.  Planes are kept separate
    # so every tap weight is a scalar read from SMEM (no sublane broadcasts);
    # 49 taps factored into 2*6 column rolls + 6 row rolls (was 48 rolls).
    mean_c = jnp.dot(ones_c2, acc, preferred_element_type=jnp.float32)     # (1,HW)
    max_c = jnp.max(acc, axis=0, keepdims=True)                            # (1,HW)
    cols_m = {dx: col_shift(mean_c, dx) for dx in range(-3, 4)}
    cols_x = {dx: col_shift(max_c, dx) for dx in range(-3, 4)}
    wmap = ssa_b[...]
    for dy in range(-3, 4):
        s = None
        for dx in range(-3, 4):
            k = (dy + 3) * 7 + (dx + 3)
            t = cols_m[dx] * ssa_w[0, k] + cols_x[dx] * ssa_w[1, k]
            s = t if s is None else s + t
        wmap = wmap + row_shift(s, dy)                                      # (1,HW)

    # ---- SimpleGate + spatial attention ----
    g = acc[:C] * acc[C:] * wmap                                            # (C,HW)

    # ---- sca: global avg pool (MXU ones-matmul), then 1x1 conv on the pool ----
    pool = jnp.dot(g, ones_hw, preferred_element_type=jnp.float32)          # (C,1)
    sca_v = jnp.dot(sca_w[...], pool,
                    preferred_element_type=jnp.float32) + sca_b[...]        # (C,1)
    g = g * sca_v

    # ---- conv3 + residual (beta); dropout rate 0.0 -> identity ----
    h3 = jnp.dot(w3[...], g, preferred_element_type=jnp.float32) + b3[...]
    # Re-read the input here (instead of holding it live across the tap loops)
    # to bound its live range / vreg pressure.
    y = inp_ref[0] + h3 * beta[...]

    # ---- FFN branch: norm2 -> conv4 -> SimpleGate -> conv5 -> residual ----
    yn = layernorm_c(y, ln2_w[...], ln2_b[...])
    h4 = jnp.dot(w4[...], yn, preferred_element_type=jnp.float32) + b4[...]  # (2C,HW)
    g2 = h4[:C] * h4[C:]
    h5 = jnp.dot(w5[...], g2, preferred_element_type=jnp.float32) + b5[...]
    out_ref[0] = (y + h5 * gamma[...]).astype(out_ref.dtype)


def _vmem_limit_bytes():
    # Generation-aware VMEM budget: ~75% of physical capacity, capped well
    # below the 128-MiB parts' total (v7x: 64 MiB -> 48 MiB; v5e/v6e: 96 MiB).
    cap = 128 * 1024 * 1024
    try:
        info = pltpu.get_tpu_info()
        cap = int(getattr(info, "vmem_capacity_bytes", cap))
    except Exception:
        pass
    return min((cap * 3) // 4, 110 * 1024 * 1024)


def edablock_forward(inp_nchw, p):
    """inp_nchw: (N, C, H, W) float32 -> (N, C, H, W) float32."""
    N, C, H, W = inp_nchw.shape
    C2 = 2 * C
    HW = H * W

    # NCHW stays NCHW: only merge H,W (a free reshape). No transposes.
    x = inp_nchw.reshape(N, C, HW).astype(jnp.float32)

    # Pixel coordinates for boundary masks (computed once outside the kernel).
    row = (jnp.arange(HW, dtype=jnp.int32) // W).reshape(1, HW)
    col = (jnp.arange(HW, dtype=jnp.int32) % W).reshape(1, HW)

    # Kernel-side parameter shapes (pure reshapes; no transposes, no compute).
    ln1_w = p['ln1_w'].reshape(C, 1); ln1_b = p['ln1_b'].reshape(C, 1)
    w1 = p['w1'].reshape(C2, C);      b1 = p['b1'].reshape(C2, 1)
    w2 = p['w2'].reshape(C2, 9);      b2 = p['b2'].reshape(C2, 1)
    ssa_w = p['ssa_w'].reshape(2, 49); ssa_b = p['ssa_b'].reshape(1, 1)
    sca_w = p['sca_w'].reshape(C, C); sca_b = p['sca_b'].reshape(C, 1)
    w3 = p['w3'].reshape(C, C);       b3 = p['b3'].reshape(C, 1)
    ln2_w = p['ln2_w'].reshape(C, 1); ln2_b = p['ln2_b'].reshape(C, 1)
    w4 = p['w4'].reshape(C2, C);      b4 = p['b4'].reshape(C2, 1)
    w5 = p['w5'].reshape(C, C);       b5 = p['b5'].reshape(C, 1)
    beta = p['beta'].reshape(C, 1);   gamma = p['gamma'].reshape(C, 1)

    def vspec(a):
        nd = a.ndim
        return pl.BlockSpec(a.shape, lambda b, nd=nd: (0,) * nd)

    smem_spec = pl.BlockSpec(memory_space=pltpu.MemorySpace.SMEM)

    params = (ln1_w, ln1_b, w1, b1, w2, b2, ssa_w, ssa_b, sca_w, sca_b,
              w3, b3, ln2_w, ln2_b, w4, b4, w5, b5, beta, gamma)

    in_specs = [vspec(row), vspec(col),
                pl.BlockSpec((1, C, HW), lambda b: (b, 0, 0))]
    for a in params:
        # ssa 7x7 tap weights go to SMEM so they are used as scalar operands.
        in_specs.append(smem_spec if a is ssa_w else vspec(a))

    out = pl.pallas_call(
        functools.partial(edablock_kernel, H=H, W=W),
        out_shape=jax.ShapeDtypeStruct((N, C, HW), jnp.float32),
        grid=(N,),
        in_specs=in_specs,
        out_specs=pl.BlockSpec((1, C, HW), lambda b: (b, 0, 0)),
        compiler_params=pltpu.CompilerParams(
            dimension_semantics=("parallel",),
            vmem_limit_bytes=_vmem_limit_bytes()),
    )(row, col, x, *params)
    return out.reshape(N, C, H, W)


def edablock_reference(inp, p, eps=1e-6):
    """Plain-JAX NCHW reference mirroring the PyTorch module."""
    C = inp.shape[1]

    def ln(x, w, b):
        mu = jnp.mean(x, axis=1, keepdims=True)
        var = jnp.mean((x - mu) ** 2, axis=1, keepdims=True)
        y = (x - mu) / jnp.sqrt(var + eps)
        return w[None, :, None, None] * y + b[None, :, None, None]

    def conv1x1(x, w, b):
        return jnp.einsum('oi,nihw->nohw', w, x) + b[None, :, None, None]

    x = ln(inp, p['ln1_w'], p['ln1_b'])
    x = conv1x1(x, p['w1'], p['b1'])
    x = lax.conv_general_dilated(x, p['w2'], (1, 1), ((1, 1), (1, 1)),
                                 dimension_numbers=('NCHW', 'OIHW', 'NCHW'),
                                 feature_group_count=2 * C) + p['b2'][None, :, None, None]
    avg = jnp.mean(x, axis=1, keepdims=True)
    mx = jnp.max(x, axis=1, keepdims=True)
    wmap = lax.conv_general_dilated(jnp.concatenate([avg, mx], axis=1), p['ssa_w'],
                                    (1, 1), ((3, 3), (3, 3)),
                                    dimension_numbers=('NCHW', 'OIHW', 'NCHW')) \
        + p['ssa_b'][None, :, None, None]
    g = x[:, :C] * x[:, C:]
    g = g * wmap
    cm = jnp.mean(g, axis=(2, 3), keepdims=True)
    sca_v = jnp.einsum('oi,nihw->nohw', p['sca_w'], cm) + p['sca_b'][None, :, None, None]
    g = g * sca_v
    x = conv1x1(g, p['w3'], p['b3'])
    y = inp + x * p['beta']
    x = conv1x1(ln(y, p['ln2_w'], p['ln2_b']), p['w4'], p['b4'])
    x = x[:, :C] * x[:, C:]
    x = conv1x1(x, p['w5'], p['b5'])
    return y + x * p['gamma']


if __name__ == "__main__":
    key = jax.random.PRNGKey(0)
    N, C, H, W = 2, 4, 16, 16          # small shapes; c=4, DW_Expand=FFN_Expand=2
    C2 = 2 * C
    ks = jax.random.split(key, 24)

    def rnd(k, shape, scale=0.2):
        return (scale * jax.random.normal(k, shape)).astype(jnp.float32)

    params = {
        'ln1_w': rnd(ks[0], (C,)) + 1.0, 'ln1_b': rnd(ks[1], (C,)),
        'w1': rnd(ks[2], (C2, C)),       'b1': rnd(ks[3], (C2,)),
        'w2': rnd(ks[4], (C2, 1, 3, 3)), 'b2': rnd(ks[5], (C2,)),
        'ssa_w': rnd(ks[6], (1, 2, 7, 7)), 'ssa_b': rnd(ks[7], (1,)),
        'sca_w': rnd(ks[8], (C, C)),     'sca_b': rnd(ks[9], (C,)),
        'w3': rnd(ks[10], (C, C)),       'b3': rnd(ks[11], (C,)),
        'ln2_w': rnd(ks[12], (C,)) + 1.0, 'ln2_b': rnd(ks[13], (C,)),
        'w4': rnd(ks[14], (C2, C)),      'b4': rnd(ks[15], (C2,)),
        'w5': rnd(ks[16], (C, C)),       'b5': rnd(ks[17], (C,)),
        'beta': rnd(ks[18], (1, C, 1, 1)), 'gamma': rnd(ks[19], (1, C, 1, 1)),
    }
    inp = jax.random.normal(ks[20], (N, C, H, W), dtype=jnp.float32)

    out = edablock_forward(inp, params)
    out = jax.block_until_ready(out)
    assert out.shape == (N, C, H, W)

    ref = edablock_reference(inp, params)
    err = float(jnp.max(jnp.abs(out - ref)))
    assert err < 5e-4, f"max abs error too large: {err}"
    print("KERNEL_OK")
</pallas_src>

<mosaic_0001>
module attributes {stable_mosaic.version = 11 : i64} {
  func.func @edablock_kernel(%arg0: i32, %arg1: memref<1x256xi32, #tpu.memory_space<vmem>>, %arg2: memref<1x256xi32, #tpu.memory_space<vmem>>, %arg3: memref<1x4x256xf32, #tpu.memory_space<vmem>>, %arg4: memref<4x1xf32, #tpu.memory_space<vmem>>, %arg5: memref<4x1xf32, #tpu.memory_space<vmem>>, %arg6: memref<8x4xf32, #tpu.memory_space<vmem>>, %arg7: memref<8x1xf32, #tpu.memory_space<vmem>>, %arg8: memref<8x9xf32, #tpu.memory_space<vmem>>, %arg9: memref<8x1xf32, #tpu.memory_space<vmem>>, %arg10: memref<2x49xf32, #tpu.memory_space<smem>>, %arg11: memref<1x1xf32, #tpu.memory_space<vmem>>, %arg12: memref<4x4xf32, #tpu.memory_space<vmem>>, %arg13: memref<4x1xf32, #tpu.memory_space<vmem>>, %arg14: memref<4x4xf32, #tpu.memory_space<vmem>>, %arg15: memref<4x1xf32, #tpu.memory_space<vmem>>, %arg16: memref<4x1xf32, #tpu.memory_space<vmem>>, %arg17: memref<4x1xf32, #tpu.memory_space<vmem>>, %arg18: memref<8x4xf32, #tpu.memory_space<vmem>>, %arg19: memref<8x1xf32, #tpu.memory_space<vmem>>, %arg20: memref<4x4xf32, #tpu.memory_space<vmem>>, %arg21: memref<4x1xf32, #tpu.memory_space<vmem>>, %arg22: memref<4x1xf32, #tpu.memory_space<vmem>>, %arg23: memref<4x1xf32, #tpu.memory_space<vmem>>, %arg24: memref<1x4x256xf32, #tpu.memory_space<vmem>>) attributes {dimension_semantics = [#tpu.dimension_semantics<parallel>], iteration_bounds = array<i64: 2>, scalar_prefetch = 0 : i64, scratch_operands = 0 : i64, tpu.core_type = #tpu.core_type<tc>, window_params = [{pipeline_mode = #tpu.pipeline_mode<synchronous>, transform_indices = @transform_0, window_bounds = array<i64: 1, 256>}, {pipeline_mode = #tpu.pipeline_mode<synchronous>, transform_indices = @transform_1, window_bounds = array<i64: 1, 256>}, {transform_indices = @transform_2, window_bounds = array<i64: 1, 4, 256>}, {pipeline_mode = #tpu.pipeline_mode<synchronous>, transform_indices = @transform_3, window_bounds = array<i64: 4, 1>}, {pipeline_mode = #tpu.pipeline_mode<synchronous>, transform_indices = @transform_4, window_bounds = array<i64: 4, 1>}, {pipeline_mode = #tpu.pipeline_mode<synchronous>, transform_indices = @transform_5, window_bounds = array<i64: 8, 4>}, {pipeline_mode = #tpu.pipeline_mode<synchronous>, transform_indices = @transform_6, window_bounds = array<i64: 8, 1>}, {pipeline_mode = #tpu.pipeline_mode<synchronous>, transform_indices = @transform_7, window_bounds = array<i64: 8, 9>}, {pipeline_mode = #tpu.pipeline_mode<synchronous>, transform_indices = @transform_8, window_bounds = array<i64: 8, 1>}, {transform_indices = @transform_9, window_bounds = array<i64: 2, 49>}, {pipeline_mode = #tpu.pipeline_mode<synchronous>, transform_indices = @transform_10, window_bounds = array<i64: 1, 1>}, {pipeline_mode = #tpu.pipeline_mode<synchronous>, transform_indices = @transform_11, window_bounds = array<i64: 4, 4>}, {pipeline_mode = #tpu.pipeline_mode<synchronous>, transform_indices = @transform_12, window_bounds = array<i64: 4, 1>}, {pipeline_mode = #tpu.pipeline_mode<synchronous>, transform_indices = @transform_13, window_bounds = array<i64: 4, 4>}, {pipeline_mode = #tpu.pipeline_mode<synchronous>, transform_indices = @transform_14, window_bounds = array<i64: 4, 1>}, {pipeline_mode = #tpu.pipeline_mode<synchronous>, transform_indices = @transform_15, window_bounds = array<i64: 4, 1>}, {pipeline_mode = #tpu.pipeline_mode<synchronous>, transform_indices = @transform_16, window_bounds = array<i64: 4, 1>}, {pipeline_mode = #tpu.pipeline_mode<synchronous>, transform_indices = @transform_17, window_bounds = array<i64: 8, 4>}, {pipeline_mode = #tpu.pipeline_mode<synchronous>, transform_indices = @transform_18, window_bounds = array<i64: 8, 1>}, {pipeline_mode = #tpu.pipeline_mode<synchronous>, transform_indices = @transform_19, window_bounds = array<i64: 4, 4>}, {pipeline_mode = #tpu.pipeline_mode<synchronous>, transform_indices = @transform_20, window_bounds = array<i64: 4, 1>}, {pipeline_mode = #tpu.pipeline_mode<synchronous>, transform_indices = @transform_21, window_bounds = array<i64: 4, 1>}, {pipeline_mode = #tpu.pipeline_mode<synchronous>, transform_indices = @transform_22, window_bounds = array<i64: 4, 1>}, {transform_indices = @transform_23, window_bounds = array<i64: 1, 4, 256>}]} {
    %c0 = arith.constant 0 : index
    %c0_0 = arith.constant 0 : index
    %0 = vector.load %arg1[%c0, %c0_0] : memref<1x256xi32, #tpu.memory_space<vmem>>, vector<1x256xi32>
    %c0_1 = arith.constant 0 : index
    %c0_2 = arith.constant 0 : index
    %1 = vector.load %arg2[%c0_1, %c0_2] : memref<1x256xi32, #tpu.memory_space<vmem>>, vector<1x256xi32>
    %c-3_i32 = arith.constant -3 : i32
    %2 = vector.broadcast %c-3_i32 : i32 to vector<1x256xi32>
    %3 = arith.addi %0, %2 : vector<1x256xi32>
    %c0_i32 = arith.constant 0 : i32
    %4 = vector.broadcast %c0_i32 : i32 to vector<1x256xi32>
    %5 = arith.cmpi sge, %3, %4 : vector<1x256xi32>
    %c-3_i32_3 = arith.constant -3 : i32
    %6 = vector.broadcast %c-3_i32_3 : i32 to vector<1x256xi32>
    %7 = arith.addi %0, %6 : vector<1x256xi32>
    %c16_i32 = arith.constant 16 : i32
    %8 = vector.broadcast %c16_i32 : i32 to vector<1x256xi32>
    %9 = arith.cmpi slt, %7, %8 : vector<1x256xi32>
    %10 = arith.andi %5, %9 : vector<1x256xi1>
    %11 = arith.extui %10 : vector<1x256xi1> to vector<1x256xi32>
    %12 = arith.sitofp %11 : vector<1x256xi32> to vector<1x256xf32>
    %c-2_i32 = arith.constant -2 : i32
    %13 = vector.broadcast %c-2_i32 : i32 to vector<1x256xi32>
    %14 = arith.addi %0, %13 : vector<1x256xi32>
    %c0_i32_4 = arith.constant 0 : i32
    %15 = vector.broadcast %c0_i32_4 : i32 to vector<1x256xi32>
    %16 = arith.cmpi sge, %14, %15 : vector<1x256xi32>
    %c-2_i32_5 = arith.constant -2 : i32
    %17 = vector.broadcast %c-2_i32_5 : i32 to vector<1x256xi32>
    %18 = arith.addi %0, %17 : vector<1x256xi32>
    %c16_i32_6 = arith.constant 16 : i32
    %19 = vector.broadcast %c16_i32_6 : i32 to vector<1x256xi32>
    %20 = arith.cmpi slt, %18, %19 : vector<1x256xi32>
    %21 = arith.andi %16, %20 : vector<1x256xi1>
    %22 = arith.extui %21 : vector<1x256xi1> to vector<1x256xi32>
    %23 = arith.sitofp %22 : vector<1x256xi32> to vector<1x256xf32>
    %c-1_i32 = arith.constant -1 : i32
    %24 = vector.broadcast %c-1_i32 : i32 to vector<1x256xi32>
    %25 = arith.addi %0, %24 : vector<1x256xi32>
    %c0_i32_7 = arith.constant 0 : i32
    %26 = vector.broadcast %c0_i32_7 : i32 to vector<1x256xi32>
    %27 = arith.cmpi sge, %25, %26 : vector<1x256xi32>
    %c-1_i32_8 = arith.constant -1 : i32
    %28 = vector.broadcast %c-1_i32_8 : i32 to vector<1x256xi32>
    %29 = arith.addi %0, %28 : vector<1x256xi32>
    %c16_i32_9 = arith.constant 16 : i32
    %30 = vector.broadcast %c16_i32_9 : i32 to vector<1x256xi32>
    %31 = arith.cmpi slt, %29, %30 : vector<1x256xi32>
    %32 = arith.andi %27, %31 : vector<1x256xi1>
    %33 = arith.extui %32 : vector<1x256xi1> to vector<1x256xi32>
    %34 = arith.sitofp %33 : vector<1x256xi32> to vector<1x256xf32>
    %c1_i32 = arith.constant 1 : i32
    %35 = vector.broadcast %c1_i32 : i32 to vector<1x256xi32>
    %36 = arith.addi %0, %35 : vector<1x256xi32>
    %c0_i32_10 = arith.constant 0 : i32
    %37 = vector.broadcast %c0_i32_10 : i32 to vector<1x256xi32>
    %38 = arith.cmpi sge, %36, %37 : vector<1x256xi32>
    %c1_i32_11 = arith.constant 1 : i32
    %39 = vector.broadcast %c1_i32_11 : i32 to vector<1x256xi32>
    %40 = arith.addi %0, %39 : vector<1x256xi32>
    %c16_i32_12 = arith.constant 16 : i32
    %41 = vector.broadcast %c16_i32_12 : i32 to vector<1x256xi32>
    %42 = arith.cmpi slt, %40, %41 : vector<1x256xi32>
    %43 = arith.andi %38, %42 : vector<1x256xi1>
    %44 = arith.extui %43 : vector<1x256xi1> to vector<1x256xi32>
    %45 = arith.sitofp %44 : vector<1x256xi32> to vector<1x256xf32>
    %c2_i32 = arith.constant 2 : i32
    %46 = vector.broadcast %c2_i32 : i32 to vector<1x256xi32>
    %47 = arith.addi %0, %46 : vector<1x256xi32>
    %c0_i32_13 = arith.constant 0 : i32
    %48 = vector.broadcast %c0_i32_13 : i32 to vector<1x256xi32>
    %49 = arith.cmpi sge, %47, %48 : vector<1x256xi32>
    %c2_i32_14 = arith.constant 2 : i32
    %50 = vector.broadcast %c2_i32_14 : i32 to vector<1x256xi32>
    %51 = arith.addi %0, %50 : vector<1x256xi32>
    %c16_i32_15 = arith.constant 16 : i32
    %52 = vector.broadcast %c16_i32_15 : i32 to vector<1x256xi32>
    %53 = arith.cmpi slt, %51, %52 : vector<1x256xi32>
    %54 = arith.andi %49, %53 : vector<1x256xi1>
    %55 = arith.extui %54 : vector<1x256xi1> to vector<1x256xi32>
    %56 = arith.sitofp %55 : vector<1x256xi32> to vector<1x256xf32>
    %c3_i32 = arith.constant 3 : i32
    %57 = vector.broadcast %c3_i32 : i32 to vector<1x256xi32>
    %58 = arith.addi %0, %57 : vector<1x256xi32>
    %c0_i32_16 = arith.constant 0 : i32
    %59 = vector.broadcast %c0_i32_16 : i32 to vector<1x256xi32>
    %60 = arith.cmpi sge, %58, %59 : vector<1x256xi32>
    %c3_i32_17 = arith.constant 3 : i32
    %61 = vector.broadcast %c3_i32_17 : i32 to vector<1x256xi32>
    %62 = arith.addi %0, %61 : vector<1x256xi32>
    %c16_i32_18 = arith.constant 16 : i32
    %63 = vector.broadcast %c16_i32_18 : i32 to vector<1x256xi32>
    %64 = arith.cmpi slt, %62, %63 : vector<1x256xi32>
    %65 = arith.andi %60, %64 : vector<1x256xi1>
    %66 = arith.extui %65 : vector<1x256xi1> to vector<1x256xi32>
    %67 = arith.sitofp %66 : vector<1x256xi32> to vector<1x256xf32>
    %c-3_i32_19 = arith.constant -3 : i32
    %68 = vector.broadcast %c-3_i32_19 : i32 to vector<1x256xi32>
    %69 = arith.addi %1, %68 : vector<1x256xi32>
    %c0_i32_20 = arith.constant 0 : i32
    %70 = vector.broadcast %c0_i32_20 : i32 to vector<1x256xi32>
    %71 = arith.cmpi sge, %69, %70 : vector<1x256xi32>
    %c-3_i32_21 = arith.constant -3 : i32
    %72 = vector.broadcast %c-3_i32_21 : i32 to vector<1x256xi32>
    %73 = arith.addi %1, %72 : vector<1x256xi32>
    %c16_i32_22 = arith.constant 16 : i32
    %74 = vector.broadcast %c16_i32_22 : i32 to vector<1x256xi32>
    %75 = arith.cmpi slt, %73, %74 : vector<1x256xi32>
    %76 = arith.andi %71, %75 : vector<1x256xi1>
    %77 = arith.extui %76 : vector<1x256xi1> to vector<1x256xi32>
    %78 = arith.sitofp %77 : vector<1x256xi32> to vector<1x256xf32>
    %c-2_i32_23 = arith.constant -2 : i32
    %79 = vector.broadcast %c-2_i32_23 : i32 to vector<1x256xi32>
    %80 = arith.addi %1, %79 : vector<1x256xi32>
    %c0_i32_24 = arith.constant 0 : i32
    %81 = vector.broadcast %c0_i32_24 : i32 to vector<1x256xi32>
    %82 = arith.cmpi sge, %80, %81 : vector<1x256xi32>
    %c-2_i32_25 = arith.constant -2 : i32
    %83 = vector.broadcast %c-2_i32_25 : i32 to vector<1x256xi32>
    %84 = arith.addi %1, %83 : vector<1x256xi32>
    %c16_i32_26 = arith.constant 16 : i32
    %85 = vector.broadcast %c16_i32_26 : i32 to vector<1x256xi32>
    %86 = arith.cmpi slt, %84, %85 : vector<1x256xi32>
    %87 = arith.andi %82, %86 : vector<1x256xi1>
    %88 = arith.extui %87 : vector<1x256xi1> to vector<1x256xi32>
    %89 = arith.sitofp %88 : vector<1x256xi32> to vector<1x256xf32>
    %c-1_i32_27 = arith.constant -1 : i32
    %90 = vector.broadcast %c-1_i32_27 : i32 to vector<1x256xi32>
    %91 = arith.addi %1, %90 : vector<1x256xi32>
    %c0_i32_28 = arith.constant 0 : i32
    %92 = vector.broadcast %c0_i32_28 : i32 to vector<1x256xi32>
    %93 = arith.cmpi sge, %91, %92 : vector<1x256xi32>
    %c-1_i32_29 = arith.constant -1 : i32
    %94 = vector.broadcast %c-1_i32_29 : i32 to vector<1x256xi32>
    %95 = arith.addi %1, %94 : vector<1x256xi32>
    %c16_i32_30 = arith.constant 16 : i32
    %96 = vector.broadcast %c16_i32_30 : i32 to vector<1x256xi32>
    %97 = arith.cmpi slt, %95, %96 : vector<1x256xi32>
    %98 = arith.andi %93, %97 : vector<1x256xi1>
    %99 = arith.extui %98 : vector<1x256xi1> to vector<1x256xi32>
    %100 = arith.sitofp %99 : vector<1x256xi32> to vector<1x256xf32>
    %c1_i32_31 = arith.constant 1 : i32
    %101 = vector.broadcast %c1_i32_31 : i32 to vector<1x256xi32>
    %102 = arith.addi %1, %101 : vector<1x256xi32>
    %c0_i32_32 = arith.constant 0 : i32
    %103 = vector.broadcast %c0_i32_32 : i32 to vector<1x256xi32>
    %104 = arith.cmpi sge, %102, %103 : vector<1x256xi32>
    %c1_i32_33 = arith.constant 1 : i32
    %105 = vector.broadcast %c1_i32_33 : i32 to vector<1x256xi32>
    %106 = arith.addi %1, %105 : vector<1x256xi32>
    %c16_i32_34 = arith.constant 16 : i32
    %107 = vector.broadcast %c16_i32_34 : i32 to vector<1x256xi32>
    %108 = arith.cmpi slt, %106, %107 : vector<1x256xi32>
    %109 = arith.andi %104, %108 : vector<1x256xi1>
    %110 = arith.extui %109 : vector<1x256xi1> to vector<1x256xi32>
    %111 = arith.sitofp %110 : vector<1x256xi32> to vector<1x256xf32>
    %c2_i32_35 = arith.constant 2 : i32
    %112 = vector.broadcast %c2_i32_35 : i32 to vector<1x256xi32>
    %113 = arith.addi %1, %112 : vector<1x256xi32>
    %c0_i32_36 = arith.constant 0 : i32
    %114 = vector.broadcast %c0_i32_36 : i32 to vector<1x256xi32>
    %115 = arith.cmpi sge, %113, %114 : vector<1x256xi32>
    %c2_i32_37 = arith.constant 2 : i32
    %116 = vector.broadcast %c2_i32_37 : i32 to vector<1x256xi32>
    %117 = arith.addi %1, %116 : vector<1x256xi32>
    %c16_i32_38 = arith.constant 16 : i32
    %118 = vector.broadcast %c16_i32_38 : i32 to vector<1x256xi32>
    %119 = arith.cmpi slt, %117, %118 : vector<1x256xi32>
    %120 = arith.andi %115, %119 : vector<1x256xi1>
    %121 = arith.extui %120 : vector<1x256xi1> to vector<1x256xi32>
    %122 = arith.sitofp %121 : vector<1x256xi32> to vector<1x256xf32>
    %c3_i32_39 = arith.constant 3 : i32
    %123 = vector.broadcast %c3_i32_39 : i32 to vector<1x256xi32>
    %124 = arith.addi %1, %123 : vector<1x256xi32>
    %c0_i32_40 = arith.constant 0 : i32
    %125 = vector.broadcast %c0_i32_40 : i32 to vector<1x256xi32>
    %126 = arith.cmpi sge, %124, %125 : vector<1x256xi32>
    %c3_i32_41 = arith.constant 3 : i32
    %127 = vector.broadcast %c3_i32_41 : i32 to vector<1x256xi32>
    %128 = arith.addi %1, %127 : vector<1x256xi32>
    %c16_i32_42 = arith.constant 16 : i32
    %129 = vector.broadcast %c16_i32_42 : i32 to vector<1x256xi32>
    %130 = arith.cmpi slt, %128, %129 : vector<1x256xi32>
    %131 = arith.andi %126, %130 : vector<1x256xi1>
    %132 = arith.extui %131 : vector<1x256xi1> to vector<1x256xi32>
    %133 = arith.sitofp %132 : vector<1x256xi32> to vector<1x256xf32>
    %cst = arith.constant 2.500000e-01 : f32
    %134 = vector.broadcast %cst : f32 to vector<1x4xf32>
    %cst_43 = arith.constant 1.250000e-01 : f32
    %135 = vector.broadcast %cst_43 : f32 to vector<1x8xf32>
    %cst_44 = arith.constant 3.906250e-03 : f32
    %136 = vector.broadcast %cst_44 : f32 to vector<256x1xf32>
    %c0_45 = arith.constant 0 : index
    %c0_46 = arith.constant 0 : index
    %c0_47 = arith.constant 0 : index
    %137 = vector.load %arg3[%c0_45, %c0_46, %c0_47] : memref<1x4x256xf32, #tpu.memory_space<vmem>>, vector<1x4x256xf32>
    %138 = vector.shape_cast %137 : vector<1x4x256xf32> to vector<4x256xf32>
    %c0_48 = arith.constant 0 : index
    %c0_49 = arith.constant 0 : index
    %139 = vector.load %arg4[%c0_48, %c0_49] : memref<4x1xf32, #tpu.memory_space<vmem>>, vector<4x1xf32>
    %c0_50 = arith.constant 0 : index
    %c0_51 = arith.constant 0 : index
    %140 = vector.load %arg5[%c0_50, %c0_51] : memref<4x1xf32, #tpu.memory_space<vmem>>, vector<4x1xf32>
    %cst_52 = arith.constant dense<0.000000e+00> : vector<1x256xf32>
    %141 = tpu.matmul %134, %138, %cst_52 {dimension_numbers = #tpu.dot_dimension_numbers<[1], [0], [0], [1], [0, 0, 1, 1], [], []>} : vector<1x4xf32>, vector<4x256xf32>, vector<1x256xf32> -> vector<1x256xf32>
    %142 = vector.broadcast %141 : vector<1x256xf32> to vector<4x256xf32>
    %143 = arith.subf %138, %142 : vector<4x256xf32>
    %144 = arith.mulf %143, %143 : vector<4x256xf32>
    %cst_53 = arith.constant dense<0.000000e+00> : vector<1x256xf32>
    %145 = tpu.matmul %134, %144, %cst_53 {dimension_numbers = #tpu.dot_dimension_numbers<[1], [0], [0], [1], [0, 0, 1, 1], [], []>} : vector<1x4xf32>, vector<4x256xf32>, vector<1x256xf32> -> vector<1x256xf32>
    %cst_54 = arith.constant 9.99999997E-7 : f32
    %146 = vector.broadcast %cst_54 : f32 to vector<1x256xf32>
    %147 = arith.addf %145, %146 : vector<1x256xf32>
    %148 = math.rsqrt %147 : vector<1x256xf32>
    %149 = vector.broadcast %148 : vector<1x256xf32> to vector<4x256xf32>
    %150 = arith.mulf %143, %149 : vector<4x256xf32>
    %151 = vector.broadcast %139 : vector<4x1xf32> to vector<4x256xf32>
    %152 = arith.mulf %150, %151 : vector<4x256xf32>
    %153 = vector.broadcast %140 : vector<4x1xf32> to vector<4x256xf32>
    %154 = arith.addf %152, %153 : vector<4x256xf32>
    %c0_55 = arith.constant 0 : index
    %c0_56 = arith.constant 0 : index
    %155 = vector.load %arg6[%c0_55, %c0_56] : memref<8x4xf32, #tpu.memory_space<vmem>>, vector<8x4xf32>
    %cst_57 = arith.constant dense<0.000000e+00> : vector<8x256xf32>
    %156 = tpu.matmul %155, %154, %cst_57 {dimension_numbers = #tpu.dot_dimension_numbers<[1], [0], [0], [1], [0, 0, 1, 1], [], []>} : vector<8x4xf32>, vector<4x256xf32>, vector<8x256xf32> -> vector<8x256xf32>
    %c0_58 = arith.constant 0 : index
    %c0_59 = arith.constant 0 : index
    %157 = vector.load %arg7[%c0_58, %c0_59] : memref<8x1xf32, #tpu.memory_space<vmem>>, vector<8x1xf32>
    %158 = vector.broadcast %157 : vector<8x1xf32> to vector<8x256xf32>
    %159 = arith.addf %156, %158 : vector<8x256xf32>
    %c0_60 = arith.constant 0 : index
    %c0_61 = arith.constant 0 : index
    %160 = vector.load %arg8[%c0_60, %c0_61] : memref<8x9xf32, #tpu.memory_space<vmem>>, vector<8x9xf32>
    %c1_i32_62 = arith.constant 1 : i32
    %161 = tpu.dynamic_rotate %159 by %c1_i32_62 dim 1 : vector<8x256xf32>, i32 -> vector<8x256xf32>
    %162 = vector.broadcast %100 : vector<1x256xf32> to vector<8x256xf32>
    %163 = arith.mulf %161, %162 : vector<8x256xf32>
    %c255_i32 = arith.constant 255 : i32
    %164 = tpu.dynamic_rotate %159 by %c255_i32 dim 1 : vector<8x256xf32>, i32 -> vector<8x256xf32>
    %165 = vector.broadcast %111 : vector<1x256xf32> to vector<8x256xf32>
    %166 = arith.mulf %164, %165 : vector<8x256xf32>
    %c0_63 = arith.constant 0 : index
    %c0_64 = arith.constant 0 : index
    %167 = vector.load %arg9[%c0_63, %c0_64] : memref<8x1xf32, #tpu.memory_space<vmem>>, vector<8x1xf32>
    %168 = vector.extract_strided_slice %160 {offsets = [0, 0], sizes = [8, 1], strides = [1, 1]} : vector<8x9xf32> to vector<8x1xf32>
    %169 = vector.broadcast %168 : vector<8x1xf32> to vector<8x256xf32>
    %170 = arith.mulf %163, %169 : vector<8x256xf32>
    %171 = vector.extract_strided_slice %160 {offsets = [0, 1], sizes = [8, 1], strides = [1, 1]} : vector<8x9xf32> to vector<8x1xf32>
    %172 = vector.broadcast %171 : vector<8x1xf32> to vector<8x256xf32>
    %173 = arith.mulf %159, %172 : vector<8x256xf32>
    %174 = arith.addf %170, %173 : vector<8x256xf32>
    %175 = vector.extract_strided_slice %160 {offsets = [0, 2], sizes = [8, 1], strides = [1, 1]} : vector<8x9xf32> to vector<8x1xf32>
    %176 = vector.broadcast %175 : vector<8x1xf32> to vector<8x256xf32>
    %177 = arith.mulf %166, %176 : vector<8x256xf32>
    %178 = arith.addf %174, %177 : vector<8x256xf32>
    %c16_i32_65 = arith.constant 16 : i32
    %179 = tpu.dynamic_rotate %178 by %c16_i32_65 dim 1 : vector<8x256xf32>, i32 -> vector<8x256xf32>
    %180 = vector.broadcast %34 : vector<1x256xf32> to vector<8x256xf32>
    %181 = arith.mulf %179, %180 : vector<8x256xf32>
    %182 = vector.broadcast %167 : vector<8x1xf32> to vector<8x256xf32>
    %183 = arith.addf %182, %181 : vector<8x256xf32>
    %184 = vector.extract_strided_slice %160 {offsets = [0, 3], sizes = [8, 1], strides = [1, 1]} : vector<8x9xf32> to vector<8x1xf32>
    %185 = vector.broadcast %184 : vector<8x1xf32> to vector<8x256xf32>
    %186 = arith.mulf %163, %185 : vector<8x256xf32>
    %187 = vector.extract_strided_slice %160 {offsets = [0, 4], sizes = [8, 1], strides = [1, 1]} : vector<8x9xf32> to vector<8x1xf32>
    %188 = vector.broadcast %187 : vector<8x1xf32> to vector<8x256xf32>
    %189 = arith.mulf %159, %188 : vector<8x256xf32>
    %190 = arith.addf %186, %189 : vector<8x256xf32>
    %191 = vector.extract_strided_slice %160 {offsets = [0, 5], sizes = [8, 1], strides = [1, 1]} : vector<8x9xf32> to vector<8x1xf32>
    %192 = vector.broadcast %191 : vector<8x1xf32> to vector<8x256xf32>
    %193 = arith.mulf %166, %192 : vector<8x256xf32>
    %194 = arith.addf %190, %193 : vector<8x256xf32>
    %195 = arith.addf %183, %194 : vector<8x256xf32>
    %196 = vector.extract_strided_slice %160 {offsets = [0, 6], sizes = [8, 1], strides = [1, 1]} : vector<8x9xf32> to vector<8x1xf32>
    %197 = vector.broadcast %196 : vector<8x1xf32> to vector<8x256xf32>
    %198 = arith.mulf %163, %197 : vector<8x256xf32>
    %199 = vector.extract_strided_slice %160 {offsets = [0, 7], sizes = [8, 1], strides = [1, 1]} : vector<8x9xf32> to vector<8x1xf32>
    %200 = vector.broadcast %199 : vector<8x1xf32> to vector<8x256xf32>
    %201 = arith.mulf %159, %200 : vector<8x256xf32>
    %202 = arith.addf %198, %201 : vector<8x256xf32>
    %203 = vector.extract_strided_slice %160 {offsets = [0, 8], sizes = [8, 1], strides = [1, 1]} : vector<8x9xf32> to vector<8x1xf32>
    %204 = vector.broadcast %203 : vector<8x1xf32> to vector<8x256xf32>
    %205 = arith.mulf %166, %204 : vector<8x256xf32>
    %206 = arith.addf %202, %205 : vector<8x256xf32>
    %c240_i32 = arith.constant 240 : i32
    %207 = tpu.dynamic_rotate %206 by %c240_i32 dim 1 : vector<8x256xf32>, i32 -> vector<8x256xf32>
    %208 = vector.broadcast %45 : vector<1x256xf32> to vector<8x256xf32>
    %209 = arith.mulf %207, %208 : vector<8x256xf32>
    %210 = arith.addf %195, %209 : vector<8x256xf32>
    %cst_66 = arith.constant dense<0.000000e+00> : vector<1x256xf32>
    %211 = tpu.matmul %135, %210, %cst_66 {dimension_numbers = #tpu.dot_dimension_numbers<[1], [0], [0], [1], [0, 0, 1, 1], [], []>} : vector<1x8xf32>, vector<8x256xf32>, vector<1x256xf32> -> vector<1x256xf32>
    %cst_67 = arith.constant dense<0xFF800000> : vector<256xf32>
    %212 = vector.multi_reduction <maximumf>, %210, %cst_67 [0] : vector<8x256xf32> to vector<256xf32>
    %213 = vector.shape_cast %212 : vector<256xf32> to vector<1x256xf32>
    %c3_i32_68 = arith.constant 3 : i32
    %214 = tpu.dynamic_rotate %211 by %c3_i32_68 dim 1 : vector<1x256xf32>, i32 -> vector<1x256xf32>
    %215 = arith.mulf %214, %78 : vector<1x256xf32>
    %c2_i32_69 = arith.constant 2 : i32
    %216 = tpu.dynamic_rotate %211 by %c2_i32_69 dim 1 : vector<1x256xf32>, i32 -> vector<1x256xf32>
    %217 = arith.mulf %216, %89 : vector<1x256xf32>
    %c1_i32_70 = arith.constant 1 : i32
    %218 = tpu.dynamic_rotate %211 by %c1_i32_70 dim 1 : vector<1x256xf32>, i32 -> vector<1x256xf32>
    %219 = arith.mulf %218, %100 : vector<1x256xf32>
    %c255_i32_71 = arith.constant 255 : i32
    %220 = tpu.dynamic_rotate %211 by %c255_i32_71 dim 1 : vector<1x256xf32>, i32 -> vector<1x256xf32>
    %221 = arith.mulf %220, %111 : vector<1x256xf32>
    %c254_i32 = arith.constant 254 : i32
    %222 = tpu.dynamic_rotate %211 by %c254_i32 dim 1 : vector<1x256xf32>, i32 -> vector<1x256xf32>
    %223 = arith.mulf %222, %122 : vector<1x256xf32>
    %c253_i32 = arith.constant 253 : i32
    %224 = tpu.dynamic_rotate %211 by %c253_i32 dim 1 : vector<1x256xf32>, i32 -> vector<1x256xf32>
    %225 = arith.mulf %224, %133 : vector<1x256xf32>
    %c3_i32_72 = arith.constant 3 : i32
    %226 = tpu.dynamic_rotate %213 by %c3_i32_72 dim 1 : vector<1x256xf32>, i32 -> vector<1x256xf32>
    %227 = arith.mulf %226, %78 : vector<1x256xf32>
    %c2_i32_73 = arith.constant 2 : i32
    %228 = tpu.dynamic_rotate %213 by %c2_i32_73 dim 1 : vector<1x256xf32>, i32 -> vector<1x256xf32>
    %229 = arith.mulf %228, %89 : vector<1x256xf32>
    %c1_i32_74 = arith.constant 1 : i32
    %230 = tpu.dynamic_rotate %213 by %c1_i32_74 dim 1 : vector<1x256xf32>, i32 -> vector<1x256xf32>
    %231 = arith.mulf %230, %100 : vector<1x256xf32>
    %c255_i32_75 = arith.constant 255 : i32
    %232 = tpu.dynamic_rotate %213 by %c255_i32_75 dim 1 : vector<1x256xf32>, i32 -> vector<1x256xf32>
    %233 = arith.mulf %232, %111 : vector<1x256xf32>
    %c254_i32_76 = arith.constant 254 : i32
    %234 = tpu.dynamic_rotate %213 by %c254_i32_76 dim 1 : vector<1x256xf32>, i32 -> vector<1x256xf32>
    %235 = arith.mulf %234, %122 : vector<1x256xf32>
    %c253_i32_77 = arith.constant 253 : i32
    %236 = tpu.dynamic_rotate %213 by %c253_i32_77 dim 1 : vector<1x256xf32>, i32 -> vector<1x256xf32>
    %237 = arith.mulf %236, %133 : vector<1x256xf32>
    %c0_78 = arith.constant 0 : index
    %c0_79 = arith.constant 0 : index
    %238 = vector.load %arg11[%c0_78, %c0_79] : memref<1x1xf32, #tpu.memory_space<vmem>>, vector<1x1xf32>
    %c0_80 = arith.constant 0 : index
    %c0_81 = arith.constant 0 : index
    %239 = memref.load %arg10[%c0_80, %c0_81] : memref<2x49xf32, #tpu.memory_space<smem>>
    %240 = vector.broadcast %239 : f32 to vector<1x256xf32>
    %241 = arith.mulf %215, %240 : vector<1x256xf32>
    %c1 = arith.constant 1 : index
    %c0_82 = arith.constant 0 : index
    %242 = memref.load %arg10[%c1, %c0_82] : memref<2x49xf32, #tpu.memory_space<smem>>
    %243 = vector.broadcast %242 : f32 to vector<1x256xf32>
    %244 = arith.mulf %227, %243 : vector<1x256xf32>
    %245 = arith.addf %241, %244 : vector<1x256xf32>
    %c0_83 = arith.constant 0 : index
    %c1_84 = arith.constant 1 : index
    %246 = memref.load %arg10[%c0_83, %c1_84] : memref<2x49xf32, #tpu.memory_space<smem>>
    %247 = vector.broadcast %246 : f32 to vector<1x256xf32>
    %248 = arith.mulf %217, %247 : vector<1x256xf32>
    %c1_85 = arith.constant 1 : index
    %c1_86 = arith.constant 1 : index
    %249 = memref.load %arg10[%c1_85, %c1_86] : memref<2x49xf32, #tpu.memory_space<smem>>
    %250 = vector.broadcast %249 : f32 to vector<1x256xf32>
    %251 = arith.mulf %229, %250 : vector<1x256xf32>
    %252 = arith.addf %248, %251 : vector<1x256xf32>
    %253 = arith.addf %245, %252 : vector<1x256xf32>
    %c0_87 = arith.constant 0 : index
    %c2 = arith.constant 2 : index
    %254 = memref.load %arg10[%c0_87, %c2] : memref<2x49xf32, #tpu.memory_space<smem>>
    %255 = vector.broadcast %254 : f32 to vector<1x256xf32>
    %256 = arith.mulf %219, %255 : vector<1x256xf32>
    %c1_88 = arith.constant 1 : index
    %c2_89 = arith.constant 2 : index
    %257 = memref.load %arg10[%c1_88, %c2_89] : memref<2x49xf32, #tpu.memory_space<smem>>
    %258 = vector.broadcast %257 : f32 to vector<1x256xf32>
    %259 = arith.mulf %231, %258 : vector<1x256xf32>
    %260 = arith.addf %256, %259 : vector<1x256xf32>
    %261 = arith.addf %253, %260 : vector<1x256xf32>
    %c0_90 = arith.constant 0 : index
    %c3 = arith.constant 3 : index
    %262 = memref.load %arg10[%c0_90, %c3] : memref<2x49xf32, #tpu.memory_space<smem>>
    %263 = vector.broadcast %262 : f32 to vector<1x256xf32>
    %264 = arith.mulf %211, %263 : vector<1x256xf32>
    %c1_91 = arith.constant 1 : index
    %c3_92 = arith.constant 3 : index
    %265 = memref.load %arg10[%c1_91, %c3_92] : memref<2x49xf32, #tpu.memory_space<smem>>
    %266 = vector.broadcast %265 : f32 to vector<1x256xf32>
    %267 = arith.mulf %213, %266 : vector<1x256xf32>
    %268 = arith.addf %264, %267 : vector<1x256xf32>
    %269 = arith.addf %261, %268 : vector<1x256xf32>
    %c0_93 = arith.constant 0 : index
    %c4 = arith.constant 4 : index
    %270 = memref.load %arg10[%c0_93, %c4] : memref<2x49xf32, #tpu.memory_space<smem>>
    %271 = vector.broadcast %270 : f32 to vector<1x256xf32>
    %272 = arith.mulf %221, %271 : vector<1x256xf32>
    %c1_94 = arith.constant 1 : index
    %c4_95 = arith.constant 4 : index
    %273 = memref.load %arg10[%c1_94, %c4_95] : memref<2x49xf32, #tpu.memory_space<smem>>
    %274 = vector.broadcast %273 : f32 to vector<1x256xf32>
    %275 = arith.mulf %233, %274 : vector<1x256xf32>
    %276 = arith.addf %272, %275 : vector<1x256xf32>
    %277 = arith.addf %269, %276 : vector<1x256xf32>
    %c0_96 = arith.constant 0 : index
    %c5 = arith.constant 5 : index
    %278 = memref.load %arg10[%c0_96, %c5] : memref<2x49xf32, #tpu.memory_space<smem>>
    %279 = vector.broadcast %278 : f32 to vector<1x256xf32>
    %280 = arith.mulf %223, %279 : vector<1x256xf32>
    %c1_97 = arith.constant 1 : index
    %c5_98 = arith.constant 5 : index
    %281 = memref.load %arg10[%c1_97, %c5_98] : memref<2x49xf32, #tpu.memory_space<smem>>
    %282 = vector.broadcast %281 : f32 to vector<1x256xf32>
    %283 = arith.mulf %235, %282 : vector<1x256xf32>
    %284 = arith.addf %280, %283 : vector<1x256xf32>
    %285 = arith.addf %277, %284 : vector<1x256xf32>
    %c0_99 = arith.constant 0 : index
    %c6 = arith.constant 6 : index
    %286 = memref.load %arg10[%c0_99, %c6] : memref<2x49xf32, #tpu.memory_space<smem>>
    %287 = vector.broadcast %286 : f32 to vector<1x256xf32>
    %288 = arith.mulf %225, %287 : vector<1x256xf32>
    %c1_100 = arith.constant 1 : index
    %c6_101 = arith.constant 6 : index
    %289 = memref.load %arg10[%c1_100, %c6_101] : memref<2x49xf32, #tpu.memory_space<smem>>
    %290 = vector.broadcast %289 : f32 to vector<1x256xf32>
    %291 = arith.mulf %237, %290 : vector<1x256xf32>
    %292 = arith.addf %288, %291 : vector<1x256xf32>
    %293 = arith.addf %285, %292 : vector<1x256xf32>
    %c48_i32 = arith.constant 48 : i32
    %294 = tpu.dynamic_rotate %293 by %c48_i32 dim 1 : vector<1x256xf32>, i32 -> vector<1x256xf32>
    %295 = arith.mulf %294, %12 : vector<1x256xf32>
    %296 = vector.broadcast %238 : vector<1x1xf32> to vector<1x256xf32>
    %297 = arith.addf %296, %295 : vector<1x256xf32>
    %c0_102 = arith.constant 0 : index
    %c7 = arith.constant 7 : index
    %298 = memref.load %arg10[%c0_102, %c7] : memref<2x49xf32, #tpu.memory_space<smem>>
    %299 = vector.broadcast %298 : f32 to vector<1x256xf32>
    %300 = arith.mulf %215, %299 : vector<1x256xf32>
    %c1_103 = arith.constant 1 : index
    %c7_104 = arith.constant 7 : index
    %301 = memref.load %arg10[%c1_103, %c7_104] : memref<2x49xf32, #tpu.memory_space<smem>>
    %302 = vector.broadcast %301 : f32 to vector<1x256xf32>
    %303 = arith.mulf %227, %302 : vector<1x256xf32>
    %304 = arith.addf %300, %303 : vector<1x256xf32>
    %c0_105 = arith.constant 0 : index
    %c8 = arith.constant 8 : index
    %305 = memref.load %arg10[%c0_105, %c8] : memref<2x49xf32, #tpu.memory_space<smem>>
    %306 = vector.broadcast %305 : f32 to vector<1x256xf32>
    %307 = arith.mulf %217, %306 : vector<1x256xf32>
    %c1_106 = arith.constant 1 : index
    %c8_107 = arith.constant 8 : index
    %308 = memref.load %arg10[%c1_106, %c8_107] : memref<2x49xf32, #tpu.memory_space<smem>>
    %309 = vector.broadcast %308 : f32 to vector<1x256xf32>
    %310 = arith.mulf %229, %309 : vector<1x256xf32>
    %311 = arith.addf %307, %310 : vector<1x256xf32>
    %312 = arith.addf %304, %311 : vector<1x256xf32>
    %c0_108 = arith.constant 0 : index
    %c9 = arith.constant 9 : index
    %313 = memref.load %arg10[%c0_108, %c9] : memref<2x49xf32, #tpu.memory_space<smem>>
    %314 = vector.broadcast %313 : f32 to vector<1x256xf32>
    %315 = arith.mulf %219, %314 : vector<1x256xf32>
    %c1_109 = arith.constant 1 : index
    %c9_110 = arith.constant 9 : index
    %316 = memref.load %arg10[%c1_109, %c9_110] : memref<2x49xf32, #tpu.memory_space<smem>>
    %317 = vector.broadcast %316 : f32 to vector<1x256xf32>
    %318 = arith.mulf %231, %317 : vector<1x256xf32>
    %319 = arith.addf %315, %318 : vector<1x256xf32>
    %320 = arith.addf %312, %319 : vector<1x256xf32>
    %c0_111 = arith.constant 0 : index
    %c10 = arith.constant 10 : index
    %321 = memref.load %arg10[%c0_111, %c10] : memref<2x49xf32, #tpu.memory_space<smem>>
    %322 = vector.broadcast %321 : f32 to vector<1x256xf32>
    %323 = arith.mulf %211, %322 : vector<1x256xf32>
    %c1_112 = arith.constant 1 : index
    %c10_113 = arith.constant 10 : index
    %324 = memref.load %arg10[%c1_112, %c10_113] : memref<2x49xf32, #tpu.memory_space<smem>>
    %325 = vector.broadcast %324 : f32 to vector<1x256xf32>
    %326 = arith.mulf %213, %325 : vector<1x256xf32>
    %327 = arith.addf %323, %326 : vector<1x256xf32>
    %328 = arith.addf %320, %327 : vector<1x256xf32>
    %c0_114 = arith.constant 0 : index
    %c11 = arith.constant 11 : index
    %329 = memref.load %arg10[%c0_114, %c11] : memref<2x49xf32, #tpu.memory_space<smem>>
    %330 = vector.broadcast %329 : f32 to vector<1x256xf32>
    %331 = arith.mulf %221, %330 : vector<1x256xf32>
    %c1_115 = arith.constant 1 : index
    %c11_116 = arith.constant 11 : index
    %332 = memref.load %arg10[%c1_115, %c11_116] : memref<2x49xf32, #tpu.memory_space<smem>>
    %333 = vector.broadcast %332 : f32 to vector<1x256xf32>
    %334 = arith.mulf %233, %333 : vector<1x256xf32>
    %335 = arith.addf %331, %334 : vector<1x256xf32>
    %336 = arith.addf %328, %335 : vector<1x256xf32>
    %c0_117 = arith.constant 0 : index
    %c12 = arith.constant 12 : index
    %337 = memref.load %arg10[%c0_117, %c12] : memref<2x49xf32, #tpu.memory_space<smem>>
    %338 = vector.broadcast %337 : f32 to vector<1x256xf32>
    %339 = arith.mulf %223, %338 : vector<1x256xf32>
    %c1_118 = arith.constant 1 : index
    %c12_119 = arith.constant 12 : index
    %340 = memref.load %arg10[%c1_118, %c12_119] : memref<2x49xf32, #tpu.memory_space<smem>>
    %341 = vector.broadcast %340 : f32 to vector<1x256xf32>
    %342 = arith.mulf %235, %341 : vector<1x256xf32>
    %343 = arith.addf %339, %342 : vector<1x256xf32>
    %344 = arith.addf %336, %343 : vector<1x256xf32>
    %c0_120 = arith.constant 0 : index
    %c13 = arith.constant 13 : index
    %345 = memref.load %arg10[%c0_120, %c13] : memref<2x49xf32, #tpu.memory_space<smem>>
    %346 = vector.broadcast %345 : f32 to vector<1x256xf32>
    %347 = arith.mulf %225, %346 : vector<1x256xf32>
    %c1_121 = arith.constant 1 : index
    %c13_122 = arith.constant 13 : index
    %348 = memref.load %arg10[%c1_121, %c13_122] : memref<2x49xf32, #tpu.memory_space<smem>>
    %349 = vector.broadcast %348 : f32 to vector<1x256xf32>
    %350 = arith.mulf %237, %349 : vector<1x256xf32>
    %351 = arith.addf %347, %350 : vector<1x256xf32>
    %352 = arith.addf %344, %351 : vector<1x256xf32>
    %c32_i32 = arith.constant 32 : i32
    %353 = tpu.dynamic_rotate %352 by %c32_i32 dim 1 : vector<1x256xf32>, i32 -> vector<1x256xf32>
    %354 = arith.mulf %353, %23 : vector<1x256xf32>
    %355 = arith.addf %297, %354 : vector<1x256xf32>
    %c0_123 = arith.constant 0 : index
    %c14 = arith.constant 14 : index
    %356 = memref.load %arg10[%c0_123, %c14] : memref<2x49xf32, #tpu.memory_space<smem>>
    %357 = vector.broadcast %356 : f32 to vector<1x256xf32>
    %358 = arith.mulf %215, %357 : vector<1x256xf32>
    %c1_124 = arith.constant 1 : index
    %c14_125 = arith.constant 14 : index
    %359 = memref.load %arg10[%c1_124, %c14_125] : memref<2x49xf32, #tpu.memory_space<smem>>
    %360 = vector.broadcast %359 : f32 to vector<1x256xf32>
    %361 = arith.mulf %227, %360 : vector<1x256xf32>
    %362 = arith.addf %358, %361 : vector<1x256xf32>
    %c0_126 = arith.constant 0 : index
    %c15 = arith.constant 15 : index
    %363 = memref.load %arg10[%c0_126, %c15] : memref<2x49xf32, #tpu.memory_space<smem>>
    %364 = vector.broadcast %363 : f32 to vector<1x256xf32>
    %365 = arith.mulf %217, %364 : vector<1x256xf32>
    %c1_127 = arith.constant 1 : index
    %c15_128 = arith.constant 15 : index
    %366 = memref.load %arg10[%c1_127, %c15_128] : memref<2x49xf32, #tpu.memory_space<smem>>
    %367 = vector.broadcast %366 : f32 to vector<1x256xf32>
    %368 = arith.mulf %229, %367 : vector<1x256xf32>
    %369 = arith.addf %365, %368 : vector<1x256xf32>
    %370 = arith.addf %362, %369 : vector<1x256xf32>
    %c0_129 = arith.constant 0 : index
    %c16 = arith.constant 16 : index
    %371 = memref.load %arg10[%c0_129, %c16] : memref<2x49xf32, #tpu.memory_space<smem>>
    %372 = vector.broadcast %371 : f32 to vector<1x256xf32>
    %373 = arith.mulf %219, %372 : vector<1x256xf32>
    %c1_130 = arith.constant 1 : index
    %c16_131 = arith.constant 16 : index
    %374 = memref.load %arg10[%c1_130, %c16_131] : memref<2x49xf32, #tpu.memory_space<smem>>
    %375 = vector.broadcast %374 : f32 to vector<1x256xf32>
    %376 = arith.mulf %231, %375 : vector<1x256xf32>
    %377 = arith.addf %373, %376 : vector<1x256xf32>
    %378 = arith.addf %370, %377 : vector<1x256xf32>
    %c0_132 = arith.constant 0 : index
    %c17 = arith.constant 17 : index
    %379 = memref.load %arg10[%c0_132, %c17] : memref<2x49xf32, #tpu.memory_space<smem>>
    %380 = vector.broadcast %379 : f32 to vector<1x256xf32>
    %381 = arith.mulf %211, %380 : vector<1x256xf32>
    %c1_133 = arith.constant 1 : index
    %c17_134 = arith.constant 17 : index
    %382 = memref.load %arg10[%c1_133, %c17_134] : memref<2x49xf32, #tpu.memory_space<smem>>
    %383 = vector.broadcast %382 : f32 to vector<1x256xf32>
    %384 = arith.mulf %213, %383 : vector<1x256xf32>
    %385 = arith.addf %381, %384 : vector<1x256xf32>
    %386 = arith.addf %378, %385 : vector<1x256xf32>
    %c0_135 = arith.constant 0 : index
    %c18 = arith.constant 18 : index
    %387 = memref.load %arg10[%c0_135, %c18] : memref<2x49xf32, #tpu.memory_space<smem>>
    %388 = vector.broadcast %387 : f32 to vector<1x256xf32>
    %389 = arith.mulf %221, %388 : vector<1x256xf32>
    %c1_136 = arith.constant 1 : index
    %c18_137 = arith.constant 18 : index
    %390 = memref.load %arg10[%c1_136, %c18_137] : memref<2x49xf32, #tpu.memory_space<smem>>
    %391 = vector.broadcast %390 : f32 to vector<1x256xf32>
    %392 = arith.mulf %233, %391 : vector<1x256xf32>
    %393 = arith.addf %389, %392 : vector<1x256xf32>
    %394 = arith.addf %386, %393 : vector<1x256xf32>
    %c0_138 = arith.constant 0 : index
    %c19 = arith.constant 19 : index
    %395 = memref.load %arg10[%c0_138, %c19] : memref<2x49xf32, #tpu.memory_space<smem>>
    %396 = vector.broadcast %395 : f32 to vector<1x256xf32>
    %397 = arith.mulf %223, %396 : vector<1x256xf32>
    %c1_139 = arith.constant 1 : index
    %c19_140 = arith.constant 19 : index
    %398 = memref.load %arg10[%c1_139, %c19_140] : memref<2x49xf32, #tpu.memory_space<smem>>
    %399 = vector.broadcast %398 : f32 to vector<1x256xf32>
    %400 = arith.mulf %235, %399 : vector<1x256xf32>
    %401 = arith.addf %397, %400 : vector<1x256xf32>
    %402 = arith.addf %394, %401 : vector<1x256xf32>
    %c0_141 = arith.constant 0 : index
    %c20 = arith.constant 20 : index
    %403 = memref.load %arg10[%c0_141, %c20] : memref<2x49xf32, #tpu.memory_space<smem>>
    %404 = vector.broadcast %403 : f32 to vector<1x256xf32>
    %405 = arith.mulf %225, %404 : vector<1x256xf32>
    %c1_142 = arith.constant 1 : index
    %c20_143 = arith.constant 20 : index
    %406 = memref.load %arg10[%c1_142, %c20_143] : memref<2x49xf32, #tpu.memory_space<smem>>
    %407 = vector.broadcast %406 : f32 to vector<1x256xf32>
    %408 = arith.mulf %237, %407 : vector<1x256xf32>
    %409 = arith.addf %405, %408 : vector<1x256xf32>
    %410 = arith.addf %402, %409 : vector<1x256xf32>
    %c16_i32_144 = arith.constant 16 : i32
    %411 = tpu.dynamic_rotate %410 by %c16_i32_144 dim 1 : vector<1x256xf32>, i32 -> vector<1x256xf32>
    %412 = arith.mulf %411, %34 : vector<1x256xf32>
    %413 = arith.addf %355, %412 : vector<1x256xf32>
    %c0_145 = arith.constant 0 : index
    %c21 = arith.constant 21 : index
    %414 = memref.load %arg10[%c0_145, %c21] : memref<2x49xf32, #tpu.memory_space<smem>>
    %415 = vector.broadcast %414 : f32 to vector<1x256xf32>
    %416 = arith.mulf %215, %415 : vector<1x256xf32>
    %c1_146 = arith.constant 1 : index
    %c21_147 = arith.constant 21 : index
    %417 = memref.load %arg10[%c1_146, %c21_147] : memref<2x49xf32, #tpu.memory_space<smem>>
    %418 = vector.broadcast %417 : f32 to vector<1x256xf32>
    %419 = arith.mulf %227, %418 : vector<1x256xf32>
    %420 = arith.addf %416, %419 : vector<1x256xf32>
    %c0_148 = arith.constant 0 : index
    %c22 = arith.constant 22 : index
    %421 = memref.load %arg10[%c0_148, %c22] : memref<2x49xf32, #tpu.memory_space<smem>>
    %422 = vector.broadcast %421 : f32 to vector<1x256xf32>
    %423 = arith.mulf %217, %422 : vector<1x256xf32>
    %c1_149 = arith.constant 1 : index
    %c22_150 = arith.constant 22 : index
    %424 = memref.load %arg10[%c1_149, %c22_150] : memref<2x49xf32, #tpu.memory_space<smem>>
    %425 = vector.broadcast %424 : f32 to vector<1x256xf32>
    %426 = arith.mulf %229, %425 : vector<1x256xf32>
    %427 = arith.addf %423, %426 : vector<1x256xf32>
    %428 = arith.addf %420, %427 : vector<1x256xf32>
    %c0_151 = arith.constant 0 : index
    %c23 = arith.constant 23 : index
    %429 = memref.load %arg10[%c0_151, %c23] : memref<2x49xf32, #tpu.memory_space<smem>>
    %430 = vector.broadcast %429 : f32 to vector<1x256xf32>
    %431 = arith.mulf %219, %430 : vector<1x256xf32>
    %c1_152 = arith.constant 1 : index
    %c23_153 = arith.constant 23 : index
    %432 = memref.load %arg10[%c1_152, %c23_153] : memref<2x49xf32, #tpu.memory_space<smem>>
    %433 = vector.broadcast %432 : f32 to vector<1x256xf32>
    %434 = arith.mulf %231, %433 : vector<1x256xf32>
    %435 = arith.addf %431, %434 : vector<1x256xf32>
    %436 = arith.addf %428, %435 : vector<1x256xf32>
    %c0_154 = arith.constant 0 : index
    %c24 = arith.constant 24 : index
    %437 = memref.load %arg10[%c0_154, %c24] : memref<2x49xf32, #tpu.memory_space<smem>>
    %438 = vector.broadcast %437 : f32 to vector<1x256xf32>
    %439 = arith.mulf %211, %438 : vector<1x256xf32>
    %c1_155 = arith.constant 1 : index
    %c24_156 = arith.constant 24 : index
    %440 = memref.load %arg10[%c1_155, %c24_156] : memref<2x49xf32, #tpu.memory_space<smem>>
    %441 = vector.broadcast %440 : f32 to vector<1x256xf32>
    %442 = arith.mulf %213, %441 : vector<1x256xf32>
    %443 = arith.addf %439, %442 : vector<1x256xf32>
    %444 = arith.addf %436, %443 : vector<1x256xf32>
    %c0_157 = arith.constant 0 : index
    %c25 = arith.constant 25 : index
    %445 = memref.load %arg10[%c0_157, %c25] : memref<2x49xf32, #tpu.memory_space<smem>>
    %446 = vector.broadcast %445 : f32 to vector<1x256xf32>
    %447 = arith.mulf %221, %446 : vector<1x256xf32>
    %c1_158 = arith.constant 1 : index
    %c25_159 = arith.constant 25 : index
    %448 = memref.load %arg10[%c1_158, %c25_159] : memref<2x49xf32, #tpu.memory_space<smem>>
    %449 = vector.broadcast %448 : f32 to vector<1x256xf32>
    %450 = arith.mulf %233, %449 : vector<1x256xf32>
    %451 = arith.addf %447, %450 : vector<1x256xf32>
    %452 = arith.addf %444, %451 : vector<1x256xf32>
    %c0_160 = arith.constant 0 : index
    %c26 = arith.constant 26 : index
    %453 = memref.load %arg10[%c0_160, %c26] : memref<2x49xf32, #tpu.memory_space<smem>>
    %454 = vector.broadcast %453 : f32 to vector<1x256xf32>
    %455 = arith.mulf %223, %454 : vector<1x256xf32>
    %c1_161 = arith.constant 1 : index
    %c26_162 = arith.constant 26 : index
    %456 = memref.load %arg10[%c1_161, %c26_162] : memref<2x49xf32, #tpu.memory_space<smem>>
    %457 = vector.broadcast %456 : f32 to vector<1x256xf32>
    %458 = arith.mulf %235, %457 : vector<1x256xf32>
    %459 = arith.addf %455, %458 : vector<1x256xf32>
    %460 = arith.addf %452, %459 : vector<1x256xf32>
    %c0_163 = arith.constant 0 : index
    %c27 = arith.constant 27 : index
    %461 = memref.load %arg10[%c0_163, %c27] : memref<2x49xf32, #tpu.memory_space<smem>>
    %462 = vector.broadcast %461 : f32 to vector<1x256xf32>
    %463 = arith.mulf %225, %462 : vector<1x256xf32>
    %c1_164 = arith.constant 1 : index
    %c27_165 = arith.constant 27 : index
    %464 = memref.load %arg10[%c1_164, %c27_165] : memref<2x49xf32, #tpu.memory_space<smem>>
    %465 = vector.broadcast %464 : f32 to vector<1x256xf32>
    %466 = arith.mulf %237, %465 : vector<1x256xf32>
    %467 = arith.addf %463, %466 : vector<1x256xf32>
    %468 = arith.addf %460, %467 : vector<1x256xf32>
    %469 = arith.addf %413, %468 : vector<1x256xf32>
    %c0_166 = arith.constant 0 : index
    %c28 = arith.constant 28 : index
    %470 = memref.load %arg10[%c0_166, %c28] : memref<2x49xf32, #tpu.memory_space<smem>>
    %471 = vector.broadcast %470 : f32 to vector<1x256xf32>
    %472 = arith.mulf %215, %471 : vector<1x256xf32>
    %c1_167 = arith.constant 1 : index
    %c28_168 = arith.constant 28 : index
    %473 = memref.load %arg10[%c1_167, %c28_168] : memref<2x49xf32, #tpu.memory_space<smem>>
    %474 = vector.broadcast %473 : f32 to vector<1x256xf32>
    %475 = arith.mulf %227, %474 : vector<1x256xf32>
    %476 = arith.addf %472, %475 : vector<1x256xf32>
    %c0_169 = arith.constant 0 : index
    %c29 = arith.constant 29 : index
    %477 = memref.load %arg10[%c0_169, %c29] : memref<2x49xf32, #tpu.memory_space<smem>>
    %478 = vector.broadcast %477 : f32 to vector<1x256xf32>
    %479 = arith.mulf %217, %478 : vector<1x256xf32>
    %c1_170 = arith.constant 1 : index
    %c29_171 = arith.constant 29 : index
    %480 = memref.load %arg10[%c1_170, %c29_171] : memref<2x49xf32, #tpu.memory_space<smem>>
    %481 = vector.broadcast %480 : f32 to vector<1x256xf32>
    %482 = arith.mulf %229, %481 : vector<1x256xf32>
    %483 = arith.addf %479, %482 : vector<1x256xf32>
    %484 = arith.addf %476, %483 : vector<1x256xf32>
    %c0_172 = arith.constant 0 : index
    %c30 = arith.constant 30 : index
    %485 = memref.load %arg10[%c0_172, %c30] : memref<2x49xf32, #tpu.memory_space<smem>>
    %486 = vector.broadcast %485 : f32 to vector<1x256xf32>
    %487 = arith.mulf %219, %486 : vector<1x256xf32>
    %c1_173 = arith.constant 1 : index
    %c30_174 = arith.constant 30 : index
    %488 = memref.load %arg10[%c1_173, %c30_174] : memref<2x49xf32, #tpu.memory_space<smem>>
    %489 = vector.broadcast %488 : f32 to vector<1x256xf32>
    %490 = arith.mulf %231, %489 : vector<1x256xf32>
    %491 = arith.addf %487, %490 : vector<1x256xf32>
    %492 = arith.addf %484, %491 : vector<1x256xf32>
    %c0_175 = arith.constant 0 : index
    %c31 = arith.constant 31 : index
    %493 = memref.load %arg10[%c0_175, %c31] : memref<2x49xf32, #tpu.memory_space<smem>>
    %494 = vector.broadcast %493 : f32 to vector<1x256xf32>
    %495 = arith.mulf %211, %494 : vector<1x256xf32>
    %c1_176 = arith.constant 1 : index
    %c31_177 = arith.constant 31 : index
    %496 = memref.load %arg10[%c1_176, %c31_177] : memref<2x49xf32, #tpu.memory_space<smem>>
    %497 = vector.broadcast %496 : f32 to vector<1x256xf32>
    %498 = arith.mulf %213, %497 : vector<1x256xf32>
    %499 = arith.addf %495, %498 : vector<1x256xf32>
    %500 = arith.addf %492, %499 : vector<1x256xf32>
    %c0_178 = arith.constant 0 : index
    %c32 = arith.constant 32 : index
    %501 = memref.load %arg10[%c0_178, %c32] : memref<2x49xf32, #tpu.memory_space<smem>>
    %502 = vector.broadcast %501 : f32 to vector<1x256xf32>
    %503 = arith.mulf %221, %502 : vector<1x256xf32>
    %c1_179 = arith.constant 1 : index
    %c32_180 = arith.constant 32 : index
    %504 = memref.load %arg10[%c1_179, %c32_180] : memref<2x49xf32, #tpu.memory_space<smem>>
    %505 = vector.broadcast %504 : f32 to vector<1x256xf32>
    %506 = arith.mulf %233, %505 : vector<1x256xf32>
    %507 = arith.addf %503, %506 : vector<1x256xf32>
    %508 = arith.addf %500, %507 : vector<1x256xf32>
    %c0_181 = arith.constant 0 : index
    %c33 = arith.constant 33 : index
    %509 = memref.load %arg10[%c0_181, %c33] : memref<2x49xf32, #tpu.memory_space<smem>>
    %510 = vector.broadcast %509 : f32 to vector<1x256xf32>
    %511 = arith.mulf %223, %510 : vector<1x256xf32>
    %c1_182 = arith.constant 1 : index
    %c33_183 = arith.constant 33 : index
    %512 = memref.load %arg10[%c1_182, %c33_183] : memref<2x49xf32, #tpu.memory_space<smem>>
    %513 = vector.broadcast %512 : f32 to vector<1x256xf32>
    %514 = arith.mulf %235, %513 : vector<1x256xf32>
    %515 = arith.addf %511, %514 : vector<1x256xf32>
    %516 = arith.addf %508, %515 : vector<1x256xf32>
    %c0_184 = arith.constant 0 : index
    %c34 = arith.constant 34 : index
    %517 = memref.load %arg10[%c0_184, %c34] : memref<2x49xf32, #tpu.memory_space<smem>>
    %518 = vector.broadcast %517 : f32 to vector<1x256xf32>
    %519 = arith.mulf %225, %518 : vector<1x256xf32>
    %c1_185 = arith.constant 1 : index
    %c34_186 = arith.constant 34 : index
    %520 = memref.load %arg10[%c1_185, %c34_186] : memref<2x49xf32, #tpu.memory_space<smem>>
    %521 = vector.broadcast %520 : f32 to vector<1x256xf32>
    %522 = arith.mulf %237, %521 : vector<1x256xf32>
    %523 = arith.addf %519, %522 : vector<1x256xf32>
    %524 = arith.addf %516, %523 : vector<1x256xf32>
    %c240_i32_187 = arith.constant 240 : i32
    %525 = tpu.dynamic_rotate %524 by %c240_i32_187 dim 1 : vector<1x256xf32>, i32 -> vector<1x256xf32>
    %526 = arith.mulf %525, %45 : vector<1x256xf32>
    %527 = arith.addf %469, %526 : vector<1x256xf32>
    %c0_188 = arith.constant 0 : index
    %c35 = arith.constant 35 : index
    %528 = memref.load %arg10[%c0_188, %c35] : memref<2x49xf32, #tpu.memory_space<smem>>
    %529 = vector.broadcast %528 : f32 to vector<1x256xf32>
    %530 = arith.mulf %215, %529 : vector<1x256xf32>
    %c1_189 = arith.constant 1 : index
    %c35_190 = arith.constant 35 : index
    %531 = memref.load %arg10[%c1_189, %c35_190] : memref<2x49xf32, #tpu.memory_space<smem>>
    %532 = vector.broadcast %531 : f32 to vector<1x256xf32>
    %533 = arith.mulf %227, %532 : vector<1x256xf32>
    %534 = arith.addf %530, %533 : vector<1x256xf32>
    %c0_191 = arith.constant 0 : index
    %c36 = arith.constant 36 : index
    %535 = memref.load %arg10[%c0_191, %c36] : memref<2x49xf32, #tpu.memory_space<smem>>
    %536 = vector.broadcast %535 : f32 to vector<1x256xf32>
    %537 = arith.mulf %217, %536 : vector<1x256xf32>
    %c1_192 = arith.constant 1 : index
    %c36_193 = arith.constant 36 : index
    %538 = memref.load %arg10[%c1_192, %c36_193] : memref<2x49xf32, #tpu.memory_space<smem>>
    %539 = vector.broadcast %538 : f32 to vector<1x256xf32>
    %540 = arith.mulf %229, %539 : vector<1x256xf32>
    %541 = arith.addf %537, %540 : vector<1x256xf32>
    %542 = arith.addf %534, %541 : vector<1x256xf32>
    %c0_194 = arith.constant 0 : index
    %c37 = arith.constant 37 : index
    %543 = memref.load %arg10[%c0_194, %c37] : memref<2x49xf32, #tpu.memory_space<smem>>
    %544 = vector.broadcast %543 : f32 to vector<1x256xf32>
    %545 = arith.mulf %219, %544 : vector<1x256xf32>
    %c1_195 = arith.constant 1 : index
    %c37_196 = arith.constant 37 : index
    %546 = memref.load %arg10[%c1_195, %c37_196] : memref<2x49xf32, #tpu.memory_space<smem>>
    %547 = vector.broadcast %546 : f32 to vector<1x256xf32>
    %548 = arith.mulf %231, %547 : vector<1x256xf32>
    %549 = arith.addf %545, %548 : vector<1x256xf32>
    %550 = arith.addf %542, %549 : vector<1x256xf32>
    %c0_197 = arith.constant 0 : index
    %c38 = arith.constant 38 : index
    %551 = memref.load %arg10[%c0_197, %c38] : memref<2x49xf32, #tpu.memory_space<smem>>
    %552 = vector.broadcast %551 : f32 to vector<1x256xf32>
    %553 = arith.mulf %211, %552 : vector<1x256xf32>
    %c1_198 = arith.constant 1 : index
    %c38_199 = arith.constant 38 : index
    %554 = memref.load %arg10[%c1_198, %c38_199] : memref<2x49xf32, #tpu.memory_space<smem>>
    %555 = vector.broadcast %554 : f32 to vector<1x256xf32>
    %556 = arith.mulf %213, %555 : vector<1x256xf32>
    %557 = arith.addf %553, %556 : vector<1x256xf32>
    %558 = arith.addf %550, %557 : vector<1x256xf32>
    %c0_200 = arith.constant 0 : index
    %c39 = arith.constant 39 : index
    %559 = memref.load %arg10[%c0_200, %c39] : memref<2x49xf32, #tpu.memory_space<smem>>
    %560 = vector.broadcast %559 : f32 to vector<1x256xf32>
    %561 = arith.mulf %221, %560 : vector<1x256xf32>
    %c1_201 = arith.constant 1 : index
    %c39_202 = arith.constant 39 : index
    %562 = memref.load %arg10[%c1_201, %c39_202] : memref<2x49xf32, #tpu.memory_space<smem>>
    %563 = vector.broadcast %562 : f32 to vector<1x256xf32>
    %564 = arith.mulf %233, %563 : vector<1x256xf32>
    %565 = arith.addf %561, %564 : vector<1x256xf32>
    %566 = arith.addf %558, %565 : vector<1x256xf32>
    %c0_203 = arith.constant 0 : index
    %c40 = arith.constant 40 : index
    %567 = memref.load %arg10[%c0_203, %c40] : memref<2x49xf32, #tpu.memory_space<smem>>
    %568 = vector.broadcast %567 : f32 to vector<1x256xf32>
    %569 = arith.mulf %223, %568 : vector<1x256xf32>
    %c1_204 = arith.constant 1 : index
    %c40_205 = arith.constant 40 : index
    %570 = memref.load %arg10[%c1_204, %c40_205] : memref<2x49xf32, #tpu.memory_space<smem>>
    %571 = vector.broadcast %570 : f32 to vector<1x256xf32>
    %572 = arith.mulf %235, %571 : vector<1x256xf32>
    %573 = arith.addf %569, %572 : vector<1x256xf32>
    %574 = arith.addf %566, %573 : vector<1x256xf32>
    %c0_206 = arith.constant 0 : index
    %c41 = arith.constant 41 : index
    %575 = memref.load %arg10[%c0_206, %c41] : memref<2x49xf32, #tpu.memory_space<smem>>
    %576 = vector.broadcast %575 : f32 to vector<1x256xf32>
    %577 = arith.mulf %225, %576 : vector<1x256xf32>
    %c1_207 = arith.constant 1 : index
    %c41_208 = arith.constant 41 : index
    %578 = memref.load %arg10[%c1_207, %c41_208] : memref<2x49xf32, #tpu.memory_space<smem>>
    %579 = vector.broadcast %578 : f32 to vector<1x256xf32>
    %580 = arith.mulf %237, %579 : vector<1x256xf32>
    %581 = arith.addf %577, %580 : vector<1x256xf32>
    %582 = arith.addf %574, %581 : vector<1x256xf32>
    %c224_i32 = arith.constant 224 : i32
    %583 = tpu.dynamic_rotate %582 by %c224_i32 dim 1 : vector<1x256xf32>, i32 -> vector<1x256xf32>
    %584 = arith.mulf %583, %56 : vector<1x256xf32>
    %585 = arith.addf %527, %584 : vector<1x256xf32>
    %c0_209 = arith.constant 0 : index
    %c42 = arith.constant 42 : index
    %586 = memref.load %arg10[%c0_209, %c42] : memref<2x49xf32, #tpu.memory_space<smem>>
    %587 = vector.broadcast %586 : f32 to vector<1x256xf32>
    %588 = arith.mulf %215, %587 : vector<1x256xf32>
    %c1_210 = arith.constant 1 : index
    %c42_211 = arith.constant 42 : index
    %589 = memref.load %arg10[%c1_210, %c42_211] : memref<2x49xf32, #tpu.memory_space<smem>>
    %590 = vector.broadcast %589 : f32 to vector<1x256xf32>
    %591 = arith.mulf %227, %590 : vector<1x256xf32>
    %592 = arith.addf %588, %591 : vector<1x256xf32>
    %c0_212 = arith.constant 0 : index
    %c43 = arith.constant 43 : index
    %593 = memref.load %arg10[%c0_212, %c43] : memref<2x49xf32, #tpu.memory_space<smem>>
    %594 = vector.broadcast %593 : f32 to vector<1x256xf32>
    %595 = arith.mulf %217, %594 : vector<1x256xf32>
    %c1_213 = arith.constant 1 : index
    %c43_214 = arith.constant 43 : index
    %596 = memref.load %arg10[%c1_213, %c43_214] : memref<2x49xf32, #tpu.memory_space<smem>>
    %597 = vector.broadcast %596 : f32 to vector<1x256xf32>
    %598 = arith.mulf %229, %597 : vector<1x256xf32>
    %599 = arith.addf %595, %598 : vector<1x256xf32>
    %600 = arith.addf %592, %599 : vector<1x256xf32>
    %c0_215 = arith.constant 0 : index
    %c44 = arith.constant 44 : index
    %601 = memref.load %arg10[%c0_215, %c44] : memref<2x49xf32, #tpu.memory_space<smem>>
    %602 = vector.broadcast %601 : f32 to vector<1x256xf32>
    %603 = arith.mulf %219, %602 : vector<1x256xf32>
    %c1_216 = arith.constant 1 : index
    %c44_217 = arith.constant 44 : index
    %604 = memref.load %arg10[%c1_216, %c44_217] : memref<2x49xf32, #tpu.memory_space<smem>>
    %605 = vector.broadcast %604 : f32 to vector<1x256xf32>
    %606 = arith.mulf %231, %605 : vector<1x256xf32>
    %607 = arith.addf %603, %606 : vector<1x256xf32>
    %608 = arith.addf %600, %607 : vector<1x256xf32>
    %c0_218 = arith.constant 0 : index
    %c45 = arith.constant 45 : index
    %609 = memref.load %arg10[%c0_218, %c45] : memref<2x49xf32, #tpu.memory_space<smem>>
    %610 = vector.broadcast %609 : f32 to vector<1x256xf32>
    %611 = arith.mulf %211, %610 : vector<1x256xf32>
    %c1_219 = arith.constant 1 : index
    %c45_220 = arith.constant 45 : index
    %612 = memref.load %arg10[%c1_219, %c45_220] : memref<2x49xf32, #tpu.memory_space<smem>>
    %613 = vector.broadcast %612 : f32 to vector<1x256xf32>
    %614 = arith.mulf %213, %613 : vector<1x256xf32>
    %615 = arith.addf %611, %614 : vector<1x256xf32>
    %616 = arith.addf %608, %615 : vector<1x256xf32>
    %c0_221 = arith.constant 0 : index
    %c46 = arith.constant 46 : index
    %617 = memref.load %arg10[%c0_221, %c46] : memref<2x49xf32, #tpu.memory_space<smem>>
    %618 = vector.broadcast %617 : f32 to vector<1x256xf32>
    %619 = arith.mulf %221, %618 : vector<1x256xf32>
    %c1_222 = arith.constant 1 : index
    %c46_223 = arith.constant 46 : index
    %620 = memref.load %arg10[%c1_222, %c46_223] : memref<2x49xf32, #tpu.memory_space<smem>>
    %621 = vector.broadcast %620 : f32 to vector<1x256xf32>
    %622 = arith.mulf %233, %621 : vector<1x256xf32>
    %623 = arith.addf %619, %622 : vector<1x256xf32>
    %624 = arith.addf %616, %623 : vector<1x256xf32>
    %c0_224 = arith.constant 0 : index
    %c47 = arith.constant 47 : index
    %625 = memref.load %arg10[%c0_224, %c47] : memref<2x49xf32, #tpu.memory_space<smem>>
    %626 = vector.broadcast %625 : f32 to vector<1x256xf32>
    %627 = arith.mulf %223, %626 : vector<1x256xf32>
    %c1_225 = arith.constant 1 : index
    %c47_226 = arith.constant 47 : index
    %628 = memref.load %arg10[%c1_225, %c47_226] : memref<2x49xf32, #tpu.memory_space<smem>>
    %629 = vector.broadcast %628 : f32 to vector<1x256xf32>
    %630 = arith.mulf %235, %629 : vector<1x256xf32>
    %631 = arith.addf %627, %630 : vector<1x256xf32>
    %632 = arith.addf %624, %631 : vector<1x256xf32>
    %c0_227 = arith.constant 0 : index
    %c48 = arith.constant 48 : index
    %633 = memref.load %arg10[%c0_227, %c48] : memref<2x49xf32, #tpu.memory_space<smem>>
    %634 = vector.broadcast %633 : f32 to vector<1x256xf32>
    %635 = arith.mulf %225, %634 : vector<1x256xf32>
    %c1_228 = arith.constant 1 : index
    %c48_229 = arith.constant 48 : index
    %636 = memref.load %arg10[%c1_228, %c48_229] : memref<2x49xf32, #tpu.memory_space<smem>>
    %637 = vector.broadcast %636 : f32 to vector<1x256xf32>
    %638 = arith.mulf %237, %637 : vector<1x256xf32>
    %639 = arith.addf %635, %638 : vector<1x256xf32>
    %640 = arith.addf %632, %639 : vector<1x256xf32>
    %c208_i32 = arith.constant 208 : i32
    %641 = tpu.dynamic_rotate %640 by %c208_i32 dim 1 : vector<1x256xf32>, i32 -> vector<1x256xf32>
    %642 = arith.mulf %641, %67 : vector<1x256xf32>
    %643 = arith.addf %585, %642 : vector<1x256xf32>
    %644 = vector.extract_strided_slice %210 {offsets = [0, 0], sizes = [4, 256], strides = [1, 1]} : vector<8x256xf32> to vector<4x256xf32>
    %645 = vector.extract_strided_slice %210 {offsets = [4, 0], sizes = [4, 256], strides = [1, 1]} : vector<8x256xf32> to vector<4x256xf32>
    %646 = arith.mulf %644, %645 : vector<4x256xf32>
    %647 = vector.broadcast %643 : vector<1x256xf32> to vector<4x256xf32>
    %648 = arith.mulf %646, %647 : vector<4x256xf32>
    %cst_230 = arith.constant dense<0.000000e+00> : vector<4x1xf32>
    %649 = tpu.matmul %648, %136, %cst_230 {dimension_numbers = #tpu.dot_dimension_numbers<[1], [0], [0], [1], [0, 0, 1, 1], [], []>} : vector<4x256xf32>, vector<256x1xf32>, vector<4x1xf32> -> vector<4x1xf32>
    %c0_231 = arith.constant 0 : index
    %c0_232 = arith.constant 0 : index
    %650 = vector.load %arg12[%c0_231, %c0_232] : memref<4x4xf32, #tpu.memory_space<vmem>>, vector<4x4xf32>
    %cst_233 = arith.constant dense<0.000000e+00> : vector<4x1xf32>
    %651 = tpu.matmul %650, %649, %cst_233 {dimension_numbers = #tpu.dot_dimension_numbers<[1], [0], [0], [1], [0, 0, 1, 1], [], []>} : vector<4x4xf32>, vector<4x1xf32>, vector<4x1xf32> -> vector<4x1xf32>
    %c0_234 = arith.constant 0 : index
    %c0_235 = arith.constant 0 : index
    %652 = vector.load %arg13[%c0_234, %c0_235] : memref<4x1xf32, #tpu.memory_space<vmem>>, vector<4x1xf32>
    %653 = arith.addf %651, %652 : vector<4x1xf32>
    %654 = vector.broadcast %653 : vector<4x1xf32> to vector<4x256xf32>
    %655 = arith.mulf %648, %654 : vector<4x256xf32>
    %c0_236 = arith.constant 0 : index
    %c0_237 = arith.constant 0 : index
    %656 = vector.load %arg14[%c0_236, %c0_237] : memref<4x4xf32, #tpu.memory_space<vmem>>, vector<4x4xf32>
    %cst_238 = arith.constant dense<0.000000e+00> : vector<4x256xf32>
    %657 = tpu.matmul %656, %655, %cst_238 {dimension_numbers = #tpu.dot_dimension_numbers<[1], [0], [0], [1], [0, 0, 1, 1], [], []>} : vector<4x4xf32>, vector<4x256xf32>, vector<4x256xf32> -> vector<4x256xf32>
    %c0_239 = arith.constant 0 : index
    %c0_240 = arith.constant 0 : index
    %658 = vector.load %arg15[%c0_239, %c0_240] : memref<4x1xf32, #tpu.memory_space<vmem>>, vector<4x1xf32>
    %659 = vector.broadcast %658 : vector<4x1xf32> to vector<4x256xf32>
    %660 = arith.addf %657, %659 : vector<4x256xf32>
    %c0_241 = arith.constant 0 : index
    %c0_242 = arith.constant 0 : index
    %c0_243 = arith.constant 0 : index
    %661 = vector.load %arg3[%c0_241, %c0_242, %c0_243] : memref<1x4x256xf32, #tpu.memory_space<vmem>>, vector<1x4x256xf32>
    %662 = vector.shape_cast %661 : vector<1x4x256xf32> to vector<4x256xf32>
    %c0_244 = arith.constant 0 : index
    %c0_245 = arith.constant 0 : index
    %663 = vector.load %arg22[%c0_244, %c0_245] : memref<4x1xf32, #tpu.memory_space<vmem>>, vector<4x1xf32>
    %664 = vector.broadcast %663 : vector<4x1xf32> to vector<4x256xf32>
    %665 = arith.mulf %660, %664 : vector<4x256xf32>
    %666 = arith.addf %662, %665 : vector<4x256xf32>
    %c0_246 = arith.constant 0 : index
    %c0_247 = arith.constant 0 : index
    %667 = vector.load %arg16[%c0_246, %c0_247] : memref<4x1xf32, #tpu.memory_space<vmem>>, vector<4x1xf32>
    %c0_248 = arith.constant 0 : index
    %c0_249 = arith.constant 0 : index
    %668 = vector.load %arg17[%c0_248, %c0_249] : memref<4x1xf32, #tpu.memory_space<vmem>>, vector<4x1xf32>
    %cst_250 = arith.constant dense<0.000000e+00> : vector<1x256xf32>
    %669 = tpu.matmul %134, %666, %cst_250 {dimension_numbers = #tpu.dot_dimension_numbers<[1], [0], [0], [1], [0, 0, 1, 1], [], []>} : vector<1x4xf32>, vector<4x256xf32>, vector<1x256xf32> -> vector<1x256xf32>
    %670 = vector.broadcast %669 : vector<1x256xf32> to vector<4x256xf32>
    %671 = arith.subf %666, %670 : vector<4x256xf32>
    %672 = arith.mulf %671, %671 : vector<4x256xf32>
    %cst_251 = arith.constant dense<0.000000e+00> : vector<1x256xf32>
    %673 = tpu.matmul %134, %672, %cst_251 {dimension_numbers = #tpu.dot_dimension_numbers<[1], [0], [0], [1], [0, 0, 1, 1], [], []>} : vector<1x4xf32>, vector<4x256xf32>, vector<1x256xf32> -> vector<1x256xf32>
    %cst_252 = arith.constant 9.99999997E-7 : f32
    %674 = vector.broadcast %cst_252 : f32 to vector<1x256xf32>
    %675 = arith.addf %673, %674 : vector<1x256xf32>
    %676 = math.rsqrt %675 : vector<1x256xf32>
    %677 = vector.broadcast %676 : vector<1x256xf32> to vector<4x256xf32>
    %678 = arith.mulf %671, %677 : vector<4x256xf32>
    %679 = vector.broadcast %667 : vector<4x1xf32> to vector<4x256xf32>
    %680 = arith.mulf %678, %679 : vector<4x256xf32>
    %681 = vector.broadcast %668 : vector<4x1xf32> to vector<4x256xf32>
    %682 = arith.addf %680, %681 : vector<4x256xf32>
    %c0_253 = arith.constant 0 : index
    %c0_254 = arith.constant 0 : index
    %683 = vector.load %arg18[%c0_253, %c0_254] : memref<8x4xf32, #tpu.memory_space<vmem>>, vector<8x4xf32>
    %cst_255 = arith.constant dense<0.000000e+00> : vector<8x256xf32>
    %684 = tpu.matmul %683, %682, %cst_255 {dimension_numbers = #tpu.dot_dimension_numbers<[1], [0], [0], [1], [0, 0, 1, 1], [], []>} : vector<8x4xf32>, vector<4x256xf32>, vector<8x256xf32> -> vector<8x256xf32>
    %c0_256 = arith.constant 0 : index
    %c0_257 = arith.constant 0 : index
    %685 = vector.load %arg19[%c0_256, %c0_257] : memref<8x1xf32, #tpu.memory_space<vmem>>, vector<8x1xf32>
    %686 = vector.broadcast %685 : vector<8x1xf32> to vector<8x256xf32>
    %687 = arith.addf %684, %686 : vector<8x256xf32>
    %688 = vector.extract_strided_slice %687 {offsets = [0, 0], sizes = [4, 256], strides = [1, 1]} : vector<8x256xf32> to vector<4x256xf32>
    %689 = vector.extract_strided_slice %687 {offsets = [4, 0], sizes = [4, 256], strides = [1, 1]} : vector<8x256xf32> to vector<4x256xf32>
    %690 = arith.mulf %688, %689 : vector<4x256xf32>
    %c0_258 = arith.constant 0 : index
    %c0_259 = arith.constant 0 : index
    %691 = vector.load %arg20[%c0_258, %c0_259] : memref<4x4xf32, #tpu.memory_space<vmem>>, vector<4x4xf32>
    %cst_260 = arith.constant dense<0.000000e+00> : vector<4x256xf32>
    %692 = tpu.matmul %691, %690, %cst_260 {dimension_numbers = #tpu.dot_dimension_numbers<[1], [0], [0], [1], [0, 0, 1, 1], [], []>} : vector<4x4xf32>, vector<4x256xf32>, vector<4x256xf32> -> vector<4x256xf32>
    %c0_261 = arith.constant 0 : index
    %c0_262 = arith.constant 0 : index
    %693 = vector.load %arg21[%c0_261, %c0_262] : memref<4x1xf32, #tpu.memory_space<vmem>>, vector<4x1xf32>
    %694 = vector.broadcast %693 : vector<4x1xf32> to vector<4x256xf32>
    %695 = arith.addf %692, %694 : vector<4x256xf32>
    %c0_263 = arith.constant 0 : index
    %c0_264 = arith.constant 0 : index
    %696 = vector.load %arg23[%c0_263, %c0_264] : memref<4x1xf32, #tpu.memory_space<vmem>>, vector<4x1xf32>
    %697 = vector.broadcast %696 : vector<4x1xf32> to vector<4x256xf32>
    %698 = arith.mulf %695, %697 : vector<4x256xf32>
    %699 = arith.addf %666, %698 : vector<4x256xf32>
    %c0_265 = arith.constant 0 : index
    %c0_266 = arith.constant 0 : index
    %c0_267 = arith.constant 0 : index
    %700 = vector.load %arg24[%c0_265, %c0_266, %c0_267] : memref<1x4x256xf32, #tpu.memory_space<vmem>>, vector<1x4x256xf32>
    %701 = vector.shape_cast %700 : vector<1x4x256xf32> to vector<4x256xf32>
    %702 = vector.shape_cast %699 : vector<4x256xf32> to vector<1x4x256xf32>
    tpu.vector_store %arg24[%c0_265, %c0_266, %c0_267], %702 {strides = array<i32>} : memref<1x4x256xf32, #tpu.memory_space<vmem>>, vector<1x4x256xf32>,
    return
  }
  func.func @transform_0(%arg0: i32) -> (i32, i32) {
    %c0_i32 = arith.constant 0 : i32
    %c0_i32_0 = arith.constant 0 : i32
    %c0_i32_1 = arith.constant 0 : i32
    return %c0_i32, %c0_i32_0 : i32, i32
  }
  func.func @transform_1(%arg0: i32) -> (i32, i32) {
    %c0_i32 = arith.constant 0 : i32
    %c0_i32_0 = arith.constant 0 : i32
    %c0_i32_1 = arith.constant 0 : i32
    return %c0_i32, %c0_i32_0 : i32, i32
  }
  func.func @transform_2(%arg0: i32) -> (i32, i32, i32) {
    %c0_i32 = arith.constant 0 : i32
    %c0_i32_0 = arith.constant 0 : i32
    %c0_i32_1 = arith.constant 0 : i32
    return %arg0, %c0_i32, %c0_i32_0 : i32, i32, i32
  }
  func.func @transform_3(%arg0: i32) -> (i32, i32) {
    %c0_i32 = arith.constant 0 : i32
    %c0_i32_0 = arith.constant 0 : i32
    %c0_i32_1 = arith.constant 0 : i32
    return %c0_i32, %c0_i32_0 : i32, i32
  }
  func.func @transform_4(%arg0: i32) -> (i32, i32) {
    %c0_i32 = arith.constant 0 : i32
    %c0_i32_0 = arith.constant 0 : i32
    %c0_i32_1 = arith.constant 0 : i32
    return %c0_i32, %c0_i32_0 : i32, i32
  }
  func.func @transform_5(%arg0: i32) -> (i32, i32) {
    %c0_i32 = arith.constant 0 : i32
    %c0_i32_0 = arith.constant 0 : i32
    %c0_i32_1 = arith.constant 0 : i32
    return %c0_i32, %c0_i32_0 : i32, i32
  }
  func.func @transform_6(%arg0: i32) -> (i32, i32) {
    %c0_i32 = arith.constant 0 : i32
    %c0_i32_0 = arith.constant 0 : i32
    %c0_i32_1 = arith.constant 0 : i32
    return %c0_i32, %c0_i32_0 : i32, i32
  }
  func.func @transform_7(%arg0: i32) -> (i32, i32) {
    %c0_i32 = arith.constant 0 : i32
    %c0_i32_0 = arith.constant 0 : i32
    %c0_i32_1 = arith.constant 0 : i32
    return %c0_i32, %c0_i32_0 : i32, i32
  }
  func.func @transform_8(%arg0: i32) -> (i32, i32) {
    %c0_i32 = arith.constant 0 : i32
    %c0_i32_0 = arith.constant 0 : i32
    %c0_i32_1 = arith.constant 0 : i32
    return %c0_i32, %c0_i32_0 : i32, i32
  }
  func.func @transform_9(%arg0: i32) -> (i32, i32) {
    %c0_i32 = arith.constant 0 : i32
    %c0_i32_0 = arith.constant 0 : i32
    %c0_i32_1 = arith.constant 0 : i32
    return %c0_i32, %c0_i32_0 : i32, i32
  }
  func.func @transform_10(%arg0: i32) -> (i32, i32) {
    %c0_i32 = arith.constant 0 : i32
    %c0_i32_0 = arith.constant 0 : i32
    %c0_i32_1 = arith.constant 0 : i32
    return %c0_i32, %c0_i32_0 : i32, i32
  }
  func.func @transform_11(%arg0: i32) -> (i32, i32) {
    %c0_i32 = arith.constant 0 : i32
    %c0_i32_0 = arith.constant 0 : i32
    %c0_i32_1 = arith.constant 0 : i32
    return %c0_i32, %c0_i32_0 : i32, i32
  }
  func.func @transform_12(%arg0: i32) -> (i32, i32) {
    %c0_i32 = arith.constant 0 : i32
    %c0_i32_0 = arith.constant 0 : i32
    %c0_i32_1 = arith.constant 0 : i32
    return %c0_i32, %c0_i32_0 : i32, i32
  }
  func.func @transform_13(%arg0: i32) -> (i32, i32) {
    %c0_i32 = arith.constant 0 : i32
    %c0_i32_0 = arith.constant 0 : i32
    %c0_i32_1 = arith.constant 0 : i32
    return %c0_i32, %c0_i32_0 : i32, i32
  }
  func.func @transform_14(%arg0: i32) -> (i32, i32) {
    %c0_i32 = arith.constant 0 : i32
    %c0_i32_0 = arith.constant 0 : i32
    %c0_i32_1 = arith.constant 0 : i32
    return %c0_i32, %c0_i32_0 : i32, i32
  }
  func.func @transform_15(%arg0: i32) -> (i32, i32) {
    %c0_i32 = arith.constant 0 : i32
    %c0_i32_0 = arith.constant 0 : i32
    %c0_i32_1 = arith.constant 0 : i32
    return %c0_i32, %c0_i32_0 : i32, i32
  }
  func.func @transform_16(%arg0: i32) -> (i32, i32) {
    %c0_i32 = arith.constant 0 : i32
    %c0_i32_0 = arith.constant 0 : i32
    %c0_i32_1 = arith.constant 0 : i32
    return %c0_i32, %c0_i32_0 : i32, i32
  }
  func.func @transform_17(%arg0: i32) -> (i32, i32) {
    %c0_i32 = arith.constant 0 : i32
    %c0_i32_0 = arith.constant 0 : i32
    %c0_i32_1 = arith.constant 0 : i32
    return %c0_i32, %c0_i32_0 : i32, i32
  }
  func.func @transform_18(%arg0: i32) -> (i32, i32) {
    %c0_i32 = arith.constant 0 : i32
    %c0_i32_0 = arith.constant 0 : i32
    %c0_i32_1 = arith.constant 0 : i32
    return %c0_i32, %c0_i32_0 : i32, i32
  }
  func.func @transform_19(%arg0: i32) -> (i32, i32) {
    %c0_i32 = arith.constant 0 : i32
    %c0_i32_0 = arith.constant 0 : i32
    %c0_i32_1 = arith.constant 0 : i32
    return %c0_i32, %c0_i32_0 : i32, i32
  }
  func.func @transform_20(%arg0: i32) -> (i32, i32) {
    %c0_i32 = arith.constant 0 : i32
    %c0_i32_0 = arith.constant 0 : i32
    %c0_i32_1 = arith.constant 0 : i32
    return %c0_i32, %c0_i32_0 : i32, i32
  }
  func.func @transform_21(%arg0: i32) -> (i32, i32) {
    %c0_i32 = arith.constant 0 : i32
    %c0_i32_0 = arith.constant 0 : i32
    %c0_i32_1 = arith.constant 0 : i32
    return %c0_i32, %c0_i32_0 : i32, i32
  }
  func.func @transform_22(%arg0: i32) -> (i32, i32) {
    %c0_i32 = arith.constant 0 : i32
    %c0_i32_0 = arith.constant 0 : i32
    %c0_i32_1 = arith.constant 0 : i32
    return %c0_i32, %c0_i32_0 : i32, i32
  }
  func.func @transform_23(%arg0: i32) -> (i32, i32, i32) {
    %c0_i32 = arith.constant 0 : i32
    %c0_i32_0 = arith.constant 0 : i32
    %c0_i32_1 = arith.constant 0 : i32
    return %arg0, %c0_i32, %c0_i32_0 : i32, i32, i32
  }
}

</mosaic_0001>

<bundles_post_ra>
// kernel: tpu_custom_call.1
= control target key start
LH: loop header
LB: loop body
LE: loop exit
PB: predicated region body
PF: predicated region fallthrough
CT: control target
= control target key end

     0   :  { %s4654_s0 = inlined_call_operand.vmem [shape: s32[1,256], index: 0, kind: input, shape index: {}]   ;;  %s4655_s1 = inlined_call_operand.vmem [shape: s32[1,256], index: 1, kind: input, shape index: {}]   ;;  %s4656_s2 = inlined_call_operand.vmem [shape: f32[2,4,256], index: 2, kind: input, shape index: {}]   ;;  %s4657_s3 = inlined_call_operand.vmem [shape: f32[4,1], index: 3, kind: input, shape index: {}]   ;;  %s4658_s4 = inlined_call_operand.vmem [shape: f32[4,1], index: 4, kind: input, shape index: {}]   ;;  %s4659_s5 = inlined_call_operand.vmem [shape: f32[8,4], index: 5, kind: input, shape index: {}]   ;;  %s4660_s6 = inlined_call_operand.vmem [shape: f32[8,1], index: 6, kind: input, shape index: {}]   ;;  %s4661_s7 = inlined_call_operand.vmem [shape: f32[8,9], index: 7, kind: input, shape index: {}]   ;;  %s4662_s8 = inlined_call_operand.vmem [shape: f32[8,1], index: 8, kind: input, shape index: {}]   ;;  %s4663_s9 = inlined_call_operand.vmem [shape: f32[2,49], index: 9, kind: input, shape index: {}]   ;;  %s4664_s10 = inlined_call_operand.<no memory space> [shape: f32[1,1], index: 10, kind: input, shape index: {}]   ;;  %s4665_s11 = inlined_call_operand.vmem [shape: f32[4,4], index: 11, kind: input, shape index: {}]   ;;  %s4666_s12 = inlined_call_operand.vmem [shape: f32[4,1], index: 12, kind: input, shape index: {}]   ;;  %s4667_s13 = inlined_call_operand.vmem [shape: f32[4,4], index: 13, kind: input, shape index: {}]   ;;  %s4668_s14 = inlined_call_operand.vmem [shape: f32[4,1], index: 14, kind: input, shape index: {}]   ;;  %s4669_s15 = inlined_call_operand.vmem [shape: f32[4,1], index: 15, kind: input, shape index: {}]   ;;  %s4670_s16 = inlined_call_operand.vmem [shape: f32[4,1], index: 16, kind: input, shape index: {}]   ;;  %s4671_s17 = inlined_call_operand.vmem [shape: f32[8,4], index: 17, kind: input, shape index: {}]   ;;  %s4672_s18 = inlined_call_operand.vmem [shape: f32[8,1], index: 18, kind: input, shape index: {}]   ;;  %s4673_s19 = inlined_call_operand.vmem [shape: f32[4,4], index: 19, kind: input, shape index: {}]   ;;  %s4674_s20 = inlined_call_operand.vmem [shape: f32[4,1], index: 20, kind: input, shape index: {}]   ;;  %s4675_s21 = inlined_call_operand.vmem [shape: f32[4,1], index: 21, kind: input, shape index: {}]   ;;  %s4676_s22 = inlined_call_operand.vmem [shape: f32[4,1], index: 22, kind: input, shape index: {}]   ;;  %s4677_s23 = inlined_call_operand.hbm [shape: f32[2,4,256], index: 23, kind: output, shape index: {}]  }
   0x1   :  { %4718 = sst [smem:[#allocation81_spill]] %s4654_s0  ;;  %v28_v0 = vstv %s4664_s10 }
   0x2   :  { %4719 = sst [smem:[#allocation82_spill]] %s4655_s1  ;;  %29 = vst [vmem:[#allocation2] sm:$0x1] %v28_v0 }
   0x3   :  { %4720 = sst [smem:[#allocation83_spill]] %s4656_s2 }
   0x4   :  { %4721 = sst [smem:[#allocation84_spill]] %s4657_s3 }
   0x5   :  { %4722 = sst [smem:[#allocation85_spill]] %s4658_s4 }
   0x6   :  { %4723 = sst [smem:[#allocation86_spill]] %s4659_s5 }
   0x7   :  { %4724 = sst [smem:[#allocation87_spill]] %s4660_s6 }
   0x8   :  { %4725 = sst [smem:[#allocation88_spill]] %s4661_s7 }
   0x9   :  { %4726 = sst [smem:[#allocation89_spill]] %s4662_s8 }
   0xa   :  { %4727 = sst [smem:[#allocation90_spill]] %s4663_s9 }
   0xb   :  { %4728 = sst [smem:[#allocation91_spill]] %s4665_s11 }
   0xc   :  { %4729 = sst [smem:[#allocation92_spill]] %s4666_s12 }
   0xd   :  { %4730 = sst [smem:[#allocation93_spill]] %s4667_s13 }
   0xe   :  { %4731 = sst [smem:[#allocation94_spill]] %s4668_s14 }
   0xf   :  { %4732 = sst [smem:[#allocation95_spill]] %s4669_s15 }
  0x10   :  { %4733 = sst [smem:[#allocation96_spill]] %s4670_s16 }
  0x11   :  { %4734 = sst [smem:[#allocation97_spill]] %s4671_s17 }
  0x12   :  { %4735 = sst [smem:[#allocation98_spill]] %s4672_s18 }
  0x13   :  { %4736 = sst [smem:[#allocation99_spill]] %s4673_s19 }
  0x14   :  { %4737 = sst [smem:[#allocation100_spill]] %s4674_s20 }
  0x15   :  { %4738 = sst [smem:[#allocation101_spill]] %s4675_s21 }
  0x16   :  { %4739 = sst [smem:[#allocation102_spill]] %s4676_s22 }
  0x17   :  { %4740 = sst [smem:[#allocation103_spill]] %s4677_s23 }
  0x18   :  { %30 = vsyncpa [#allocation5], 0 }
  0x19   :  { %31 = vsyncpa [#allocation4], 0 }
  0x1a   :  { %33 = vsyncpa [#allocation4 + $0x1], 0  ;;  %s3028_s24 = smov 0   ;;  %s3030_s25 = smov 0  }
  0x1b   :  { %s3032_s5 = smov 0   ;;  %s3034_s1 = smov 0  }
  0x1c LB: > { %4741 = sst [smem:[#allocation9_spill]] %s2864_s24  ;;  %s3049_s10 = sadd.s32 4294967295, %s2876_s1   ;;  %s2876_s1 = sphi %s3034_s1, %s5016_s1   ;;  %s2872_s5 = sphi %s3032_s5, %s5019_s5   ;;  %s2868_s25 = sphi %s3030_s25, %s5018_s25   ;;  %s2864_s24 = sphi %s3028_s24, %s5017_s24  }
  0x1d   : > { %4742 = sst [smem:[#allocation10_spill]] %s2868_s25  ;;  %s2536_s26 = sadd.s32 4294967294, %s2876_s1  }
  0x1e   : > { %4743 = sst [smem:[#allocation11_spill]] %s2872_s5  ;;  %s3053_s2 = sadd.s32 1, %s2876_s1  }
  0x1f   : > { %4744 = sst [smem:[#allocation12_spill]] %s2876_s1  ;;  %s534_s6 = sadd.s32 1, %s2872_s5 }
  0x20   : > { %4745 = sst [smem:[#allocation13_spill]] %s3049_s10  ;;  %s531_s27 = ssub.s32 %s2876_s1, %s3053_s2 }
  0x21   : > { %4746 = sst [smem:[#allocation14_spill]] %s3053_s2  ;;  %p544_p0 = scmp.ne.s32.totalorder %s2872_s5, %s2868_s25 }
  0x22   : > { %p532_p1 = scmp.eq.s32.totalorder %s531_s27, 0  ;;  %p545_p2 = scmp.eq.s32.totalorder %s3049_s10, 1 }
  0x23   : > { %p550_p3 = scmp.ne.s32.totalorder %s2868_s25, %s2864_s24  ;;  %p551_p4 = scmp.eq.s32.totalorder %s2536_s26, 1 }
  0x24   : > { %s3064_s7 = scalar_select %p532_p1, %s2872_s5, %s534_s6  }
  0x25   : > { %p3066_p5 = por %p545_p2, %p544_p0  ;;  %p3070_p6 = por %p551_p4, %p550_p3 }
  0x26   : > { %4747 = sst [smem:[#allocation15_spill]] %s3064_s7  ;;  %p2537_p7 = scmp.ge.s32.totalorder %s2876_s1, 1 }
  0x27   : > { %s4748_s28 = scalar_select %p3066_p5, 1, 0 }
  0x28   : > { %s4750_s29 = scalar_select %p3070_p6, 1, 0 }
  0x29   : > { %4749 = sst [smem:[#allocation16_spill]] %s4748_s28  ;;  %p558_p8 = scmp.lt.s32.totalorder %s2876_s1, 3 }
  0x2a   : > { %4751 = sst [smem:[#allocation17_spill]] %s4750_s29  ;;  %p2711_p9 = scmp.eq.s32.totalorder %s3049_s10, 0 }
  0x2b   : > { %p559_p10 = pnand %p2537_p7, %p558_p8  ;;  %s4752_s9 = sld [smem:[#allocation90_spill]] }
  0x2c   : > { %s2878_s30 = smov [#allocation3]  }
  0x2d   : > { %p2703_p11 = pneg %p559_p10 }
  0x2e   : > { %654 = sbr.rel (%p559_p10) target bundleno = 2360 (0x938), region = 112 }
  0x2f   : > { %p2704_p12 = pnand %p2711_p9, %p2703_p11 }
  0x31   : > { %s594_s4 = sshll.u32 %s4752_s9, 4  ;;  %s595_s4 = int_to_ptr.vmem [resolvable:$true] %s594_s4 }
  0x32   : > { %2706 = dma.vmem_to_smem (!%p2704_p12), %s595_s4, 32, %s2878_s30, [#allocation5]  }
  0x33   : > { %2855 = dma.done.wait (%p2711_p9), [#allocation5], 32  }
  0x34   : > { %2857 = vsyncadd (%p2711_p9), [#allocation5], 4294967264 }
  0x35   : > { %661 = sfence }
  0x36   : > { %p720_p13 = scmp.lt.s32.totalorder %s3049_s10, 1  ;;  %s4753_s5 = sld [smem:[#allocation83_spill]]  ;;  %vm810_vm0 = vcmask 1043456   ;;  %vm806_vm1 = vcmask 31744   ;;  %v4694_v4 = vmov 0.25   ;;  %v2880_v6 = vmov 0  }
  0x37   : > { %s4755_s7 = sld [smem:[#allocation84_spill]]  ;;  %2773 = vset.pattern.permute.xlu0 %v2880_v6  ;;  %2774 = vset.pattern.permute.xlu1 %v2880_v6  ;;  %v2881_v28 = vmov 1   ;;  %v2882_v38 = vmov 839922192   ;;  %v2883_v56 = vmov 6   ;;  %v2884_v57 = vmov 2  }
  0x38   : > { %s721_s26 = scalar_select %p720_p13, %s3049_s10, 1  ;;  %2775 = vset.pattern.permute.xlu2 %v2881_v28  ;;  %v945_v39 = vunpack.c.l.s4 %v2882_v38  ;;  %v2885_v58 = vmov 7   ;;  %v2888_v0 = vmov 4  }
  0x39   : > { %s4756_s4 = sld [smem:[#allocation85_spill]]  ;;  %s2887_s30 = smov 1  }
  0x3a   : > { %s2695_s6 = sshll.u32 %s721_s26, 3  ;;  %v3120_v43 = vunpack.c.0.s8 %v945_v39  ;;  %s4760_s0 = sld [smem:[#allocation86_spill]] }
  0x3b   : > { %s4761_s27 = sld [smem:[#allocation82_spill]]  ;;  %s4682_s3 = smov 112  }
  0x3c   : > { %s724_s2 = scalar_lea.vmem %s4753_s5, %s2695_s6  ;;  %s4757_s6 = sld [smem:[#allocation87_spill]]  ;;  %4759 = vst [vmem:[#allocation19_spill] sm:$0xff] %v3120_v43 }
  0x3d   : > { %v3085_v1 = vld [vmem:[%s724_s2] sm:$0xff]  ;;  %s4758_s2 = sld [smem:[#allocation88_spill]]  ;;  %s4684_s5 = smov 16  }
  0x3e   : > { %4754 = vst [vmem:[#allocation18_spill] sm:$0xff] %v3085_v1  ;;  %v800_v5 = vld [vmem:[%s4755_s7] sm:$0xf]  ;;  %s4762_s8 = sld [smem:[#allocation89_spill]]  ;;  %s2898_s7 = smov 126  }
  0x3f   : > { %803 = vst [vmem:[#allocation1] ss:$2 sm:$0xff] %v3085_v1  ;;  %942 = vperm.xlu0 %2773, %v800_v5   ;;  %v801_v7 = vld [vmem:[%s4756_s4] sm:$0xf]  ;;  %s2886_s4 = smov 127   ;;  %v2891_v5 = vmov 5  }
  0x40   : > { %v960_v53 = vld [vmem:[%s4760_s0] sm:$0xff]  ;;  %s2899_s0 = smov 125   ;;  %s3275_s26 = sld [smem:[#allocation3 + $0x83]] }
  0x41   : > { %s3293_s9 = sld [smem:[#allocation3 + $0x87]] }
  0x42   : > { %v961_v25 = vld [vmem:[%s4757_s6] sm:$0xff]  ;;  %s4763_s6 = sld [smem:[#allocation81_spill]] }
  0x43   : > { %964 = vperm.xlu1 %2774, %v961_v25   ;;  %v3116_v27 = vld [vmem:[%s4758_s2] sm:$0xff]  ;;  %s2897_s2 = smov 2   ;;  %s3297_s29 = sld [smem:[#allocation3 + $0x11]] }
  0x44   : > { %1058 = vperm.xlu2 %2775, %v3116_v27   ;;  %s3299_s24 = sld [smem:[#allocation3 + $0x9c]] }
  0x45   : > { %s3301_s1 = sld [smem:[#allocation3 + $0xa]] }
  0x46   : > { %v805_v2 = vld.sshfl [vmem:[#allocation1 + $0x8] sm:$0xff pattern:$0x75316420]  ;;  %v804_v3 = vld.sshfl [vmem:[#allocation1] sm:$0xff pattern:$0x75316420] }
  0x47   : > { %2559 = vmatpush.msk.msra.mxu1 %vm810_vm0, %v805_v2  ;;  %2557 = vmatpush.msk.msra.mxu0 %vm810_vm0, %v804_v3  ;;  %v2889_v2 = vmov 8   ;;  %v2890_v3 = vmov 3   ;;  %s3303_s28 = sld [smem:[#allocation3 + $0x81]] }
  0x48   : > { %2560 = vmatmul.msk.f32.vlgmr.msra.gmra.mxu1 %vm806_vm1, %v4694_v4  ;;  %2558 = vmatmul.msk.f32.vlgmr.msra.gmra.mxu0 %vm806_vm1, %v4694_v4  ;;  %s3305_s23 = sld [smem:[#allocation3 + $0x8f]] }
  0x49   : > { %952 = vperm.xlu0 %2773, %v801_v7   ;;  %v3157_v7 = vld [vmem:[%s4761_s27] sm:$0x3]  ;;  %s2896_s27 = smov 3   ;;  %s3308_s19 = sld [smem:[#allocation3 + $0x88]] }
  0x4a   : > { %s3310_s10 = sld [smem:[#allocation3 + $0x1f]] }
  0x4b   : > { %1052 = vperm.xlu1 %2774, %v3116_v27   ;;  %s3314_s25 = sld [smem:[#allocation3 + $0x9d]] }
  0x4c   : > { %2778 = vset.pattern.permute.xlu2 %v2885_v58  ;;  %s3317_s17 = sld [smem:[#allocation3 + $0x82]] }
  0x4d   : > { %s3319_s13 = sld [smem:[#allocation3 + $0x84]] }
  0x4e   : > { %s3322_s18 = sld [smem:[#allocation3 + $0x90]] }
  0x4f   : > { %s3325_s12 = sld [smem:[#allocation3 + $0x92]] }
  0x50   : > { %s3330_s11 = sld [smem:[#allocation3 + $0x89]] }
  0x51   : > { %2776 = vset.pattern.permute.xlu0 %v2884_v57  ;;  %s3478_s22 = sld [smem:[#allocation3 + $0xa4]] }
  0x52   : > { %s3494_s16 = sld [smem:[#allocation3 + $0xaf]] }
  0x53   : > { %2777 = vset.pattern.permute.xlu1 %v2883_v56  ;;  %s3509_s21 = sld [smem:[#allocation3 + $0xa5]] }
  0x54   : > { %s3517_s20 = sld [smem:[#allocation3 + $0xa7]] }
  0x55   : > { %s3527_s15 = sld [smem:[#allocation3 + $0x95]] }
  0x56   : > { %s3540_s14 = sld [smem:[#allocation3 + $0x18]] }
  0x5a   : > { %4771 = sst [smem:[#allocation25_spill]] %s3517_s20 }
  0x5b   : > { %4773 = sst [smem:[#allocation27_spill]] %s3527_s15 }
  0x5c   : > { %s3551_s15 = sld [smem:[#allocation3 + $0xa8]] }
  0x5d   : > { %s3565_s20 = sld [smem:[#allocation3 + $0x96]] }
  0x62   : > { %4774 = sst [smem:[#allocation28_spill]] %s3551_s15 }
  0x63   : > { %4776 = sst [smem:[#allocation30_spill]] %s3565_s20 }
  0x64   : > { %s3579_s15 = sld [smem:[#allocation3 + $0x97]] }
  0x65   : > { %s3599_s20 = sld [smem:[#allocation3 + $0x99]] }
  0x6a   : > { %4779 = sst [smem:[#allocation33_spill]] %s3579_s15 }
  0x6b   : > { %4781 = sst [smem:[#allocation35_spill]] %s3599_s20 }
  0x6c   : > { %s3617_s20 = sld [smem:[#allocation3 + $0x9a]] }
  0x6d   : > { %s3619_s15 = sld [smem:[#allocation3]] }
  0xb1   : > { %v943_v34 = vpop.permute.xlu0 %942 }
  0xb2   : > { %v947_v49 = vperm.slane %v943_v34, %v3120_v43 }
  0xb5   : > { %v965_v59 = vpop.permute.xlu1 %964 }
  0xbb   : > { %v953_v47 = vpop.permute.xlu0 %952 }
  0xbc   : > { %v957_v51 = vperm.slane %v953_v47, %v3120_v43 }
  0xc5   : > { %v852_v8 = vpop.f32.mrf.mxu1  ;;  %v832_v9 = vpop.f32.mrf.mxu0 }
  0xc6   : > { %v856_v10 = vperm.slane %v852_v8, 0  ;;  %v855_v11 = vperm.slane %v832_v9, 0  ;;  %v1059_v8 = vpop.permute.xlu2 %1058  ;;  %v775_v9 = vadd.s32 4294967295, %v3157_v7 }
  0xc8   : > { %v859_v12 = vrot.slane %v856_v10, 4  ;;  %v781_v10 = vadd.s32 1, %v3157_v7  ;;  %vm776_vm8 = vcmp.ge.s32.totalorder %v775_v9, 0  ;;  %vm777_vm9 = vcmp.lt.s32.totalorder %v775_v9, 16 }
  0xc9   : > { %vm778_vm10 = vmand %vm776_vm8, %vm777_vm9 }
  0xca   : > { %v860_v13 = vsel %vm810_vm0, %v855_v11, %v859_v12  ;;  %v1023_v11 = vlaneseq  ;;  %v1053_v12 = vpop.permute.xlu1 %1052  ;;  %vm782_vm11 = vcmp.ge.s32.totalorder %v781_v10, 0  ;;  %vm783_vm12 = vcmp.lt.s32.totalorder %v781_v10, 16 }
  0xcb   : > { %v862_v14 = vsub.f32 %v3085_v1, %v860_v13  ;;  %vm784_vm13 = vmand %vm782_vm11, %vm783_vm12  ;;  %v4791_v1 = vstv %s3325_s12 }
  0xcd   : > { %v863_v15 = vmul.f32 %v862_v14, %v862_v14 }
  0xcf   : > { %865 = vst [vmem:[#allocation1] ss:$2 sm:$0xff] %v863_v15 }
  0xd6   : > { %v866_v16 = vld.sshfl [vmem:[#allocation1] sm:$0xff pattern:$0x75316420]  ;;  %v867_v17 = vld.sshfl [vmem:[#allocation1 + $0x8] sm:$0xff pattern:$0x75316420] }
  0xd7   : > { %2561 = vmatpush.msk.msra.mxu2 %vm810_vm0, %v866_v16  ;;  %2563 = vmatpush.msk.msra.mxu3 %vm810_vm0, %v867_v17 }
  0xd8   : > { %2562 = vmatmul.msk.f32.vlgmr.msra.gmra.mxu2 %vm806_vm1, %v4694_v4  ;;  %2564 = vmatmul.msk.f32.vlgmr.msra.gmra.mxu3 %vm806_vm1, %v4694_v4 }
 0x15b   : > { %v889_v18 = vpop.f32.mrf.mxu2  ;;  %v909_v19 = vpop.f32.mrf.mxu3 }
 0x15c   : > { %v890_v20 = vadd.f32 1e-06, %v889_v18  ;;  %v910_v21 = vadd.f32 1e-06, %v909_v19 }
 0x15e   : > { %2786 = vrsqrt.f32 %v890_v20  ;;  %vm918_vm4 = vweird.f32 %v890_v20  ;;  %vm928_vm6 = vweird.f32 %v910_v21 }
 0x15f   : > { %2788 = vrsqrt.f32 %v910_v21 }
 0x164   : > { %v2787_v22 = vpop.eup %2786 }
 0x165   : > { %v2789_v23 = vpop.eup %2788  ;;  %v913_v24 = vmul.f32 %v2787_v22, %v890_v20  ;;  %vm919_vm2 = vweird.f32 %v2787_v22 }
 0x166   : > { %v923_v26 = vmul.f32 %v2789_v23, %v910_v21  ;;  %vm929_vm3 = vweird.f32 %v2789_v23  ;;  %vm920_vm5 = vmor %vm918_vm4, %vm919_vm2 }
 0x167   : > { %v914_v29 = vmul.f32 %v2787_v22, %v913_v24  ;;  %vm930_vm7 = vmor %vm928_vm6, %vm929_vm3 }
 0x168   : > { %v924_v30 = vmul.f32 %v2789_v23, %v923_v26 }
 0x169   : > { %v915_v31 = vmul.f32 0.5, %v914_v29 }
 0x16a   : > { %v925_v32 = vmul.f32 0.5, %v924_v30 }
 0x16b   : > { %v916_v33 = vsub.f32 1.5, %v915_v31 }
 0x16c   : > { %v926_v35 = vsub.f32 1.5, %v925_v32 }
 0x16d   : > { %v917_v36 = vmul.f32 %v2787_v22, %v916_v33 }
 0x16e   : > { %v927_v37 = vmul.f32 %v2789_v23, %v926_v35 }
 0x16f   : > { %v921_v40 = vsel %vm920_vm5, %v2787_v22, %v917_v36 }
 0x170   : > { %v931_v41 = vsel %vm930_vm7, %v2789_v23, %v927_v37  ;;  %v932_v44 = vperm.slane %v921_v40, 0 }
 0x171   : > { %v933_v42 = vperm.slane %v931_v41, 0 }
 0x173   : > { %v936_v45 = vrot.slane %v933_v42, 4 }
 0x175   : > { %v937_v46 = vsel %vm810_vm0, %v932_v44, %v936_v45 }
 0x176   : > { %v939_v48 = vmul.f32 %v937_v46, %v862_v14  ;;  %v3161_v14 = vand.u32 127, %v1023_v11 }
 0x178   : > { %v949_v50 = vmul.f32 %v947_v49, %v939_v48  ;;  %vm1025_vm14 = vcmp.lt.s32.totalorder %v3161_v14, 1  ;;  %vm1039_vm15 = vcmp.lt.s32.totalorder %v3161_v14, 127  ;;  %vm1077_vm5 = vcmp.lt.s32.totalorder %v3161_v14, 16 }
 0x179   : > { %vm1144_vm9 = vcmp.lt.s32.totalorder %v3161_v14, 112 }
 0x17a   : > { %v959_v52 = vadd.f32 %v957_v51, %v949_v50  ;;  %v1049_v51 = vld [vmem:[%s4762_s8] sm:$0xff]  ;;  %s3289_s8 = sld [smem:[#allocation3 + $0x80]] }
 0x17c   : > { %968 = vst [vmem:[#allocation1] ss:$2 sm:$0xff] %v959_v52 }
 0x183   : > { %v969_v54 = vld.sshfl [vmem:[#allocation1] sm:$0xff pattern:$0x75316420]  ;;  %v970_v55 = vld.sshfl [vmem:[#allocation1 + $0x8] sm:$0xff pattern:$0x75316420] }
 0x184   : > { %2565 = vmatpush.msk.msrb.mxu0 %vm810_vm0, %v969_v54  ;;  %2567 = vmatpush.msk.msrb.mxu1 %vm810_vm0, %v970_v55 }
 0x185   : > { %2566 = vmatmul.msk.f32.vlgmr.msrb.gmra.mxu0 %vm806_vm1, %v960_v53  ;;  %2568 = vmatmul.msk.f32.vlgmr.msrb.gmra.mxu1 %vm806_vm1, %v960_v53 }
 0x202   : > { %v995_v60 = vpop.f32.mrf.mxu0  ;;  %v1015_v61 = vpop.f32.mrf.mxu1 }
 0x203   : > { %v3132_v62 = vadd.f32 %v995_v60, %v965_v59  ;;  %v3134_v63 = vadd.f32 %v1015_v61, %v965_v59 }
 0x205   : > { %1037 = vrot.lane.b32.xlu0 %v3134_v63, %s2886_s4  ;;  %1021 = vrot.lane.b32.xlu2 %v3134_v63, %s2887_s30  ;;  %v1061_v32 = vmul.f32 %v1059_v8, %v3132_v62  ;;  %v1062_v33 = vmul.f32 %v1059_v8, %v3134_v63 }
 0x206   : > { %1019 = vrot.lane.b32.xlu1 %v3132_v62, %s2887_s30 }
 0x20d   : > { %1066 = vperm.xlu0 %2776, %v3116_v27   ;;  %1035 = vrot.lane.b32.xlu2 %v3132_v62, %s2886_s4 }
 0x20e   : > { %1119 = vperm.xlu1 %2777, %v3116_v27  }
 0x215   : > { %2781 = vset.pattern.permute.xlu0 %v2888_v0  ;;  %1125 = vperm.xlu2 %2778, %v3116_v27  }
 0x216   : > { %2779 = vset.pattern.permute.xlu1 %v2889_v2  ;;  %1101 = vperm.xlu0 %2781, %v3116_v27  }
 0x217   : > { %1133 = vperm.xlu1 %2779, %v3116_v27  }
 0x21d   : > { %2780 = vset.pattern.permute.xlu2 %v2890_v3 }
 0x21e   : > { %1095 = vperm.xlu2 %2780, %v3116_v27   ;;  %2785 = vset.pattern.permute.xlu0 %v2880_v6 }
 0x21f   : > { %2782 = vset.pattern.permute.xlu1 %v2891_v5 }
 0x220   : > { %1109 = vperm.xlu1 %2782, %v3116_v27  }
 0x226   : > { %2783 = vset.pattern.permute.xlu2 %v2880_v6 }
 0x228   : > { %2784 = vset.pattern.permute.xlu1 %v2880_v6  ;;  %v4702_v6 = vmov 0.0  }
 0x229   : > { %v2553_v15 = vsel %vm778_vm10, 1.0, %v4702_v6  ;;  %v2554_v18 = vsel %vm784_vm13, 1.0, %v4702_v6  ;;  %vm1156_vm10 = vcmask 64512  }
 0x22a   : > { %v3165_v16 = vperm.slane %v2553_v15, 0  ;;  %v3167_v17 = vperm.slane %v2553_v15, 1  ;;  %v3175_v24 = vperm.slane %v2554_v18, 0  ;;  %v3177_v25 = vperm.slane %v2554_v18, 1 }
 0x25f   : > { %v1022_v13 = vpop.permute.xlu2 %1021 }
 0x267   : > { %v1036_v23 = vpop.permute.xlu2 %1035 }
 0x26f   : > { %v1126_v45 = vpop.permute.xlu2 %1125 }
 0x270   : > { %v1128_v48 = vmul.f32 %v1126_v45, %v3132_v62  ;;  %v1129_v49 = vmul.f32 %v1126_v45, %v3134_v63 }
 0x277   : > { %v1038_v19 = vpop.permute.xlu0 %1037 }
 0x278   : > { %v1020_v20 = vpop.permute.xlu1 %1019  ;;  %v1040_v28 = vsel %vm1039_vm15, %v1036_v23, %v1038_v19  ;;  %v1041_v29 = vsel %vm1039_vm15, %v1038_v19, %v1036_v23  ;;  %v1096_v59 = vpop.permute.xlu2 %1095 }
 0x279   : > { %v1026_v21 = vsel %vm1025_vm14, %v1020_v20, %v1022_v13  ;;  %v1027_v22 = vsel %vm1025_vm14, %v1022_v13, %v1020_v20  ;;  %v1047_v34 = vmul.f32 %v3175_v24, %v1040_v28  ;;  %v1048_v35 = vmul.f32 %v3177_v25, %v1041_v29  ;;  %v725_v13 = vld [vmem:[%s4763_s6] sm:$0x3]  ;;  %s3424_s6 = sld [smem:[#allocation3 + $0xaa]] }
 0x27a   : > { %v1033_v26 = vmul.f32 %v3165_v16, %v1027_v22  ;;  %v1034_v27 = vmul.f32 %v3167_v17, %v1026_v21  ;;  %v739_v15 = vadd.s32 4294967295, %v725_v13 }
 0x27c   : > { %v1055_v30 = vmul.f32 %v1053_v12, %v1033_v26  ;;  %v1056_v31 = vmul.f32 %v1053_v12, %v1034_v27  ;;  %v1098_v0 = vmul.f32 %v1096_v59, %v1033_v26  ;;  %v1099_v2 = vmul.f32 %v1096_v59, %v1034_v27 }
 0x27d   : > { %vm740_vm2 = vcmp.ge.s32.totalorder %v739_v15, 0  ;;  %vm741_vm3 = vcmp.lt.s32.totalorder %v739_v15, 16 }
 0x27e   : > { %v1063_v37 = vadd.f32 %v1061_v32, %v1055_v30  ;;  %v1064_v38 = vadd.f32 %v1062_v33, %v1056_v31  ;;  %vm742_vm4 = vmand %vm740_vm2, %vm741_vm3 }
 0x27f   : > { %v1067_v36 = vpop.permute.xlu0 %1066 }
 0x280   : > { %v1069_v39 = vmul.f32 %v1067_v36, %v1047_v34  ;;  %v1070_v40 = vmul.f32 %v1067_v36, %v1048_v35  ;;  %v1120_v41 = vpop.permute.xlu1 %1119 }
 0x281   : > { %v1122_v46 = vmul.f32 %v1120_v41, %v1033_v26  ;;  %v1123_v47 = vmul.f32 %v1120_v41, %v1034_v27 }
 0x282   : > { %v1071_v42 = vadd.f32 %v1069_v39, %v1063_v37  ;;  %v1072_v44 = vadd.f32 %v1070_v40, %v1064_v38 }
 0x283   : > { %v1130_v52 = vadd.f32 %v1128_v48, %v1122_v46  ;;  %v1131_v53 = vadd.f32 %v1129_v49, %v1123_v47  ;;  %v2895_v47 = vmov 0.125  }
 0x284   : > { %1075 = vrot.lane.b32.xlu2 %v1072_v44, %s4684_s5  ;;  %1073 = vrot.lane.b32.xlu1 %v1071_v42, %s4684_s5  ;;  %s3287_s5 = sld [smem:[#allocation3 + $0x98]] }
 0x288   : > { %v1102_v56 = vpop.permute.xlu0 %1101 }
 0x289   : > { %v1134_v50 = vpop.permute.xlu1 %1133  ;;  %v1104_v60 = vmul.f32 %v1102_v56, %v3132_v62  ;;  %v1105_v61 = vmul.f32 %v1102_v56, %v3134_v63  ;;  %v745_v62 = vadd.s32 1, %v725_v13  ;;  %v3204_v63 = vsel %vm742_vm4, 1.0, %v4702_v6 }
 0x28a   : > { %v1136_v54 = vmul.f32 %v1134_v50, %v1047_v34  ;;  %v1137_v55 = vmul.f32 %v1134_v50, %v1048_v35  ;;  %4764 = vst [vmem:[#allocation20_spill] sm:$0xff] %v3204_v63  ;;  %v4699_v19 = vperm.slane %v3204_v63, 0  ;;  %v4698_v20 = vperm.slane %v3204_v63, 1 }
 0x28b   : > { %v1106_v5 = vadd.f32 %v1104_v60, %v1098_v0  ;;  %v1107_v8 = vadd.f32 %v1105_v61, %v1099_v2  ;;  %vm746_vm6 = vcmp.ge.s32.totalorder %v745_v62, 0  ;;  %vm747_vm7 = vcmp.lt.s32.totalorder %v745_v62, 16 }
 0x28c   : > { %v1138_v57 = vadd.f32 %v1136_v54, %v1130_v52  ;;  %v1139_v58 = vadd.f32 %v1137_v55, %v1131_v53  ;;  %1089 = vperm.xlu2 %2783, %v1049_v51   ;;  %vm748_vm8 = vmand %vm746_vm6, %vm747_vm7  ;;  %v763_v0 = vadd.s32 4294967293, %v3157_v7 }
 0x28d   : > { %v3218_v29 = vsel %vm748_vm8, 1.0, %v4702_v6  ;;  %vm1216_vm8 = vcmp.lt.s32.totalorder %v3161_v14, 3 }
 0x28e   : > { %1140 = vrot.lane.b32.xlu0 %v1138_v57, %s4682_s3  ;;  %1142 = vrot.lane.b32.xlu1 %v1139_v58, %s4682_s3  ;;  %4765 = vst [vmem:[#allocation21_spill] sm:$0xff] %v3218_v29  ;;  %v4697_v32 = vperm.slane %v3218_v29, 0  ;;  %v4696_v33 = vperm.slane %v3218_v29, 1  ;;  %s3285_s3 = sld [smem:[#allocation3 + $0xa6]]  ;;  %vm764_vm11 = vcmp.ge.s32.totalorder %v763_v0, 0  ;;  %vm765_vm12 = vcmp.lt.s32.totalorder %v763_v0, 16 }
 0x28f   : > { %vm766_vm13 = vmand %vm764_vm11, %vm765_vm12  ;;  %vm1230_vm11 = vcmp.lt.s32.totalorder %v3161_v14, 2  ;;  %vm1260_vm12 = vcmp.lt.s32.totalorder %v3161_v14, 126  ;;  %v4793_v29 = vstv %s3322_s18 }
 0x292   : > { %v1110_v3 = vpop.permute.xlu1 %1109 }
 0x293   : > { %v1112_v9 = vmul.f32 %v1110_v3, %v1047_v34  ;;  %v1113_v10 = vmul.f32 %v1110_v3, %v1048_v35  ;;  %v769_v3 = vadd.s32 4294967294, %v3157_v7 }
 0x295   : > { %v1114_v11 = vadd.f32 %v1112_v9, %v1106_v5  ;;  %v1115_v12 = vadd.f32 %v1113_v10, %v1107_v8  ;;  %v1372_v8 = vstv %s3275_s26  ;;  %vm770_vm2 = vcmp.ge.s32.totalorder %v769_v3, 0  ;;  %s3338_s26 = sld [smem:[#allocation3 + $0x8b]] }
 0x296   : > { %vm771_vm3 = vcmp.lt.s32.totalorder %v769_v3, 16  ;;  %v1348_v3 = vstv %s3303_s28  ;;  %s3641_s28 = sld [smem:[#allocation3 + $0x1]] }
 0x297   : > { %vm3359_vm4 = vmand %vm770_vm2, %vm771_vm3 }
 0x29b   : > { %v4794_v63 = vstv %s3338_s26 }
 0x2de   : > { %v1076_v18 = vpop.permute.xlu2 %1075 }
 0x2e6   : > { %v1090_v28 = vpop.permute.xlu2 %1089 }
 0x2f6   : > { %v1074_v21 = vpop.permute.xlu1 %1073 }
 0x2f7   : > { %v1078_v22 = vsel %vm1077_vm5, %v1074_v21, %v1076_v18  ;;  %v1079_v23 = vsel %vm1077_vm5, %v1076_v18, %v1074_v21 }
 0x2f8   : > { %v1085_v26 = vmul.f32 %v4699_v19, %v1079_v23  ;;  %v1086_v27 = vmul.f32 %v4698_v20, %v1078_v22  ;;  %v1842_v23 = vstv %s3285_s3  ;;  %s3372_s3 = sld [smem:[#allocation3 + $0x9e]] }
 0x2fa   : > { %v1092_v30 = vadd.f32 %v1090_v28, %v1085_v26  ;;  %v1093_v31 = vadd.f32 %v1090_v28, %v1086_v27  ;;  %v3356_v27 = vsel %vm766_vm13, 1.0, %v4702_v6 }
 0x2fc   : > { %v1116_v38 = vadd.f32 %v1114_v11, %v1092_v30  ;;  %v1117_v39 = vadd.f32 %v1115_v12, %v1093_v31  ;;  %v787_v12 = vadd.s32 2, %v3157_v7 }
 0x2fe   : > { %vm788_vm6 = vcmp.ge.s32.totalorder %v787_v12, 0  ;;  %vm789_vm7 = vcmp.lt.s32.totalorder %v787_v12, 16 }
 0x300   : > { %v1141_v34 = vpop.permute.xlu0 %1140  ;;  %v1143_v35 = vpop.permute.xlu1 %1142 }
 0x301   : > { %v1145_v36 = vsel %vm1144_vm9, %v1141_v34, %v1143_v35  ;;  %v1146_v37 = vsel %vm1144_vm9, %v1143_v35, %v1141_v34  ;;  %v1666_v34 = vstv %s3287_s5  ;;  %s3400_s5 = sld [smem:[#allocation3 + $0x8c]] }
 0x302   : > { %v1152_v40 = vmul.f32 %v4697_v32, %v1145_v36  ;;  %v1153_v41 = vmul.f32 %v4696_v33, %v1146_v37 }
 0x304   : > { %v1154_v42 = vadd.f32 %v1152_v40, %v1116_v38  ;;  %v1155_v44 = vadd.f32 %v1153_v41, %v1117_v39  ;;  %v4701_v41 = vperm.slane %v3356_v27, 0 }
 0x306   : > { %v1200_v45 = vrot.slane %v1154_v42, 4  ;;  %v1206_v46 = vrot.slane %v1155_v44, 4  ;;  %1175 = vmatpush.msrb.mxu2 %v1154_v42  ;;  %1195 = vmatpush.msrb.mxu3 %v1155_v44 }
 0x307   : > { %2569 = vmatmul.msk.f32.vlgmr.msrb.gmra.mxu2 %vm1156_vm10, %v2895_v47  ;;  %2570 = vmatmul.msk.f32.vlgmr.msrb.gmra.mxu3 %vm1156_vm10, %v2895_v47  ;;  %vm790_vm10 = vmand %vm788_vm6, %vm789_vm7 }
 0x308   : > { %v1201_v48 = vmax.f32 %v1154_v42, %v1200_v45  ;;  %v1207_v49 = vmax.f32 %v1155_v44, %v1206_v46  ;;  %v3248_v58 = vmul.f32 %v1200_v45, %v1154_v42  ;;  %v3250_v59 = vmul.f32 %v1206_v46, %v1155_v44 }
 0x309   : > { %v3398_v42 = vsel %vm3359_vm4, 1.0, %v4702_v6  ;;  %v4700_v46 = vperm.slane %v3356_v27, 1  ;;  %v3435_v0 = vsel %vm790_vm10, 1.0, %v4702_v6 }
 0x30a   : > { %v1202_v50 = vrot.slane %v1201_v48, 2  ;;  %v1208_v51 = vrot.slane %v1207_v49, 2  ;;  %4766 = vst [vmem:[#allocation22_spill] sm:$0xff] %v3248_v58 }
 0x30b   : > { %4767 = vst [vmem:[#allocation23_spill] sm:$0xff] %v3250_v59 }
 0x30c   : > { %v1203_v52 = vmax.f32 %v1201_v48, %v1202_v50  ;;  %v1209_v53 = vmax.f32 %v1207_v49, %v1208_v51  ;;  %v1338_v48 = vstv %s3289_s8  ;;  %v1442_v50 = vstv %s3293_s9  ;;  %s3432_s8 = sld [smem:[#allocation3 + $0x2d]] }
 0x30d   : > { %s3440_s9 = sld [smem:[#allocation3 + $0xab]] }
 0x30e   : > { %v1204_v54 = vrot.slane %v1203_v52, 1  ;;  %v1210_v55 = vrot.slane %v1209_v53, 1 }
 0x310   : > { %v3231_v56 = vmax.f32 %v1203_v52, %v1204_v54  ;;  %v3233_v57 = vmax.f32 %v1209_v53, %v1210_v55  ;;  %v4705_v53 = vstv %s3297_s29  ;;  %v4707_v55 = vperm.slane %v3398_v42, 0 }
 0x312   : > { %1286 = vrot.lane.b32.xlu1 %v3233_v57, %s2896_s27  ;;  %1292 = vrot.lane.b32.xlu2 %v3231_v56, %s2897_s2  ;;  %v3333_v13 = vmul.f32 %v1372_v8, %v3233_v57  ;;  %v3344_v18 = vmul.f32 %v1372_v8, %v3231_v56  ;;  %v3386_v38 = vmul.f32 %v1842_v23, %v3233_v57  ;;  %v4710_v8 = vstv %s3305_s23 }
 0x313   : > { %1284 = vrot.lane.b32.xlu0 %v3231_v56, %s2896_s27  ;;  %v3389_v39 = vmul.f32 %v1842_v23, %v3231_v56  ;;  %v3403_v44 = vmul.f32 %v1666_v34, %v3231_v56  ;;  %v3406_v45 = vmul.f32 %v1666_v34, %v3233_v57 }
 0x31a   : > { %1302 = vrot.lane.b32.xlu1 %v3233_v57, %s2887_s30  ;;  %1310 = vrot.lane.b32.xlu2 %v3233_v57, %s2886_s4 }
 0x31b   : > { %1294 = vrot.lane.b32.xlu0 %v3233_v57, %s2897_s2 }
 0x322   : > { %1308 = vrot.lane.b32.xlu1 %v3231_v56, %s2886_s4  ;;  %1316 = vrot.lane.b32.xlu2 %v3231_v56, %s2898_s7 }
 0x323   : > { %1300 = vrot.lane.b32.xlu0 %v3231_v56, %s2887_s30 }
 0x32b   : > { %1318 = vrot.lane.b32.xlu0 %v3233_v57, %s2898_s7 }
 0x36c   : > { %v3353_v26 = vpop.permute.xlu2 %1292 }
 0x374   : > { %v1311_v34 = vpop.permute.xlu2 %1310 }
 0x384   : > { %v1287_v5 = vpop.permute.xlu1 %1286 }
 0x385   : > { %v3312_v2 = vpop.permute.xlu0 %1284 }
 0x386   : > { %v1288_v51 = vsel %vm1216_vm8, %v3312_v2, %v1287_v5  ;;  %v1289_v54 = vsel %vm1216_vm8, %v1287_v5, %v3312_v2  ;;  %v1452_v5 = vstv %s3308_s19  ;;  %s3657_s19 = sld [smem:[#allocation3 + $0xe]] }
 0x387   : > { %v3444_v2 = vmul.f32 %v1288_v51, %v4700_v46  ;;  %v3453_v12 = vmul.f32 %v1289_v54, %v4701_v41 }
 0x389   : > { %v3473_v6 = vmul.f32 %v1338_v48, %v3444_v2  ;;  %v3486_v19 = vmul.f32 %v1338_v48, %v3453_v12  ;;  %v3489_v54 = vmul.f32 %v1442_v50, %v3444_v2 }
 0x38a   : > { %v3253_v60 = vpop.f32.mrf.mxu2  ;;  %v3255_v61 = vpop.f32.mrf.mxu3 }
 0x38b   : > { %1214 = vrot.lane.b32.xlu0 %v3255_v61, %s2896_s27  ;;  %1226 = vrot.lane.b32.xlu1 %v3253_v60, %s2897_s2  ;;  %v1571_v33 = vmul.f32 %v4705_v53, %v3253_v60 }
 0x38c   : > { %1212 = vrot.lane.b32.xlu2 %v3253_v60, %s2896_s27  ;;  %s3277_s27 = sld [smem:[#allocation3 + $0x91]]  ;;  %v3409_v47 = vpop.permute.xlu1 %1302 }
 0x38d   : > { %v3381_v37 = vpop.permute.xlu0 %1294 }
 0x38e   : > { %v1296_v28 = vsel %vm1230_vm11, %v3353_v26, %v3381_v37 }
 0x392   : > { %v1574_v9 = vstv %s3277_s27  ;;  %s3341_s27 = sld [smem:[#allocation3 + $0x85]] }
 0x393   : > { %1250 = vrot.lane.b32.xlu0 %v3255_v61, %s2886_s4  ;;  %1240 = vrot.lane.b32.xlu1 %v3253_v60, %s2887_s30  ;;  %v3336_v15 = vmul.f32 %v1574_v9, %v3231_v56  ;;  %v3378_v36 = vmul.f32 %v1574_v9, %v3233_v57  ;;  %v1472_v9 = vstv %s3301_s1  ;;  %s3458_s1 = sld [smem:[#allocation3 + $0x26]] }
 0x394   : > { %1228 = vrot.lane.b32.xlu2 %v3255_v61, %s2897_s2  ;;  %s3279_s2 = sld [smem:[#allocation3 + $0x8a]]  ;;  %v1309_v48 = vpop.permute.xlu1 %1308  ;;  %v1474_v4 = vmul.f32 %v1472_v9, %v3255_v61 }
 0x395   : > { %v1301_v41 = vpop.permute.xlu0 %1300 }
 0x39a   : > { %v1476_v10 = vstv %s3279_s2  ;;  %s3363_s2 = sld [smem:[#allocation3 + $0x93]] }
 0x39b   : > { %1256 = vrot.lane.b32.xlu0 %v3253_v60, %s2898_s7  ;;  %1258 = vrot.lane.b32.xlu1 %v3255_v61, %s2898_s7  ;;  %s3281_s7 = sld [smem:[#allocation3 + $0x9f]]  ;;  %v3347_v21 = vmul.f32 %v1476_v10, %v3233_v57  ;;  %v3366_v30 = vmul.f32 %v1476_v10, %v3231_v56  ;;  %v3515_v10 = vmul.f32 %v1442_v50, %v3453_v12 }
 0x39c   : > { %1242 = vrot.lane.b32.xlu2 %v3255_v61, %s2887_s30  ;;  %s3283_s30 = sld [smem:[#allocation3 + $0xad]] }
 0x39d   : > { %4770 = vst [vmem:[#allocation24_spill] sm:$0xff] %v3515_v10 }
 0x3a1   : > { %v1750_v11 = vstv %s3281_s7  ;;  %s3383_s7 = sld [smem:[#allocation3 + $0xa0]] }
 0x3a2   : > { %v1940_v62 = vstv %s3283_s30  ;;  %v3350_v22 = vmul.f32 %v1750_v11, %v3233_v57  ;;  %v3369_v31 = vmul.f32 %v1750_v11, %v3231_v56  ;;  %s3416_s30 = sld [smem:[#allocation3 + $0xa1]]  ;;  %v1746_v11 = vstv %s3310_s10 }
 0x3a3   : > { %1324 = vrot.lane.b32.xlu0 %v3231_v56, %s2899_s0  ;;  %1270 = vrot.lane.b32.xlu1 %v3253_v60, %s2899_s0  ;;  %v3375_v35 = vmul.f32 %v1940_v62, %v3231_v56  ;;  %v3392_v40 = vmul.f32 %v1940_v62, %v3233_v57  ;;  %v4706_v56 = vperm.slane %v3398_v42, 1  ;;  %s3464_s10 = sld [smem:[#allocation3 + $0xac]]  ;;  %v1297_v62 = vsel %vm1230_vm11, %v3381_v37, %v3353_v26 }
 0x3a4   : > { %1248 = vrot.lane.b32.xlu2 %v3253_v60, %s2886_s4  ;;  %s3291_s4 = sld [smem:[#allocation3 + $0x8e]]  ;;  %v1748_v23 = vmul.f32 %v1746_v11, %v3255_v61  ;;  %v1473_v37 = vmul.f32 %v1472_v9, %v3253_v60  ;;  %v1747_v53 = vmul.f32 %v1746_v11, %v3253_v60  ;;  %v3545_v9 = vadd.f32 %v3336_v15, %v1571_v33 }
 0x3a5   : > { %v3535_v50 = vmul.f32 %v1296_v28, %v4706_v56  ;;  %v1304_v28 = vsel %vm1025_vm14, %v1301_v41, %v3409_v47  ;;  %v3560_v33 = vadd.f32 %v3347_v21, %v1474_v4 }
 0x3a6   : > { %v3563_v15 = vadd.f32 %v3350_v22, %v1748_v23  ;;  %v1319_v23 = vpop.permute.xlu0 %1318 }
 0x3a7   : > { %v3587_v22 = vmul.f32 %v1348_v3, %v3535_v50 }
 0x3a8   : > { %4775 = vst [vmem:[#allocation29_spill] sm:$0xff] %v3563_v15 }
 0x3aa   : > { %v4704_v49 = vstv %s3291_s4 }
 0x3ab   : > { %1326 = vrot.lane.b32.xlu1 %v3233_v57, %s2899_s0  ;;  %v1716_v57 = vstv %s3299_s24  ;;  %s3449_s24 = sld [smem:[#allocation3 + $0xa3]]  ;;  %v3483_v20 = vmul.f32 %v4704_v49, %v3453_v12  ;;  %v3531_v49 = vmul.f32 %v1297_v62, %v4707_v55  ;;  %v4708_v62 = vstv %s3424_s6 }
 0x3ac   : > { %1272 = vrot.lane.b32.xlu2 %v3255_v61, %s2899_s0  ;;  %s3295_s0 = sld [smem:[#allocation3 + $0x3]]  ;;  %v3492_v46 = vmul.f32 %v1716_v57, %v3444_v2  ;;  %v4786_v55 = vstv %s3291_s4 }
 0x3ad   : > { %s3739_s4 = sld [smem:[#allocation3 + $0x1d]] }
 0x3b2   : > { %v1368_v52 = vstv %s3295_s0  ;;  %s3470_s0 = sld [smem:[#allocation3 + $0xae]] }
 0x3b3   : > { %v1370_v51 = vmul.f32 %v1368_v52, %v3255_v61  ;;  %v1369_v32 = vmul.f32 %v1368_v52, %v3253_v60  ;;  %v3524_v52 = vmul.f32 %v1716_v57, %v3453_v12  ;;  %v1312_v57 = vsel %vm1039_vm15, %v1309_v48, %v1311_v34 }
 0x3b4   : > { %v3582_v21 = vmul.f32 %v1312_v57, %v3175_v24  ;;  %v4782_v57 = vstv %s3314_s25  ;;  %s3677_s25 = sld [smem:[#allocation3 + $0xf]] }
 0x3b5   : > { %v3520_v26 = vadd.f32 %v3333_v13, %v1370_v51  ;;  %4772 = vst [vmem:[#allocation26_spill] sm:$0xff] %v3524_v52  ;;  %v1313_v13 = vsel %vm1039_vm15, %v1311_v34, %v1309_v48  ;;  %v4709_v51 = vstv %s3432_s8  ;;  %v3548_v11 = vadd.f32 %v3344_v18, %v1369_v32  ;;  %v1317_v32 = vpop.permute.xlu2 %1316 }
 0x3b6   : > { %v1305_v34 = vsel %vm1025_vm14, %v3409_v47, %v1301_v41  ;;  %v3568_v18 = vmul.f32 %v1313_v13, %v3177_v25  ;;  %v3571_v48 = vadd.f32 %v3366_v30, %v1473_v37  ;;  %v3574_v41 = vadd.f32 %v3369_v31, %v1747_v53 }
 0x3b7   : > { %v1937_v4 = vmul.f32 %v4709_v51, %v3253_v60  ;;  %v3592_v30 = vmul.f32 %v4710_v8, %v3531_v49  ;;  %v3597_v31 = vmul.f32 %v4708_v62, %v3453_v12  ;;  %v3602_v47 = vmul.f32 %v1305_v34, %v3165_v16 }
 0x3b8   : > { %4777 = vst [vmem:[#allocation31_spill] sm:$0xff] %v3571_v48  ;;  %v3605_v53 = vmul.f32 %v1304_v28, %v3167_v17  ;;  %v3610_v37 = vmul.f32 %v1348_v3, %v3531_v49  ;;  %v3615_v13 = vmul.f32 %v1452_v5, %v3535_v50  ;;  %v3624_v28 = vmul.f32 %v4782_v57, %v3535_v50 }
 0x3b9   : > { %4778 = vst [vmem:[#allocation32_spill] sm:$0xff] %v3574_v41  ;;  %v3629_v34 = vmul.f32 %v1452_v5, %v3531_v49  ;;  %v4784_v3 = vmov %v4782_v57  ;;  %v3639_v62 = vmul.f32 %v4786_v55, %v3444_v2  ;;  %v4788_v57 = vstv %s3319_s13  ;;  %s3694_s13 = sld [smem:[#allocation3 + $0x7]] }
 0x3ba   : > { %4780 = vst [vmem:[#allocation34_spill] sm:$0xff] %v3597_v31  ;;  %v3634_v56 = vmul.f32 %v4784_v3, %v3531_v49  ;;  %v3646_v51 = vmul.f32 %v4788_v57, %v3568_v18  ;;  %v3650_v8 = vadd.f32 %v3375_v35, %v1937_v4  ;;  %v4790_v3 = vstv %s3297_s29  ;;  %s3722_s29 = sld [smem:[#allocation3 + $0x1c]] }
 0x3bb   : > { %4783 = vst [vmem:[#allocation36_spill] sm:$0xff] %v3629_v34  ;;  %v1572_v43 = vmul.f32 %v4790_v3, %v3255_v61  ;;  %v1321_v55 = vsel %vm1260_vm12, %v1319_v23, %v1317_v32  ;;  %v3662_v59 = vmul.f32 %v4791_v1, %v3582_v21  ;;  %v3667_v5 = vmul.f32 %v4788_v57, %v3582_v21 }
 0x3bc   : > { %4785 = vst [vmem:[#allocation37_spill] sm:$0xff] %v3634_v56  ;;  %v1838_v35 = vstv %s3458_s1  ;;  %v1320_v4 = vsel %vm1260_vm12, %v1317_v32, %v1319_v23  ;;  %v4792_v3 = vstv %s3317_s17  ;;  %v3682_v1 = vmul.f32 %v4793_v29, %v3602_v47  ;;  %s3713_s17 = sld [smem:[#allocation3 + $0x8]] }
 0x3bd   : > { %4787 = vst [vmem:[#allocation38_spill] sm:$0xff] %v3639_v62  ;;  %v3675_v58 = vmul.f32 %v4792_v3, %v3605_v53  ;;  %v3687_v57 = vmul.f32 %v4794_v63, %v3568_v18  ;;  %v4796_v23 = vstv %s3330_s11  ;;  %v4797_v29 = vstv %s3372_s3  ;;  %s3761_s11 = sld [smem:[#allocation3 + $0x2]] }
 0x3be   : > { %4789 = vst [vmem:[#allocation39_spill] sm:$0xff] %v3650_v8  ;;  %v4795_v8 = vmov %v4792_v3  ;;  %v3699_v3 = vmul.f32 %v4796_v23, %v3605_v53  ;;  %v3704_v62 = vmul.f32 %v4797_v29, %v3605_v53  ;;  %v1808_v63 = vstv %s3449_s24  ;;  %s3839_s24 = sld [smem:[#allocation3 + $0xb]] }
 0x3bf   : > { %v3692_v32 = vmul.f32 %v4795_v8, %v3602_v47  ;;  %v4799_v31 = vperm.slane %v3435_v0, 1  ;;  %v1840_v56 = vmul.f32 %v1838_v35, %v3255_v61  ;;  %v4800_v29 = vperm.slane %v3435_v0, 0  ;;  %s3937_s1 = sld [smem:[#allocation3 + $0x21]] }
 0x3c0   : > { %4798 = vst [vmem:[#allocation40_spill] sm:$0xff] %v3704_v62  ;;  %v4803_v34 = vmov %v4796_v23  ;;  %v4805_v48 = vstv %s3338_s26  ;;  %s3793_s26 = sld [smem:[#allocation3 + $0x10]] }
 0x3c1   : > { %v3709_v41 = vmul.f32 %v1321_v55, %v4799_v31  ;;  %v3720_v52 = vmul.f32 %v1320_v4, %v4800_v29  ;;  %v4801_v31 = vstv %s3383_s7  ;;  %v3732_v10 = vmul.f32 %v4803_v34, %v3602_v47  ;;  %s3811_s7 = sld [smem:[#allocation3 + $0x12]] }
 0x3c2   : > { %v3727_v55 = vmul.f32 %v4801_v31, %v3568_v18  ;;  %v3737_v23 = vmul.f32 %v4805_v48, %v3582_v21  ;;  %v4807_v4 = vstv %s3372_s3  ;;  %v4809_v15 = vmov %v4801_v31  ;;  %s4828_s3 = sld [smem:[#allocation25_spill]] }
 0x3c3   : > { %4804 = vst [vmem:[#allocation42_spill] sm:$0xff] %v3732_v10  ;;  %v3744_v29 = vmul.f32 %v4807_v4, %v3602_v47  ;;  %v3749_v31 = vmul.f32 %v4809_v15, %v3582_v21  ;;  %v4813_v48 = vstv %s3305_s23  ;;  %v4815_v10 = vstv %s3464_s10  ;;  %s3779_s23 = sld [smem:[#allocation3 + $0x4]] }
 0x3c4   : > { %4802 = vst [vmem:[#allocation41_spill] sm:$0xff] %v3727_v55  ;;  %v4811_v55 = vstv %s3440_s9  ;;  %v3766_v4 = vmul.f32 %v4815_v10, %v3602_v47 }
 0x3c5   : > { %4806 = vst [vmem:[#allocation43_spill] sm:$0xff] %v3737_v23  ;;  %v3754_v34 = vmul.f32 %v4811_v55, %v3531_v49  ;;  %v3759_v23 = vmul.f32 %v4813_v48, %v3535_v50  ;;  %v3774_v55 = vadd.f32 %v3378_v36, %v1572_v43  ;;  %v3777_v48 = vmul.f32 %v1808_v63, %v3444_v2 }
 0x3c6   : > { %4808 = vst [vmem:[#allocation44_spill] sm:$0xff] %v3744_v29  ;;  %v4817_v29 = vstv %s3470_s0  ;;  %v3791_v43 = vmul.f32 %v1808_v63, %v3453_v12  ;;  %v4825_v36 = vstv %s3363_s2  ;;  %v4833_v63 = vstv %s3416_s30  ;;  %s3893_s30 = sld [smem:[#allocation3 + $0x20]] }
 0x3c7   : > { %4810 = vst [vmem:[#allocation45_spill] sm:$0xff] %v3749_v31  ;;  %v3771_v15 = vmul.f32 %v4817_v29, %v3582_v21  ;;  %v3788_v29 = vadd.f32 %v3386_v38, %v1840_v56  ;;  %v1839_v56 = vmul.f32 %v1838_v35, %v3253_v60  ;;  %v4836_v35 = vmov %v4833_v63 }
 0x3c8   : > { %4812 = vst [vmem:[#allocation46_spill] sm:$0xff] %v3754_v34  ;;  %v1662_v34 = vstv %s3540_s14  ;;  %v1854_v62 = vstv %s4828_s3  ;;  %s3853_s14 = sld [smem:[#allocation3 + $0x5]] }
 0x3c9   : > { %4814 = vst [vmem:[#allocation47_spill] sm:$0xff] %v3759_v23  ;;  %v4821_v23 = vstv %s3341_s27  ;;  %s3823_s27 = sld [smem:[#allocation3 + $0x9]] }
 0x3ca   : > { %4816 = vst [vmem:[#allocation48_spill] sm:$0xff] %v3766_v4  ;;  %v3784_v10 = vmul.f32 %v4821_v23, %v3709_v41  ;;  %v1818_v4 = vstv %s3478_s22  ;;  %s4832_s22 = sld [smem:[#allocation27_spill]] }
 0x3cb   : > { %4818 = vst [vmem:[#allocation49_spill] sm:$0xff] %v3771_v15  ;;  %v4830_v15 = vstv %s3400_s5  ;;  %s4850_s5 = sld [smem:[#allocation35_spill]] }
 0x3cc   : > { %4819 = vst [vmem:[#allocation50_spill] sm:$0xff] %v3774_v55  ;;  %v3798_v55 = vmul.f32 %v4825_v36, %v3720_v52  ;;  %v3808_v38 = vmul.f32 %v4830_v15, %v3709_v41  ;;  %v1964_v36 = vstv %s3494_s16  ;;  %v3828_v31 = vmul.f32 %v4830_v15, %v3720_v52  ;;  %s4845_s16 = sld [smem:[#allocation28_spill]] }
 0x3cd   : > { %4820 = vst [vmem:[#allocation51_spill] sm:$0xff] %v3777_v48  ;;  %v4827_v48 = vmov %v4821_v23  ;;  %s3960_s3 = sld [smem:[#allocation3 + $0xd]] }
 0x3ce   : > { %4822 = vst [vmem:[#allocation52_spill] sm:$0xff] %v3784_v10  ;;  %v3803_v23 = vmul.f32 %v4827_v48, %v3720_v52 }
 0x3cf   : > { %4823 = vst [vmem:[#allocation53_spill] sm:$0xff] %v3788_v29  ;;  %v3816_v29 = vmul.f32 %v4833_v63, %v3709_v41  ;;  %v1830_v63 = vstv %s3509_s21  ;;  %s3869_s21 = sld [smem:[#allocation3 + $0x13]] }
 0x3d0   : > { %4824 = vst [vmem:[#allocation54_spill] sm:$0xff] %v3791_v43  ;;  %v4835_v43 = vstv %s3432_s8  ;;  %v1632_v15 = vstv %s4832_s22  ;;  %s3907_s8 = sld [smem:[#allocation3 + $0xc]] }
 0x3d1   : > { %4826 = vst [vmem:[#allocation55_spill] sm:$0xff] %v3798_v55  ;;  %v1938_v48 = vmul.f32 %v4835_v43, %v3255_v61  ;;  %v4841_v55 = vstv %s3424_s6  ;;  %s3882_s6 = sld [smem:[#allocation3 + $0x1e]] }
 0x3d2   : > { %4829 = vst [vmem:[#allocation56_spill] sm:$0xff] %v3803_v23  ;;  %v3836_v23 = vmul.f32 %v1818_v4, %v3535_v50  ;;  %v3850_v10 = vmul.f32 %v4841_v55, %v3444_v2  ;;  %s4305_s22 = sld [smem:[#allocation3 + $0x30]] }
 0x3d3   : > { %4831 = vst [vmem:[#allocation57_spill] sm:$0xff] %v3808_v38  ;;  %v3833_v38 = vmul.f32 %v4836_v35, %v3720_v52  ;;  %v3856_v35 = vmul.f32 %v1964_v36, %v3720_v52 }
 0x3d4   : > { %4834 = vst [vmem:[#allocation58_spill] sm:$0xff] %v3816_v29  ;;  %v4839_v29 = vstv %s3322_s18  ;;  %s4847_s18 = sld [smem:[#allocation30_spill]] }
 0x3d5   : > { %4837 = vst [vmem:[#allocation59_spill] sm:$0xff] %v3833_v38  ;;  %v3844_v43 = vmul.f32 %v4839_v29, %v3605_v53  ;;  %v3864_v29 = vadd.f32 %v3389_v39, %v1839_v56  ;;  %v1663_v39 = vmul.f32 %v1662_v34, %v3253_v60  ;;  %v793_v56 = vadd.s32 3, %v3157_v7 }
 0x3d6   : > { %4838 = vst [vmem:[#allocation60_spill] sm:$0xff] %v3836_v23  ;;  %v4844_v23 = vstv %s3325_s12  ;;  %s4848_s12 = sld [smem:[#allocation33_spill]]  ;;  %v1866_v60 = vstv %s4845_s16  ;;  %v4854_v7 = vstv %s3440_s9 }
 0x3d7   : > { %4840 = vst [vmem:[#allocation61_spill] sm:$0xff] %v3844_v43  ;;  %v3861_v38 = vmul.f32 %v4844_v23, %v3568_v18  ;;  %v1664_v43 = vmul.f32 %v1662_v34, %v3255_v61  ;;  %v3878_v23 = vadd.f32 %v3392_v40, %v1938_v48  ;;  %v3885_v61 = vmul.f32 %v1854_v62, %v3568_v18  ;;  %s3925_s9 = sld [smem:[#allocation3 + $0x14]] }
 0x3d8   : > { %4842 = vst [vmem:[#allocation62_spill] sm:$0xff] %v3850_v10  ;;  %v3872_v10 = vmul.f32 %v1830_v63, %v3605_v53  ;;  %v4853_v40 = vstv %s3363_s2  ;;  %v3904_v34 = vmul.f32 %v4854_v7, %v3535_v50  ;;  %vm794_vm13 = vcmp.ge.s32.totalorder %v793_v56, 0  ;;  %s3919_s2 = sld [smem:[#allocation3 + $0x6]] }
 0x3d9   : > { %4843 = vst [vmem:[#allocation63_spill] sm:$0xff] %v3856_v35  ;;  %v3875_v35 = vmul.f32 %v1818_v4, %v3531_v49  ;;  %v3891_v4 = vmul.f32 %v1632_v15, %v3444_v2  ;;  %v3898_v48 = vmul.f32 %v4853_v40, %v3709_v41  ;;  %v3913_v2 = vmul.f32 %v1854_v62, %v3582_v21  ;;  %s4327_s16 = sld [smem:[#allocation3 + $0x23]] }
 0x3da   : > { %4846 = vst [vmem:[#allocation64_spill] sm:$0xff] %v3864_v29  ;;  %v3888_v29 = vmul.f32 %v1632_v15, %v3453_v12  ;;  %v3910_v12 = vmul.f32 %v1830_v63, %v3602_v47  ;;  %v3917_v40 = vadd.f32 %v3406_v45, %v1664_v43  ;;  %vm795_vm2 = vcmp.lt.s32.totalorder %v793_v56, 16 }
 0x3db   : > { %4849 = vst [vmem:[#allocation65_spill] sm:$0xff] %v3878_v23  ;;  %v1642_v23 = vstv %s4847_s18  ;;  %v1678_v7 = vstv %s4850_s5  ;;  %v3928_v63 = vmul.f32 %v1866_v60, %v3709_v41  ;;  %vm3956_vm3 = vmand %vm794_vm13, %vm795_vm2  ;;  %v1334_v56 = vstv %s3619_s15  ;;  %s3997_s15 = sld [smem:[#allocation3 + $0x86]] }
 0x3dc   : > { %4851 = vst [vmem:[#allocation66_spill] sm:$0xff] %v3888_v29  ;;  %v1654_v15 = vstv %s4848_s12  ;;  %v3931_v62 = vmul.f32 %v1642_v23, %v3531_v49  ;;  %v3934_v45 = vmul.f32 %v1642_v23, %v3535_v50  ;;  %v4862_v49 = vstv %s3470_s0  ;;  %s4006_s0 = sld [smem:[#allocation3 + $0x94]] }
 0x3dd   : > { %4852 = vst [vmem:[#allocation67_spill] sm:$0xff] %v3891_v4  ;;  %v3923_v4 = vadd.f32 %v3403_v44, %v1663_v39  ;;  %v3940_v44 = vmul.f32 %v1866_v60, %v3720_v52  ;;  %v4860_v39 = vstv %s3464_s10  ;;  %v3953_v50 = vmul.f32 %v1654_v15, %v3602_v47  ;;  %s3977_s10 = sld [smem:[#allocation3 + $0x2a]] }
 0x3de   : > { %4855 = vst [vmem:[#allocation68_spill] sm:$0xff] %v3917_v40  ;;  %v3950_v40 = vmul.f32 %v4862_v49, %v3568_v18  ;;  %v3963_v60 = vmul.f32 %v1964_v36, %v3709_v41  ;;  %v3969_v49 = vmul.f32 %v1678_v7, %v3582_v21  ;;  %v3972_v47 = vmul.f32 %v1678_v7, %v3568_v18  ;;  %s4336_s18 = sld [smem:[#allocation3 + $0x24]] }
 0x3df   : > { %4856 = vst [vmem:[#allocation69_spill] sm:$0xff] %v3923_v4  ;;  %v3945_v4 = vmul.f32 %v4860_v39, %v3605_v53  ;;  %v3966_v39 = vmul.f32 %v1654_v15, %v3605_v53  ;;  %v1344_v43 = vstv %s3641_s28  ;;  %v4871_v36 = vstv %s3617_s20  ;;  %s4044_s28 = sld [smem:[#allocation3 + $0x8d]] }
 0x3e0   : > { %4857 = vst [vmem:[#allocation70_spill] sm:$0xff] %v3931_v62  ;;  %v3982_v53 = vmul.f32 %v4871_v36, %v3720_v52  ;;  %v4875_v15 = vperm.slane %v3356_v27, 1  ;;  %v4877_v18 = vperm.slane %v3398_v42, 1  ;;  %v1332_v36 = vld [vmem:[#allocation2] sm:$0x1]  ;;  %s4343_s12 = sld [smem:[#allocation3 + $0x25]] }
 0x3e1   : > { %4858 = vst [vmem:[#allocation71_spill] sm:$0xff] %v3934_v45  ;;  %1431 = vperm.xlu1 %2784, %v1332_v36   ;;  %s4357_s5 = sld [smem:[#allocation3 + $0x28]] }
 0x3e2   : > { %4859 = vst [vmem:[#allocation72_spill] sm:$0xff] %v3940_v44 }
 0x3e3   : > { %4861 = vst [vmem:[#allocation73_spill] sm:$0xff] %v3945_v4  ;;  %v1610_v4 = vstv %s4006_s0  ;;  %s2903_s0 = smov 96  }
 0x3e4   : > { %4863 = vst [vmem:[#allocation74_spill] sm:$0xff] %v3950_v40 }
 0x3e5   : > { %4864 = vst [vmem:[#allocation75_spill] sm:$0xff] %v3953_v50 }
 0x3e6   : > { %v3711_v8 = vpop.permute.xlu2 %1212  ;;  %4867 = vst [vmem:[#allocation76_spill] sm:$0xff] %v3963_v60 }
 0x3e7   : > { %4868 = vst [vmem:[#allocation77_spill] sm:$0xff] %v3966_v39  ;;  %v4874_v39 = vperm.slane %v3356_v27, 0 }
 0x3e8   : > { %4869 = vst [vmem:[#allocation78_spill] sm:$0xff] %v3969_v49  ;;  %v4873_v49 = vmov 0.0  }
 0x3e9   : > { %4870 = vst [vmem:[#allocation79_spill] sm:$0xff] %v3972_v47  ;;  %v3993_v50 = vsel %vm3956_vm3, 1.0, %v4873_v49 }
 0x3ea   : > { %4872 = vst [vmem:[#allocation80_spill] sm:$0xff] %v3982_v53 }
 0x3ee   : > { %v3867_v55 = vpop.permute.xlu2 %1228 }
 0x3f6   : > { %v3988_v47 = vpop.permute.xlu2 %1242 }
 0x3fd   : > { %v1215_v23 = vpop.permute.xlu0 %1214  ;;  %v1227_v49 = vpop.permute.xlu1 %1226 }
 0x3fe   : > { %v1217_v7 = vsel %vm1216_vm8, %v3711_v8, %v1215_v23  ;;  %v1218_v29 = vsel %vm1216_vm8, %v1215_v23, %v3711_v8  ;;  %v1231_v53 = vsel %vm1230_vm11, %v1227_v49, %v3867_v55  ;;  %v1232_v52 = vsel %vm1230_vm11, %v3867_v55, %v1227_v49  ;;  %v1249_v40 = vpop.permute.xlu2 %1248 }
 0x3ff   : > { %v4028_v45 = vmul.f32 %v4874_v39, %v1218_v29  ;;  %v4032_v62 = vmul.f32 %v4875_v15, %v1217_v7  ;;  %v4876_v8 = vperm.slane %v3398_v42, 0  ;;  %v4040_v21 = vmul.f32 %v4877_v18, %v1231_v53 }
 0x400   : > { %v4878_v7 = vstv %s3657_s19  ;;  %v4879_v53 = vstv %s3677_s25  ;;  %v4880_v49 = vstv %s3694_s13  ;;  %vm1419_vm11 = vcmp.lt.s32.totalorder %v3161_v14, 48 }
 0x401   : > { %v4036_v23 = vmul.f32 %v4876_v8, %v1232_v52  ;;  %v1336_v39 = vmul.f32 %v1334_v56, %v4032_v62  ;;  %v1346_v15 = vmul.f32 %v1344_v43, %v4040_v21  ;;  %v1537_v42 = vmul.f32 %v4878_v7, %v4028_v45 }
 0x402   : > { %v1335_v36 = vmul.f32 %v1334_v56, %v4028_v45  ;;  %v1440_v27 = vmul.f32 %v4880_v49, %v4032_v62 }
 0x403   : > { %v1547_v18 = vmul.f32 %v4879_v53, %v4036_v23  ;;  %v1345_v8 = vmul.f32 %v1344_v43, %v4036_v23  ;;  %v1342_v55 = vadd.f32 %v3473_v6, %v1336_v39  ;;  %v1352_v29 = vadd.f32 %v3587_v22, %v1346_v15 }
 0x404   : > { %v1543_v60 = vadd.f32 %v3483_v20, %v1537_v42  ;;  %v1341_v53 = vadd.f32 %v3486_v19, %v1335_v36  ;;  %v4881_v43 = vstv %s3713_s17  ;;  %v1446_v20 = vadd.f32 %v3489_v54, %v1440_v27 }
 0x405   : > { %v1553_v7 = vadd.f32 %v3592_v30, %v1547_v18  ;;  %v1351_v56 = vadd.f32 %v3610_v37, %v1345_v8  ;;  %v1450_v52 = vmul.f32 %v4881_v43, %v4040_v21  ;;  %v1251_v44 = vpop.permute.xlu0 %1250  ;;  %v1241_v49 = vpop.permute.xlu1 %1240  ;;  %v1354_v6 = vadd.f32 %v1352_v29, %v1342_v55 }
 0x406   : > { %v4882_v30 = vstv %s3722_s29  ;;  %v1252_v19 = vsel %vm1039_vm15, %v1249_v40, %v1251_v44  ;;  %v1253_v37 = vsel %vm1039_vm15, %v1251_v44, %v1249_v40  ;;  %v1245_v54 = vsel %vm1025_vm14, %v3988_v47, %v1241_v49 }
 0x407   : > { %v1555_v22 = vadd.f32 %v1553_v7, %v1543_v60  ;;  %v1714_v39 = vmul.f32 %v4882_v30, %v4032_v62  ;;  %v1244_v60 = vsel %vm1025_vm14, %v1241_v49, %v3988_v47  ;;  %v4087_v55 = vmul.f32 %v1252_v19, %v3175_v24 }
 0x408   : > { %v4090_v29 = vmul.f32 %v1253_v37, %v3177_v25  ;;  %v4093_v27 = vmul.f32 %v1245_v54, %v3165_v16  ;;  %v4096_v40 = vmul.f32 %v1244_v60, %v3167_v17  ;;  %v1353_v44 = vadd.f32 %v1351_v56, %v1341_v53 }
 0x409   : > { %v1456_v15 = vadd.f32 %v3615_v13, %v1450_v52  ;;  %v1512_v42 = vstv %s4044_s28  ;;  %v4883_v18 = vstv %s3739_s4  ;;  %v4884_v47 = vstv %s3761_s11  ;;  %s4139_s11 = sld [smem:[#allocation3 + $0x22]] }
 0x40a   : > { %v1724_v36 = vmul.f32 %v4883_v18, %v4040_v21  ;;  %v1358_v24 = vmul.f32 %v4884_v47, %v4096_v40  ;;  %v4885_v8 = vstv %s3779_s23  ;;  %v4886_v16 = vstv %s3793_s26  ;;  %s4165_s23 = sld [smem:[#allocation3 + $0xa2]] }
 0x40b   : > { %v1382_v25 = vmul.f32 %v4885_v8, %v4090_v29  ;;  %v1559_v7 = vmul.f32 %v4886_v16, %v4093_v27  ;;  %v4887_v17 = vstv %s3811_s7  ;;  %v4888_v53 = vmov %v4884_v47  ;;  %s4485_s28 = sld [smem:[#allocation3 + $0x9b]] }
 0x40c   : > { %v1583_v43 = vmul.f32 %v4887_v17, %v4087_v55  ;;  %v1357_v13 = vmul.f32 %v4888_v53, %v4093_v27  ;;  %v4889_v52 = vmov %v4885_v8  ;;  %v4890_v49 = vstv %s3823_s27 }
 0x40d   : > { %v1381_v56 = vmul.f32 %v4889_v52, %v4087_v55  ;;  %v1462_v30 = vmul.f32 %v4890_v49, %v4096_v40  ;;  %v1720_v19 = vadd.f32 %v3492_v46, %v1714_v39  ;;  %vm1274_vm14 = vcmp.lt.s32.totalorder %v3161_v14, 125  ;;  %v1257_v52 = vpop.permute.xlu0 %1256  ;;  %v1259_v46 = vpop.permute.xlu1 %1258 }
 0x40e   : > { %v1364_v37 = vadd.f32 %v3675_v58, %v1358_v24  ;;  %v1388_v60 = vadd.f32 %v3646_v51, %v1382_v25  ;;  %v1565_v54 = vadd.f32 %v3682_v1, %v1559_v7  ;;  %v1458_v18 = vadd.f32 %v1456_v15, %v1446_v20 }
 0x40f   : > { %v1589_v47 = vadd.f32 %v3662_v59, %v1583_v43  ;;  %v1363_v8 = vadd.f32 %v3692_v32, %v1357_v13  ;;  %v1468_v16 = vadd.f32 %v3699_v3, %v1462_v30  ;;  %v4891_v17 = vstv %s3839_s24 }
 0x410   : > { %v1486_v53 = vmul.f32 %v4891_v17, %v4090_v29  ;;  %v1366_v39 = vadd.f32 %v1364_v37, %v1354_v6  ;;  %v1567_v49 = vadd.f32 %v1565_v54, %v1555_v22  ;;  %v1730_v58 = vadd.f32 %v3624_v28, %v1724_v36  ;;  %v4901_v17 = vld [vmem:[#allocation40_spill] sm:$0xff] }
 0x411   : > { %v4892_v51 = vstv %s3882_s6  ;;  %v1261_v59 = vsel %vm1260_vm12, %v1257_v52, %v1259_v46  ;;  %v1262_v32 = vsel %vm1260_vm12, %v1259_v46, %v1257_v52  ;;  %v1365_v3 = vadd.f32 %v1363_v8, %v1353_v44  ;;  %v4900_v8 = vld [vmem:[#allocation55_spill] sm:$0xff]  ;;  %v4903_v46 = vld [vmem:[#allocation56_spill] sm:$0xff] }
 0x412   : > { %v1736_v1 = vmul.f32 %v4892_v51, %v4096_v40  ;;  %v1470_v20 = vadd.f32 %v1468_v16, %v1458_v18  ;;  %v4893_v6 = vperm.slane %v3435_v0, 0  ;;  %v4894_v28 = vperm.slane %v3435_v0, 1 }
 0x413   : > { %v1378_v36 = vadd.f32 %v3520_v26, %v1366_v39  ;;  %v1579_v24 = vadd.f32 %v3545_v9, %v1567_v49  ;;  %v1377_v25 = vadd.f32 %v3548_v11, %v1365_v3  ;;  %v1387_v44 = vadd.f32 %v3667_v5, %v1381_v56  ;;  %v4899_v56 = vld [vmem:[#allocation52_spill] sm:$0xff]  ;;  %v4904_v49 = vld [vmem:[#allocation57_spill] sm:$0xff] }
 0x414   : > { %v4147_v22 = vmul.f32 %v4893_v6, %v1261_v59  ;;  %v4151_v15 = vmul.f32 %v4894_v28, %v1262_v32  ;;  %v1482_v7 = vadd.f32 %v3560_v33, %v1470_v20  ;;  %v1492_v43 = vadd.f32 %v3687_v57, %v1486_v53  ;;  %v1273_v32 = vpop.permute.xlu2 %1272 }
 0x415   : > { %v1390_v13 = vadd.f32 %v1388_v60, %v1378_v36  ;;  %v4895_v30 = vstv %s3853_s14  ;;  %v4896_v37 = vstv %s3869_s21  ;;  %v1732_v26 = vadd.f32 %v1730_v58, %v1720_v19  ;;  %v1271_v3 = vpop.permute.xlu1 %1270  ;;  %s4941_s14 = smov 16  }
 0x416   : > { %v1394_v0 = vmul.f32 %v4895_v30, %v4151_v15  ;;  %v1595_v54 = vmul.f32 %v4896_v37, %v4147_v22  ;;  %v1591_v9 = vadd.f32 %v1589_v47, %v1579_v24  ;;  %v1389_v11 = vadd.f32 %v1387_v44, %v1377_v25  ;;  %v4906_v44 = vld [vmem:[#allocation41_spill] sm:$0xff] }
 0x417   : > { %v4897_v18 = vmov %v4895_v30  ;;  %v4898_v33 = vstv %s3907_s8  ;;  %v1742_v53 = vadd.f32 %v4901_v17, %v1736_v1  ;;  %v4902_v52 = vstv %s3893_s30 }
 0x418   : > { %v1393_v5 = vmul.f32 %v4897_v18, %v4147_v22  ;;  %v1498_v57 = vmul.f32 %v4898_v33, %v4151_v15  ;;  %v1400_v60 = vadd.f32 %v4899_v56, %v1394_v0  ;;  %v1601_v16 = vadd.f32 %v4900_v8, %v1595_v54  ;;  %v4909_v54 = vld [vmem:[#allocation29_spill] sm:$0xff] }
 0x419   : > { %v1760_v19 = vmul.f32 %v4902_v52, %v4090_v29  ;;  %v1494_v47 = vadd.f32 %v1492_v43, %v1482_v7  ;;  %v4905_v51 = vstv %s3937_s1  ;;  %v1744_v6 = vadd.f32 %v1742_v53, %v1732_v26 }
 0x41a   : > { %v1399_v39 = vadd.f32 %v4903_v46, %v1393_v5  ;;  %v1504_v58 = vadd.f32 %v4904_v49, %v1498_v57  ;;  %v1772_v59 = vmul.f32 %v4905_v51, %v4151_v15  ;;  %v4184_v20 = vadd.f32 %v1400_v60, %v1390_v13 }
 0x41b   : > { %v4186_v1 = vadd.f32 %v1601_v16, %v1591_v9  ;;  %v1782_v28 = vstv %s4139_s11  ;;  %v1275_v36 = vsel %vm1274_vm14, %v1271_v3, %v1273_v32  ;;  %v1276_v24 = vsel %vm1274_vm14, %v1273_v32, %v1271_v3  ;;  %v4910_v9 = vld [vmem:[#allocation58_spill] sm:$0xff] }
 0x41c   : > { %v4193_v25 = vadd.f32 %v1399_v39, %v1389_v11  ;;  %v1766_v7 = vadd.f32 %v4906_v44, %v1760_v19  ;;  %v4907_v43 = vperm.slane %v3993_v50, 0  ;;  %v4908_v30 = vperm.slane %v3993_v50, 1 }
 0x41d   : > { %v4204_v37 = vadd.f32 %v1504_v58, %v1494_v47  ;;  %v1756_v26 = vadd.f32 %v4909_v54, %v1744_v6  ;;  %v1778_v11 = vadd.f32 %v4910_v9, %v1772_v59  ;;  %v4911_v18 = vstv %s3694_s13  ;;  %v4918_v58 = vld [vmem:[#allocation24_spill] sm:$0xff]  ;;  %v4919_v59 = vld [vmem:[#allocation36_spill] sm:$0xff]  ;;  %s4263_s13 = sld [smem:[#allocation3 + $0x2b]] }
 0x41e   : > { %v4198_v13 = vmul.f32 %v4907_v43, %v1275_v36  ;;  %v4202_v0 = vmul.f32 %v4908_v30, %v1276_v24  ;;  %v1439_v5 = vmul.f32 %v4911_v18, %v4028_v45  ;;  %v4912_v33 = vstv %s3713_s17  ;;  %v4920_v6 = vld [vmem:[#allocation42_spill] sm:$0xff]  ;;  %s4275_s17 = sld [smem:[#allocation3 + $0x2c]] }
 0x41f   : > { %v1449_v57 = vmul.f32 %v4912_v33, %v4036_v23  ;;  %v4913_v56 = vstv %s3823_s27  ;;  %v4914_v8 = vstv %s3919_s2  ;;  %v4915_v17 = vstv %s3925_s9  ;;  %s4307_s27 = sld [smem:[#allocation3 + $0xb0]] }
 0x420   : > { %v1461_v60 = vmul.f32 %v4913_v56, %v4093_v27  ;;  %v1406_v16 = vmul.f32 %v4914_v8, %v4202_v0  ;;  %v1607_v53 = vmul.f32 %v4915_v17, %v4198_v13  ;;  %v4916_v52 = vmov %v4914_v8  ;;  %v1327_v56 = vpop.permute.xlu1 %1326  ;;  %s4437_s2 = sld [smem:[#allocation3 + $0x19]] }
 0x421   : > { %v1405_v19 = vmul.f32 %v4916_v52, %v4198_v13  ;;  %v1786_v46 = vstv %s4165_s23  ;;  %v4917_v39 = vstv %s3960_s3  ;;  %v1768_v49 = vadd.f32 %v1766_v7, %v1756_v26  ;;  %s4966_s3 = sld [smem:[#allocation94_spill]] }
 0x422   : > { %v1510_v47 = vmul.f32 %v4917_v39, %v4202_v0  ;;  %v1445_v51 = vadd.f32 %v4918_v58, %v1439_v5  ;;  %v1455_v32 = vadd.f32 %v4919_v59, %v1449_v57  ;;  %v1784_v3 = vmul.f32 %v1782_v28, %v4202_v0  ;;  %v1325_v57 = vpop.permute.xlu0 %1324  ;;  %s5007_s23 = sld [smem:[#allocation97_spill]] }
 0x423   : > { %v1467_v36 = vadd.f32 %v4920_v6, %v1461_v60  ;;  %v4921_v24 = vstv %s3839_s24  ;;  %v4922_v43 = vstv %s3907_s8  ;;  %v4923_v9 = vmov %v4917_v39  ;;  %v4926_v60 = vld [vmem:[#allocation43_spill] sm:$0xff]  ;;  %s2900_s24 = smov 48   ;;  %s2901_s8 = smov 32  }
 0x424   : > { %v1485_v44 = vmul.f32 %v4921_v24, %v4087_v55  ;;  %v1497_v30 = vmul.f32 %v4922_v43, %v4147_v22  ;;  %v1457_v54 = vadd.f32 %v1455_v32, %v1445_v51  ;;  %v1509_v7 = vmul.f32 %v4923_v9, %v4198_v13 }
 0x425   : > { %v4924_v26 = vstv %s3722_s29  ;;  %v4925_v5 = vstv %s3739_s4  ;;  %v1780_v8 = vadd.f32 %v1778_v11, %v1768_v49  ;;  %v4927_v52 = vstv %s3882_s6  ;;  %v4929_v11 = vld [vmem:[#allocation26_spill] sm:$0xff]  ;;  %s4283_s29 = sld [smem:[#allocation3 + $0x2e]] }
 0x426   : > { %v1713_v18 = vmul.f32 %v4924_v26, %v4028_v45  ;;  %v1723_v33 = vmul.f32 %v4925_v5, %v4036_v23  ;;  %v1491_v17 = vadd.f32 %v4926_v60, %v1485_v44  ;;  %v1735_v39 = vmul.f32 %v4927_v52, %v4093_v27  ;;  %v4932_v5 = vld [vmem:[#allocation37_spill] sm:$0xff]  ;;  %s4297_s4 = sld [smem:[#allocation3 + $0x2f]] }
 0x427   : > { %v4928_v58 = vstv %s3893_s30  ;;  %v1328_v59 = vsel %vm1274_vm14, %v1325_v57, %v1327_v56  ;;  %v1329_v32 = vsel %vm1274_vm14, %v1327_v56, %v1325_v57  ;;  %v1469_v6 = vadd.f32 %v1467_v36, %v1457_v54  ;;  %v4933_v36 = vld [vmem:[#allocation31_spill] sm:$0xff]  ;;  %s4350_s6 = sld [smem:[#allocation3 + $0x27]] }
 0x428   : > { %v1759_v51 = vmul.f32 %v4928_v58, %v4087_v55  ;;  %v1719_v49 = vadd.f32 %v4929_v11, %v1713_v18  ;;  %v4930_v24 = vperm.slane %v3993_v50, 0  ;;  %v4931_v43 = vperm.slane %v3993_v50, 1  ;;  %v4934_v18 = vld [vmem:[#allocation44_spill] sm:$0xff]  ;;  %v4935_v60 = vld [vmem:[#allocation45_spill] sm:$0xff]  ;;  %s4361_s30 = sld [smem:[#allocation3 + $0x29]] }
 0x429   : > { %v1503_v26 = vadd.f32 %v3828_v31, %v1497_v30  ;;  %v1729_v57 = vadd.f32 %v4932_v5, %v1723_v33  ;;  %v1481_v54 = vadd.f32 %v4933_v36, %v1469_v6  ;;  %v1741_v56 = vadd.f32 %v4934_v18, %v1735_v39 }
 0x42a   : > { %v4267_v44 = vmul.f32 %v1328_v59, %v4930_v24  ;;  %v4271_v9 = vmul.f32 %v1329_v32, %v4931_v43  ;;  %v1765_v52 = vadd.f32 %v4935_v60, %v1759_v51  ;;  %v4936_v58 = vstv %s3937_s1 }
 0x42b   : > { %v1771_v59 = vmul.f32 %v4936_v58, %v4147_v22  ;;  %v4937_v50 = vstv %s3997_s15  ;;  %v1493_v6 = vadd.f32 %v1491_v17, %v1481_v54  ;;  %v1731_v24 = vadd.f32 %v1729_v57, %v1719_v49  ;;  %v4940_v57 = vld [vmem:[#allocation59_spill] sm:$0xff]  ;;  %s4471_s15 = sld [smem:[#allocation3 + $0x1b]] }
 0x42c   : > { %v1410_v32 = vmul.f32 %v4937_v50, %v4271_v9  ;;  %v1611_v31 = vmul.f32 %v1610_v4, %v4267_v44  ;;  %v4938_v30 = vmov %v4937_v50  ;;  %v1514_v39 = vmul.f32 %v1512_v42, %v4271_v9 }
 0x42d   : > { %v1409_v33 = vmul.f32 %v4938_v30, %v4267_v44  ;;  %v1788_v51 = vmul.f32 %v1786_v46, %v4271_v9  ;;  %v1513_v11 = vmul.f32 %v1512_v42, %v4267_v44  ;;  %v1505_v58 = vadd.f32 %v1503_v26, %v1493_v6  ;;  %v4945_v6 = vld [vmem:[#allocation48_spill] sm:$0xff] }
 0x42e   : > { %v1412_v43 = vadd.f32 %v1410_v32, %v1406_v16  ;;  %v1613_v5 = vadd.f32 %v1611_v31, %v1607_v53  ;;  %v1516_v18 = vadd.f32 %v1514_v39, %v1510_v47  ;;  %v1743_v50 = vadd.f32 %v1741_v56, %v1731_v24  ;;  %v4943_v32 = vld [vmem:[#allocation34_spill] sm:$0xff]  ;;  %v4944_v39 = vld [vmem:[#allocation46_spill] sm:$0xff] }
 0x42f   : > { %v1411_v36 = vadd.f32 %v1409_v33, %v1405_v19  ;;  %v1790_v60 = vadd.f32 %v1788_v51, %v1784_v3  ;;  %v1783_v17 = vmul.f32 %v1782_v28, %v4198_v13  ;;  %v1515_v53 = vadd.f32 %v1513_v11, %v1509_v7  ;;  %v4939_v3 = vld [vmem:[#allocation32_spill] sm:$0xff] }
 0x430   : > { %v1414_v42 = vadd.f32 %v1412_v43, %v4184_v20  ;;  %v1615_v49 = vadd.f32 %v1613_v5, %v4186_v1  ;;  %v1518_v19 = vadd.f32 %v1516_v18, %v4204_v37  ;;  %v1755_v26 = vadd.f32 %v4939_v3, %v1743_v50 }
 0x431   : > { %v1413_v16 = vadd.f32 %v1411_v36, %v4193_v25  ;;  %v1792_v47 = vadd.f32 %v1790_v60, %v1780_v8  ;;  %v1777_v54 = vadd.f32 %v4940_v57, %v1771_v59  ;;  %v1787_v20 = vmul.f32 %v1786_v46, %v4267_v44 }
 0x432   : > { %1417 = vrot.lane.b32.xlu0 %v1414_v42, %s2900_s24  ;;  %1617 = vrot.lane.b32.xlu1 %v1615_v49, %s4941_s14  ;;  %v4942_v1 = vstv %s3977_s10  ;;  %v1912_v25 = vstv %s4263_s13  ;;  %v1767_v7 = vadd.f32 %v1765_v52, %v1755_v26  ;;  %v1517_v43 = vadd.f32 %v1515_v53, %v1505_v58  ;;  %v4947_v42 = vld [vmem:[#allocation49_spill] sm:$0xff]  ;;  %v4949_v53 = vld [vmem:[#allocation38_spill] sm:$0xff]  ;;  %s4975_s13 = sld [smem:[#allocation95_spill]] }
 0x433   : > { %v1903_v28 = vmul.f32 %v4942_v1, %v4028_v45  ;;  %v1924_v37 = vstv %s4275_s17  ;;  %1415 = vrot.lane.b32.xlu2 %v1413_v16, %s2900_s24  ;;  %v1913_v8 = vmul.f32 %v1912_v25, %v4036_v23  ;;  %v1948_v46 = vstv %s4283_s29  ;;  %v4948_v16 = vld [vmem:[#allocation63_spill] sm:$0xff]  ;;  %s4987_s24 = sld [smem:[#allocation101_spill]] }
 0x434   : > { %v1925_v56 = vmul.f32 %v1924_v37, %v4093_v27  ;;  %v1789_v59 = vadd.f32 %v1787_v20, %v1783_v17  ;;  %v1949_v30 = vmul.f32 %v1948_v46, %v4087_v55  ;;  %v1960_v33 = vstv %s4297_s4  ;;  %s4986_s4 = sld [smem:[#allocation100_spill]] }
 0x435   : > { %v1909_v31 = vadd.f32 %v4943_v32, %v1903_v28  ;;  %v1779_v52 = vadd.f32 %v1777_v54, %v1767_v7  ;;  %v1919_v51 = vadd.f32 %v4944_v39, %v1913_v8  ;;  %v1961_v24 = vmul.f32 %v1960_v33, %v4147_v22  ;;  %s5009_s17 = sld [smem:[#allocation13_spill]] }
 0x436   : > { %v1931_v11 = vadd.f32 %v4945_v6, %v1925_v56  ;;  %v1972_v5 = vstv %s4305_s22  ;;  %v1976_v36 = vstv %s4307_s27  ;;  %v4946_v18 = vstv %s3657_s19  ;;  %s4373_s19 = sld [smem:[#allocation3 + $0xa9]] }
 0x437   : > { %v1538_v60 = vmul.f32 %v4946_v18, %v4032_v62  ;;  %v1791_v50 = vadd.f32 %v1789_v59, %v1779_v52  ;;  %v1921_v17 = vadd.f32 %v1919_v51, %v1909_v31  ;;  %v1955_v49 = vadd.f32 %v4947_v42, %v1949_v30  ;;  %v4955_v31 = vld [vmem:[#allocation47_spill] sm:$0xff]  ;;  %v4956_v52 = vld [vmem:[#allocation61_spill] sm:$0xff]  ;;  %s5010_s22 = sld [smem:[#allocation99_spill]] }
 0x438   : > { %v1967_v3 = vadd.f32 %v4948_v16, %v1961_v24  ;;  %v1977_v58 = vmul.f32 %v1976_v36, %v4267_v44  ;;  %v4950_v57 = vstv %s3677_s25  ;;  %v4951_v20 = vstv %s3793_s26  ;;  %s4954_s25 = smov 112   ;;  %v4958_v24 = vld [vmem:[#allocation39_spill] sm:$0xff]  ;;  %s4421_s26 = sld [smem:[#allocation3 + $0x15]] }
 0x439   : > { %v1544_v26 = vadd.f32 %v4949_v53, %v1538_v60  ;;  %v1548_v54 = vmul.f32 %v4950_v57, %v4040_v21  ;;  %v1560_v1 = vmul.f32 %v4951_v20, %v4096_v40  ;;  %v1933_v28 = vadd.f32 %v1931_v11, %v1921_v17 }
 0x43a   : > { %v1973_v7 = vmul.f32 %v1972_v5, %v4198_v13  ;;  %v4952_v8 = vstv %s3811_s7  ;;  %v4953_v59 = vstv %s3869_s21  ;;  %1521 = vrot.lane.b32.xlu0 %v1518_v19, %s2901_s8  ;;  %1795 = vrot.lane.b32.xlu1 %v1792_v47, %s4954_s25  ;;  %s2902_s7 = smov 80   ;;  %s4432_s21 = sld [smem:[#allocation3 + $0x17]]  ;;  %vm1523_vm12 = vcmp.lt.s32.totalorder %v3161_v14, 32 }
 0x43b   : > { %v1584_v56 = vmul.f32 %v4952_v8, %v4090_v29  ;;  %v1596_v32 = vmul.f32 %v4953_v59, %v4151_v15  ;;  %v1554_v30 = vadd.f32 %v4955_v31, %v1548_v54  ;;  %v1566_v39 = vadd.f32 %v4956_v52, %v1560_v1  ;;  %1519 = vrot.lane.b32.xlu2 %v1517_v43, %s2901_s8  ;;  %v4961_v59 = vld [vmem:[#allocation50_spill] sm:$0xff]  ;;  %s4990_s8 = sld [smem:[#allocation81_spill]] }
 0x43c   : > { %v4957_v51 = vstv %s3925_s9  ;;  %v1804_v11 = vstv %s4327_s16  ;;  %v1945_v18 = vadd.f32 %v4958_v24, %v1933_v28  ;;  %v1979_v60 = vadd.f32 %v1977_v58, %v1973_v7  ;;  %v4960_v7 = vld [vmem:[#allocation60_spill] sm:$0xff] }
 0x43d   : > { %v1608_v6 = vmul.f32 %v4957_v51, %v4202_v0  ;;  %v1590_v17 = vadd.f32 %v3861_v38, %v1584_v56  ;;  %v1602_v19 = vadd.f32 %v3898_v48, %v1596_v32  ;;  %v1556_v42 = vadd.f32 %v1554_v30, %v1544_v26  ;;  %v4959_v38 = vld [vmem:[#allocation51_spill] sm:$0xff] }
 0x43e   : > { %v1806_v47 = vmul.f32 %v1804_v11, %v4032_v62  ;;  %v1814_v16 = vstv %s4336_s18  ;;  %v1826_v53 = vstv %s4343_s12  ;;  %v1957_v57 = vadd.f32 %v1955_v49, %v1945_v18  ;;  %s4988_s18 = sld [smem:[#allocation96_spill]] }
 0x43f   : > { %v1612_v54 = vmul.f32 %v1610_v4, %v4271_v9  ;;  %v1816_v43 = vmul.f32 %v1814_v16, %v4040_v21  ;;  %v1828_v20 = vmul.f32 %v1826_v53, %v4096_v40  ;;  %v1568_v58 = vadd.f32 %v1566_v39, %v1556_v42  ;;  %s5011_s12 = sld [smem:[#allocation103_spill]] }
 0x440   : > { %v1812_v1 = vadd.f32 %v4959_v38, %v1806_v47  ;;  %v1850_v48 = vstv %s4350_s6  ;;  %v1862_v26 = vstv %s4357_s5  ;;  %v1969_v28 = vadd.f32 %v1967_v3, %v1957_v57  ;;  %s4989_s5 = sld [smem:[#allocation102_spill]] }
 0x441   : > { %v1822_v8 = vadd.f32 %v4960_v7, %v1816_v43  ;;  %v1834_v56 = vadd.f32 %v3872_v10, %v1828_v20  ;;  %v1852_v49 = vmul.f32 %v1850_v48, %v4090_v29  ;;  %v1580_v32 = vadd.f32 %v4961_v59, %v1568_v58  ;;  %v4964_v20 = vld [vmem:[#allocation53_spill] sm:$0xff] }
 0x442   : > { %v1864_v4 = vmul.f32 %v1862_v26, %v4151_v15  ;;  %v1874_v31 = vstv %s4361_s30  ;;  %v1878_v30 = vstv %s4373_s19  ;;  %v1981_v52 = vadd.f32 %v1979_v60, %v1969_v28  ;;  %1793 = vrot.lane.b32.xlu0 %v1791_v50, %s4954_s25 }
 0x443   : > { %v1614_v51 = vadd.f32 %v1612_v54, %v1608_v6  ;;  %v1824_v39 = vadd.f32 %v1822_v8, %v1812_v1  ;;  %v4962_v24 = vstv %s3617_s20  ;;  %v1592_v3 = vadd.f32 %v1590_v17, %v1580_v32  ;;  %s4427_s20 = sld [smem:[#allocation3 + $0x16]]  ;;  %v4963_v54 = vld [vmem:[#allocation54_spill] sm:$0xff] }
 0x444   : > { %v4415_v18 = vmul.f32 %v4962_v24, %v3709_v41  ;;  %v1876_v10 = vmul.f32 %v1874_v31, %v4202_v0  ;;  %v1880_v42 = vmul.f32 %v1878_v30, %v4271_v9  ;;  %v1805_v47 = vmul.f32 %v1804_v11, %v4028_v45  ;;  %1983 = vrot.lane.b32.xlu1 %v1981_v52, %s2902_s7  ;;  %v4967_v32 = vld [vmem:[#allocation62_spill] sm:$0xff] }
 0x445   : > { %v1836_v6 = vadd.f32 %v1834_v56, %v1824_v39  ;;  %v1815_v60 = vmul.f32 %v1814_v16, %v4036_v23  ;;  %v1827_v41 = vmul.f32 %v1826_v53, %v4093_v27  ;;  %v1851_v57 = vmul.f32 %v1850_v48, %v4087_v55  ;;  %v4970_v24 = vld [vmem:[#allocation74_spill] sm:$0xff] }
 0x446   : > { %v1604_v50 = vadd.f32 %v1602_v19, %v1592_v3  ;;  %v1858_v17 = vadd.f32 %v3885_v61, %v1852_v49  ;;  %v1870_v11 = vadd.f32 %v3928_v63, %v1864_v4  ;;  %v1811_v43 = vadd.f32 %v4963_v54, %v1805_v47  ;;  %v4971_v3 = vld [vmem:[#allocation64_spill] sm:$0xff] }
 0x447   : > { %v1848_v58 = vadd.f32 %v4964_v20, %v1836_v6  ;;  %v1882_v16 = vadd.f32 %v1880_v42, %v1876_v10  ;;  %v1821_v53 = vadd.f32 %v3875_v35, %v1815_v60  ;;  %v1833_v19 = vadd.f32 %v3910_v12, %v1827_v41  ;;  %v2087_v12 = vld [vmem:[%s4966_s3] sm:$0xf]  ;;  %s5002_s3 = sld [smem:[#allocation98_spill]] }
 0x448   : > { %v1616_v61 = vadd.f32 %v1614_v51, %v1604_v50  ;;  %v1857_v38 = vadd.f32 %v3913_v2, %v1851_v57  ;;  %v1863_v63 = vmul.f32 %v1862_v26, %v4147_v22  ;;  %v1879_v1 = vmul.f32 %v1878_v30, %v4267_v44  ;;  %v4972_v47 = vld [vmem:[#allocation76_spill] sm:$0xff] }
 0x449   : > { %v1860_v48 = vadd.f32 %v1858_v17, %v1848_v58  ;;  %v1823_v28 = vadd.f32 %v1821_v53, %v1811_v43  ;;  %v4965_v7 = vstv %s3977_s10  ;;  %v1914_v35 = vmul.f32 %v1912_v25, %v4040_v21  ;;  %s4467_s10 = sld [smem:[#allocation3 + $0x1a]]  ;;  %v4973_v53 = vld [vmem:[#allocation65_spill] sm:$0xff] }
 0x44a   : > { %v1904_v8 = vmul.f32 %v4965_v7, %v4032_v62  ;;  %1619 = vrot.lane.b32.xlu2 %v1616_v61, %s4941_s14  ;;  %v1875_v2 = vmul.f32 %v1874_v31, %v4198_v13  ;;  %v1926_v26 = vmul.f32 %v1924_v37, %v4096_v40  ;;  %v1950_v56 = vmul.f32 %v1948_v46, %v4090_v29  ;;  %v4968_v31 = vld [vmem:[#allocation72_spill] sm:$0xff]  ;;  %v4969_v37 = vld [vmem:[#allocation73_spill] sm:$0xff]  ;;  %v4974_v61 = vld [vmem:[#allocation66_spill] sm:$0xff]  ;;  %s2696_s14 = sshll.u32 %s5009_s17, 3 }
 0x44b   : > { %v1962_v49 = vmul.f32 %v1960_v33, %v4151_v15  ;;  %v1872_v59 = vadd.f32 %v1870_v11, %v1860_v48  ;;  %v1835_v25 = vadd.f32 %v1833_v19, %v1823_v28  ;;  %v1920_v30 = vadd.f32 %v3904_v34, %v1914_v35  ;;  %v4978_v48 = vld [vmem:[#allocation71_spill] sm:$0xff]  ;;  %s2460_s6 = scalar_lea.hbm %s5011_s12, %s2696_s14 }
 0x44c   : > { %v1910_v4 = vadd.f32 %v4967_v32, %v1904_v8  ;;  %v1869_v52 = vadd.f32 %v4968_v31, %v1863_v63  ;;  %v1881_v51 = vadd.f32 %v1879_v1, %v1875_v2  ;;  %v1932_v39 = vadd.f32 %v4969_v37, %v1926_v26  ;;  %2090 = vperm.xlu1 %2784, %v2087_v12   ;;  %v4976_v63 = vld [vmem:[#allocation67_spill] sm:$0xff]  ;;  %v4977_v1 = vld [vmem:[#allocation70_spill] sm:$0xff]  ;;  %v4980_v12 = vld [vmem:[#allocation77_spill] sm:$0xff] }
 0x44d   : > { %v1956_v46 = vadd.f32 %v4970_v24, %v1950_v56  ;;  %v1884_v33 = vadd.f32 %v1882_v16, %v1872_v59  ;;  %v1847_v10 = vadd.f32 %v4971_v3, %v1835_v25  ;;  %v1968_v6 = vadd.f32 %v4972_v47, %v1962_v49  ;;  %v4979_v28 = vld [vmem:[#allocation75_spill] sm:$0xff]  ;;  %v4981_v32 = vld [vmem:[#allocation78_spill] sm:$0xff]  ;;  %v4984_v3 = vld [vmem:[#allocation68_spill] sm:$0xff] }
 0x44e   : > { %v1922_v42 = vadd.f32 %v1920_v30, %v1910_v4  ;;  %v1974_v34 = vmul.f32 %v1972_v5, %v4202_v0  ;;  %v1628_v60 = vstv %s4421_s26  ;;  %v1638_v41 = vstv %s4427_s20  ;;  %v4985_v47 = vld [vmem:[#allocation69_spill] sm:$0xff] }
 0x44f   : > { %v1650_v57 = vstv %s4432_s21  ;;  %1887 = vrot.lane.b32.xlu0 %v1884_v33, %s2903_s0  ;;  %v1859_v50 = vadd.f32 %v1857_v38, %v1847_v10  ;;  %v1629_v11 = vmul.f32 %v1628_v60, %v4028_v45  ;;  %v1674_v54 = vstv %s4437_s2  ;;  %v4983_v33 = vld [vmem:[#allocation80_spill] sm:$0xff]  ;;  %s5001_s2 = sld [smem:[#allocation92_spill]] }
 0x450   : > { %v1934_v17 = vadd.f32 %v1932_v39, %v1922_v42  ;;  %v1630_v43 = vmul.f32 %v1628_v60, %v4032_v62  ;;  %v1639_v20 = vmul.f32 %v1638_v41, %v4036_v23  ;;  %v1640_v58 = vmul.f32 %v1638_v41, %v4040_v21  ;;  %v2156_v62 = vld [vmem:[%s4975_s13] sm:$0xf]  ;;  %s5008_s13 = sld [smem:[#allocation10_spill]] }
 0x451   : > { %v1651_v16 = vmul.f32 %v1650_v57, %v4093_v27  ;;  %v1871_v5 = vadd.f32 %v1869_v52, %v1859_v50  ;;  %v1635_v38 = vadd.f32 %v4974_v61, %v1629_v11  ;;  %v1652_v45 = vmul.f32 %v1650_v57, %v4096_v40 }
 0x452   : > { %v1946_v19 = vadd.f32 %v4973_v53, %v1934_v17  ;;  %v1636_v23 = vadd.f32 %v4976_v63, %v1630_v43  ;;  %v1645_v21 = vadd.f32 %v4977_v1, %v1639_v20  ;;  %v1646_v27 = vadd.f32 %v4978_v48, %v1640_v58  ;;  %v2433_v20 = vld [vmem:[%s4989_s5] sm:$0xf] }
 0x453   : > { %v1657_v7 = vadd.f32 %v4979_v28, %v1651_v16  ;;  %v1883_v8 = vadd.f32 %v1881_v51, %v1871_v5  ;;  %v1978_v35 = vmul.f32 %v1976_v36, %v4271_v9  ;;  %v1658_v2 = vadd.f32 %v4980_v12, %v1652_v45  ;;  %v4982_v51 = vld [vmem:[#allocation79_spill] sm:$0xff]  ;;  %v1432_v5 = vpop.permute.xlu1 %1431  ;;  %v2794_v53 = vld [vmem:[%s4990_s8] sm:$0x3]  ;;  %s2464_s8 = sshll.u32 %s2460_s6, 4  ;;  %s2465_s8 = int_to_ptr.hbm [resolvable:$true] %s2464_s8 }
 0x454   : > { %v1675_v40 = vmul.f32 %v1674_v54, %v4087_v55  ;;  %v1647_v26 = vadd.f32 %v1645_v21, %v1635_v38  ;;  %v1648_v56 = vadd.f32 %v1646_v27, %v1636_v23  ;;  %v1676_v49 = vmul.f32 %v1674_v54, %v4090_v29  ;;  %2293 = vperm.xlu1 %2784, %v2156_v62   ;;  %s2824_s26 = sshra.s32 %s2465_s8, 4  ;;  %s2825_s26 = int_to_ptr.hbm [resolvable:$true] %s2824_s26 }
 0x455   : > { %v1686_v59 = vstv %s4467_s10  ;;  %1885 = vrot.lane.b32.xlu2 %v1883_v8, %s2903_s0  ;;  %v1958_v25 = vadd.f32 %v1956_v46, %v1946_v19  ;;  %v1698_v31 = vstv %s4471_s15  ;;  %v1980_v24 = vadd.f32 %v1978_v35, %v1974_v34  ;;  %s5003_s0 = sld [smem:[#allocation93_spill]]  ;;  %p2831_p3 = scmp.lt.s32.totalorder %s2825_s26, %s5011_s12 }
 0x456   : > { %v1681_v4 = vadd.f32 %v4981_v32, %v1675_v40  ;;  %v1687_v30 = vmul.f32 %v1686_v59, %v4147_v22  ;;  %v1659_v52 = vadd.f32 %v1657_v7, %v1647_v26  ;;  %v1660_v36 = vadd.f32 %v1658_v2, %v1648_v56  ;;  %s717_s27 = sand.u32 1, %s5008_s13  }
 0x457   : > { %v1682_v37 = vadd.f32 %v4982_v51, %v1676_v49  ;;  %v1688_v55 = vmul.f32 %v1686_v59, %v4151_v15  ;;  %v1970_v39 = vadd.f32 %v1968_v6, %v1958_v25  ;;  %v1702_v46 = vstv %s4485_s28  ;;  %v2378_v15 = vld [vmem:[%s4986_s4] sm:$0xf]  ;;  %s2449_s25 = scalar_lea.sflag [#allocation4], %s717_s27 }
 0x458   : > { %v1693_v29 = vadd.f32 %v4983_v33, %v1687_v30  ;;  %v1672_v10 = vadd.f32 %v4984_v3, %v1660_v36  ;;  %v1671_v60 = vadd.f32 %v4985_v47, %v1659_v52  ;;  %v1699_v22 = vmul.f32 %v1698_v31, %v4198_v13  ;;  %v4992_v33 = vld [vmem:[#allocation20_spill] sm:$0xff] }
 0x459   : > { %v1694_v42 = vadd.f32 %v4415_v18, %v1688_v55  ;;  %v1700_v41 = vmul.f32 %v1698_v31, %v4202_v0  ;;  %v1703_v57 = vmul.f32 %v1702_v46, %v4267_v44  ;;  %v1704_v50 = vmul.f32 %v1702_v46, %v4271_v9  ;;  %v2142_v44 = vld [vmem:[%s4987_s24] sm:$0xf]  ;;  %s2542_s24 = sshll.u32 %s717_s27, 3 }
 0x45a   : > { %v1684_v6 = vadd.f32 %v1682_v37, %v1672_v10  ;;  %v1683_v34 = vadd.f32 %v1681_v4, %v1671_v60  ;;  %v1982_v17 = vadd.f32 %v1980_v24, %v1970_v39  ;;  %v2157_v9 = vld [vmem:[%s4988_s18] sm:$0xf]  ;;  %v2904_v58 = vmov 0.00390625   ;;  %s719_s30 = scalar_lea.vmem [#allocation6], %s2542_s24 }
 0x45b   : > { %v1705_v11 = vadd.f32 %v1703_v57, %v1699_v22  ;;  %v1706_v18 = vadd.f32 %v1704_v50, %v1700_v41  ;;  %2011 = vmatpush.msra.mxu0 %v2904_v58  ;;  %2031 = vmatpush.msra.mxu1 %v2904_v58  ;;  %v727_v19 = vadd.s32 4294967293, %v2794_v53  ;;  %v733_v38 = vadd.s32 4294967294, %v2794_v53  ;;  %v4995_v50 = vld [vmem:[#allocation21_spill] sm:$0xff]  ;;  %s2462_s19 = sshll.u32 %s719_s30, 4  ;;  %s2463_s19 = int_to_ptr.vmem [resolvable:$true] %s2462_s19 }
 0x45c   : > { %v1696_v54 = vadd.f32 %v1694_v42, %v1684_v6  ;;  %v1695_v43 = vadd.f32 %v1693_v29, %v1683_v34  ;;  %2381 = vperm.xlu1 %2784, %v2378_v15   ;;  %v4991_v63 = vmov 0.0   ;;  %v751_v26 = vadd.s32 2, %v2794_v53 }
 0x45d   : > { %1985 = vrot.lane.b32.xlu2 %v1982_v17, %s2902_s7  ;;  %2012 = vmatpush.msra.mxu0 %v2904_v58  ;;  %vm728_vm15 = vcmp.ge.s32.totalorder %v727_v19, 0  ;;  %vm729_vm4 = vcmp.lt.s32.totalorder %v727_v19, 16  ;;  %vm734_vm6 = vcmp.ge.s32.totalorder %v733_v38, 0  ;;  %vm735_vm7 = vcmp.lt.s32.totalorder %v733_v38, 16  ;;  %s5000_s7 = sld [smem:[#allocation91_spill]] }
 0x45e   : > { %v4522_v13 = vadd.f32 %v1706_v18, %v1696_v54  ;;  %v4524_v0 = vadd.f32 %v1705_v11, %v1695_v43  ;;  %2032 = vmatpush.msra.mxu1 %v2904_v58  ;;  %vm730_vm8 = vmand %vm728_vm15, %vm729_vm4  ;;  %v1434_v56 = vperm.slane %v1432_v5, 0  ;;  %v757_v25 = vadd.s32 3, %v2794_v53 }
 0x45f   : > { %2013 = vmatpush.msra.mxu0 %v2904_v58  ;;  %vm736_vm10 = vmand %vm734_vm6, %vm735_vm7  ;;  %v2545_v23 = vsel %vm730_vm8, 1.0, %v4991_v63  ;;  %vm752_vm13 = vcmp.ge.s32.totalorder %v751_v26, 0  ;;  %vm753_vm2 = vcmp.lt.s32.totalorder %v751_v26, 16  ;;  %v4993_v29 = vperm.slane %v4992_v33, 0 }
 0x460   : > { %2033 = vmatpush.msra.mxu1 %v2904_v58  ;;  %v2546_v21 = vsel %vm736_vm10, 1.0, %v4991_v63  ;;  %v1423_v27 = vperm.slane %v2545_v23, 0  ;;  %v1424_v28 = vperm.slane %v2545_v23, 1  ;;  %vm758_vm3 = vcmp.ge.s32.totalorder %v757_v25, 0  ;;  %vm754_vm15 = vmand %vm752_vm13, %vm753_vm2 }
 0x461   : > { %2014 = vmatpush.msra.mxu0 %v2904_v58  ;;  %v1527_v35 = vperm.slane %v2546_v21, 0  ;;  %v1528_v12 = vperm.slane %v2546_v21, 1  ;;  %vm759_vm14 = vcmp.lt.s32.totalorder %v757_v25, 16  ;;  %v4994_v10 = vperm.slane %v4992_v33, 1  ;;  %v2312_v25 = vld [vmem:[%s5002_s3] sm:$0xff] }
 0x462   : > { %2034 = vmatpush.msra.mxu1 %v2904_v58  ;;  %vm760_vm4 = vmand %vm758_vm3, %vm759_vm14  ;;  %v2549_v60 = vsel %vm754_vm15, 1.0, %v4991_v63  ;;  %vm1889_vm6 = vcmp.lt.s32.totalorder %v3161_v14, 96  ;;  %v4996_v15 = vperm.slane %v4995_v50, 0  ;;  %v4997_v34 = vperm.slane %v4995_v50, 1 }
 0x463   : > { %2015 = vmatpush.msra.mxu0 %v2904_v58  ;;  %v2550_v57 = vsel %vm760_vm4, 1.0, %v4991_v63  ;;  %v1893_v18 = vperm.slane %v2549_v60, 0  ;;  %v1894_v54 = vperm.slane %v2549_v60, 1  ;;  %v2051_v26 = vld [vmem:[%s5000_s7] sm:$0xf]  ;;  %v5005_v60 = vmov 0.25  }
 0x464   : > { %2035 = vmatpush.msra.mxu1 %v2904_v58  ;;  %s2826_s7 = scalar_lea.hbm %s2825_s26, 8 }
 0x465   : > { %2145 = vperm.xlu2 %2783, %v2142_v44   ;;  %2016 = vmatpush.msra.mxu0 %v2904_v58  ;;  %p2827_p0 = scmp.ne.s32.totalorder %s2825_s26, %s2826_s7 }
 0x466   : > { %2036 = vmatpush.msra.mxu1 %v2904_v58 }
 0x467   : > { %2017 = vmatpush.msra.mxu0 %v2904_v58  ;;  %p2828_p1 = pnand %p2827_p0, %p3066_p5 }
 0x468   : > { %2037 = vmatpush.msra.mxu1 %v2904_v58 }
 0x469   : > { %2018 = vmatpush.msra.mxu0 %v2904_v58  ;;  %p2829_p2 = pneg %p2828_p1 }
 0x46a   : > { %2038 = vmatpush.msra.mxu1 %v2904_v58 }
 0x46b   : > { %2019 = vmatpush.msra.mxu0 %v2904_v58 }
 0x46c   : > { %2039 = vmatpush.msra.mxu1 %v2904_v58 }
 0x46d   : > { %2303 = vperm.xlu2 %2783, %v2157_v9   ;;  %2020 = vmatpush.msra.mxu0 %v2904_v58 }
 0x46e   : > { %2040 = vmatpush.msra.mxu1 %v2904_v58 }
 0x46f   : > { %2021 = vmatpush.msra.mxu0 %v2904_v58 }
 0x470   : > { %2041 = vmatpush.msra.mxu1 %v2904_v58 }
 0x471   : > { %2022 = vmatpush.msra.mxu0 %v2904_v58 }
 0x472   : > { %2042 = vmatpush.msra.mxu1 %v2904_v58 }
 0x473   : > { %2023 = vmatpush.msra.mxu0 %v2904_v58 }
 0x474   : > { %2043 = vmatpush.msra.mxu1 %v2904_v58 }
 0x475   : > { %2436 = vperm.xlu2 %2783, %v2433_v20   ;;  %2024 = vmatpush.msra.mxu0 %v2904_v58  ;;  %v1991_v20 = vperm.slane %v2550_v57, 0 }
 0x476   : > { %2044 = vmatpush.msra.mxu1 %v2904_v58 }
 0x477   : > { %2025 = vmatpush.msra.mxu0 %v2904_v58 }
 0x478   : > { %2045 = vmatpush.msra.mxu1 %v2904_v58 }
 0x479   : > { %2026 = vmatpush.msra.mxu0 %v2904_v58 }
 0x47a   : > { %2046 = vmatpush.msra.mxu1 %v2904_v58  ;;  %v1992_v58 = vperm.slane %v2550_v57, 1 }
 0x48d   : > { %v1416_v16 = vpop.permute.xlu2 %1415 }
 0x495   : > { %v1520_v61 = vpop.permute.xlu2 %1519 }
 0x4a4   : > { %v1418_v45 = vpop.permute.xlu0 %1417  ;;  %v1618_v62 = vpop.permute.xlu1 %1617 }
 0x4a5   : > { %v1620_v1 = vpop.permute.xlu2 %1619  ;;  %v1420_v7 = vsel %vm1419_vm11, %v1416_v16, %v1418_v45  ;;  %v1421_v8 = vsel %vm1419_vm11, %v1418_v45, %v1416_v16 }
 0x4a6   : > { %v1427_v49 = vmul.f32 %v1423_v27, %v1421_v8  ;;  %v1428_v59 = vmul.f32 %v1424_v28, %v1420_v7  ;;  %v1621_v37 = vsel %vm1077_vm5, %v1618_v62, %v1620_v1  ;;  %v1622_v55 = vsel %vm1077_vm5, %v1620_v1, %v1618_v62  ;;  %v4999_v8 = vld [vmem:[#allocation23_spill] sm:$0xff] }
 0x4a7   : > { %v1623_v3 = vmul.f32 %v1622_v55, %v4993_v29  ;;  %v1624_v42 = vmul.f32 %v1621_v37, %v4994_v10  ;;  %vm1987_vm5 = vcmp.lt.s32.totalorder %v3161_v14, 80  ;;  %v5004_v10 = vld [vmem:[#allocation18_spill] sm:$0xff] }
 0x4a8   : > { %v1435_v31 = vadd.f32 %v1434_v56, %v1427_v49  ;;  %v1436_v52 = vadd.f32 %v1434_v56, %v1428_v59  ;;  %v2052_v56 = vld [vmem:[%s5001_s2] sm:$0xf]  ;;  %s2830_s2 = scalar_lea.hbm %s5011_s12, 16 }
 0x4a9   : > { %p2832_p4 = scmp.lt.s32.totalorder %s2830_s2, %s2826_s7 }
 0x4ab   : > { %p2833_p7 = por %p2832_p4, %p2831_p3 }
 0x4ac   : > { %v1522_v48 = vpop.permute.xlu0 %1521  ;;  %v1796_v30 = vpop.permute.xlu1 %1795 }
 0x4ad   : > { %v1524_v2 = vsel %vm1523_vm12, %v1520_v61, %v1522_v48  ;;  %v1525_v40 = vsel %vm1523_vm12, %v1522_v48, %v1520_v61  ;;  %p2834_p8 = pnand %p2833_p7, %p2829_p2 }
 0x4ae   : > { %v1531_v32 = vmul.f32 %v1527_v35, %v1525_v40  ;;  %v1532_v4 = vmul.f32 %v1528_v12, %v1524_v2 }
 0x4af   : > { %v1886_v36 = vpop.permute.xlu2 %1885 }
 0x4b0   : > { %v1533_v39 = vadd.f32 %v1531_v32, %v1435_v31  ;;  %v1534_v24 = vadd.f32 %v1532_v4, %v1436_v52  ;;  %v2086_v31 = vld [vmem:[%s5003_s0] sm:$0xf] }
 0x4b2   : > { %v1625_v22 = vadd.f32 %v1623_v3, %v1533_v39  ;;  %v1626_v41 = vadd.f32 %v1624_v42, %v1534_v24 }
 0x4b4   : > { %v1794_v51 = vpop.permute.xlu0 %1793  ;;  %v1709_v44 = vadd.f32 %v4524_v0, %v1625_v22  ;;  %v1710_v9 = vadd.f32 %v4522_v13, %v1626_v41  ;;  %v4998_v13 = vld [vmem:[#allocation22_spill] sm:$0xff] }
 0x4b5   : > { %v1797_v46 = vsel %vm1144_vm9, %v1794_v51, %v1796_v30  ;;  %v1798_v47 = vsel %vm1144_vm9, %v1796_v30, %v1794_v51 }
 0x4b6   : > { %v1799_v6 = vmul.f32 %v1797_v46, %v4996_v15  ;;  %v1800_v17 = vmul.f32 %v1798_v47, %v4997_v34  ;;  %v1984_v11 = vpop.permute.xlu1 %1983 }
 0x4b7   : > { %v1986_v43 = vpop.permute.xlu2 %1985 }
 0x4b8   : > { %v1988_v5 = vsel %vm1987_vm5, %v1984_v11, %v1986_v43  ;;  %v1989_v53 = vsel %vm1987_vm5, %v1986_v43, %v1984_v11  ;;  %v1801_v61 = vadd.f32 %v1799_v6, %v1709_v44  ;;  %v1802_v38 = vadd.f32 %v1800_v17, %v1710_v9 }
 0x4b9   : > { %v1995_v63 = vmul.f32 %v1991_v20, %v1988_v5  ;;  %v1996_v23 = vmul.f32 %v1992_v58, %v1989_v53 }
 0x4be   : > { %v2091_v52 = vpop.permute.xlu1 %2090 }
 0x4bf   : > { %v2146_v39 = vpop.permute.xlu2 %2145 }
 0x4c1   : > { %v1888_v16 = vpop.permute.xlu0 %1887 }
 0x4c2   : > { %v1890_v14 = vsel %vm1889_vm6, %v1886_v36, %v1888_v16  ;;  %v1891_v19 = vsel %vm1889_vm6, %v1888_v16, %v1886_v36 }
 0x4c3   : > { %v1897_v45 = vmul.f32 %v1893_v18, %v1890_v14  ;;  %v1898_v62 = vmul.f32 %v1894_v54, %v1891_v19 }
 0x4c5   : > { %v1899_v1 = vadd.f32 %v1897_v45, %v1801_v61  ;;  %v1900_v21 = vadd.f32 %v1898_v62, %v1802_v38 }
 0x4c7   : > { %v1997_v48 = vadd.f32 %v1995_v63, %v1899_v1  ;;  %v1998_v27 = vadd.f32 %v1996_v23, %v1900_v21 }
 0x4c9   : > { %v2007_v0 = vperm.slane %v1997_v48, 0  ;;  %v2008_v28 = vperm.slane %v1998_v27, 0  ;;  %v2294_v48 = vpop.permute.xlu1 %2293 }
 0x4cb   : > { %v2009_v7 = vmul.f32 %v2007_v0, %v4998_v13  ;;  %v2010_v35 = vmul.f32 %v2008_v28, %v4999_v8  ;;  %v2304_v28 = vpop.permute.xlu2 %2303 }
 0x4cd   : > { %2027 = vmatmul.f32.vlgmr.msra.gmra.mxu0 %v2009_v7  ;;  %2047 = vmatmul.f32.vlgmr.msra.gmra.mxu1 %v2010_v35 }
 0x54a   : > { %v2028_v12 = vpop.f32.mrf.mxu0  ;;  %v2048_v2 = vpop.f32.mrf.mxu1 }
 0x54b   : > { %v2049_v40 = vadd.f32 %v2048_v2, %v2028_v12 }
 0x54d   : > { %2668 = vmatpush.msk.msra.mxu2 %vm810_vm0, %v2049_v40 }
 0x54e   : > { %2669 = vmatmul.msk.f32.vlgmr.msra.gmra.mxu2 %vm806_vm1, %v2051_v26  ;;  %v2311_v26 = vld [vmem:[%s5007_s23] sm:$0xff] }
 0x5d1   : > { %v2076_v49 = vpop.f32.mrf.mxu2 }
 0x5d2   : > { %v2077_v59 = vadd.f32 %v2076_v49, %v2052_v56 }
 0x5d4   : > { %2081 = vperm.xlu0 %2785, %v2077_v59  }
 0x5dc   : > { %2315 = vperm.xlu0 %2785, %v2312_v25  }
 0x646   : > { %v2082_v32 = vpop.permute.xlu0 %2081 }
 0x647   : > { %v2084_v4 = vmul.f32 %v2082_v32, %v2009_v7  ;;  %v2085_v30 = vmul.f32 %v2082_v32, %v2010_v35  ;;  %v5006_v7 = vld [vmem:[#allocation19_spill] sm:$0xff] }
 0x648   : > { %v2298_v8 = vperm.slane %v2294_v48, %v5006_v7  ;;  %v2308_v12 = vperm.slane %v2304_v28, %v5006_v7 }
 0x649   : > { %2670 = vmatpush.msk.msra.mxu3 %vm810_vm0, %v2084_v4  ;;  %2672 = vmatpush.msk.msrb.mxu2 %vm810_vm0, %v2085_v30 }
 0x64a   : > { %2671 = vmatmul.msk.f32.vlgmr.msra.gmra.mxu3 %vm806_vm1, %v2086_v31  ;;  %2673 = vmatmul.msk.f32.vlgmr.msrb.gmra.mxu2 %vm806_vm1, %v2086_v31  ;;  %v2377_v31 = vld [vmem:[%s5010_s22] sm:$0xf] }
 0x64e   : > { %v2316_v59 = vpop.permute.xlu0 %2315 }
 0x6cd   : > { %v2119_v36 = vpop.f32.mrf.mxu3  ;;  %v2139_v51 = vpop.f32.mrf.mxu2 }
 0x6ce   : > { %v2120_v37 = vadd.f32 %v2119_v36, %v2091_v52  ;;  %v2140_v55 = vadd.f32 %v2139_v51, %v2091_v52 }
 0x6d0   : > { %v2149_v24 = vmul.f32 %v2146_v39, %v2140_v55  ;;  %v2148_v33 = vmul.f32 %v2146_v39, %v2120_v37  ;;  %v2382_v55 = vpop.permute.xlu1 %2381 }
 0x6d2   : > { %v2152_v29 = vrot.slane %v2149_v24, 4 }
 0x6d4   : > { %v2153_v3 = vsel %vm810_vm0, %v2148_v33, %v2152_v29 }
 0x6d5   : > { %v4586_v42 = vadd.f32 %v2153_v3, %v5004_v10  ;;  %v2437_v3 = vpop.permute.xlu2 %2436 }
 0x6d7   : > { %2159 = vst [vmem:[#allocation1] ss:$2 sm:$0xff] %v4586_v42 }
 0x6de   : > { %v2160_v46 = vld.sshfl [vmem:[#allocation1] sm:$0xff pattern:$0x75316420]  ;;  %v2161_v47 = vld.sshfl [vmem:[#allocation1 + $0x8] sm:$0xff pattern:$0x75316420] }
 0x6df   : > { %2674 = vmatpush.msk.msrb.mxu3 %vm810_vm0, %v2160_v46  ;;  %2676 = vmatpush.msk.msra.mxu2 %vm810_vm0, %v2161_v47 }
 0x6e0   : > { %2677 = vmatmul.msk.f32.vlgmr.msra.gmra.mxu2 %vm806_vm1, %v5005_v60  ;;  %2675 = vmatmul.msk.f32.vlgmr.msrb.gmra.mxu3 %vm806_vm1, %v5005_v60 }
 0x763   : > { %v2203_v22 = vpop.f32.mrf.mxu2  ;;  %v2183_v41 = vpop.f32.mrf.mxu3 }
 0x764   : > { %v2207_v57 = vperm.slane %v2203_v22, 0  ;;  %v2206_v50 = vperm.slane %v2183_v41, 0 }
 0x766   : > { %v2210_v15 = vrot.slane %v2207_v57, 4 }
 0x768   : > { %v2211_v6 = vsel %vm810_vm0, %v2206_v50, %v2210_v15 }
 0x769   : > { %v2213_v34 = vsub.f32 %v4586_v42, %v2211_v6 }
 0x76b   : > { %v2214_v17 = vmul.f32 %v2213_v34, %v2213_v34 }
 0x76d   : > { %2216 = vst [vmem:[#allocation1] ss:$2 sm:$0xff] %v2214_v17 }
 0x774   : > { %v2217_v11 = vld.sshfl [vmem:[#allocation1] sm:$0xff pattern:$0x75316420]  ;;  %v2218_v18 = vld.sshfl [vmem:[#allocation1 + $0x8] sm:$0xff pattern:$0x75316420] }
 0x775   : > { %2678 = vmatpush.msk.msra.mxu3 %vm810_vm0, %v2217_v11  ;;  %2680 = vmatpush.msk.msrb.mxu2 %vm810_vm0, %v2218_v18 }
 0x776   : > { %2679 = vmatmul.msk.f32.vlgmr.msra.gmra.mxu3 %vm806_vm1, %v5005_v60  ;;  %2681 = vmatmul.msk.f32.vlgmr.msrb.gmra.mxu2 %vm806_vm1, %v5005_v60 }
 0x7f9   : > { %v2240_v54 = vpop.f32.mrf.mxu3  ;;  %v2260_v43 = vpop.f32.mrf.mxu2 }
 0x7fa   : > { %v2241_v44 = vadd.f32 1e-06, %v2240_v54  ;;  %v2261_v9 = vadd.f32 1e-06, %v2260_v43 }
 0x7fc   : > { %2790 = vrsqrt.f32 %v2241_v44  ;;  %vm2269_vm8 = vweird.f32 %v2241_v44  ;;  %vm2279_vm11 = vweird.f32 %v2261_v9 }
 0x7fd   : > { %2792 = vrsqrt.f32 %v2261_v9 }
 0x802   : > { %v2791_v20 = vpop.eup %2790 }
 0x803   : > { %v2793_v58 = vpop.eup %2792  ;;  %v2264_v16 = vmul.f32 %v2791_v20, %v2241_v44  ;;  %vm2270_vm9 = vweird.f32 %v2791_v20 }
 0x804   : > { %v2274_v5 = vmul.f32 %v2793_v58, %v2261_v9  ;;  %vm2280_vm7 = vweird.f32 %v2793_v58  ;;  %vm2271_vm10 = vmor %vm2269_vm8, %vm2270_vm9 }
 0x805   : > { %v2265_v53 = vmul.f32 %v2791_v20, %v2264_v16  ;;  %vm2281_vm12 = vmor %vm2279_vm11, %vm2280_vm7 }
 0x806   : > { %v2275_v14 = vmul.f32 %v2793_v58, %v2274_v5 }
 0x807   : > { %v2266_v19 = vmul.f32 0.5, %v2265_v53 }
 0x808   : > { %v2276_v61 = vmul.f32 0.5, %v2275_v14 }
 0x809   : > { %v2267_v38 = vsub.f32 1.5, %v2266_v19 }
 0x80a   : > { %v2277_v45 = vsub.f32 1.5, %v2276_v61 }
 0x80b   : > { %v2268_v62 = vmul.f32 %v2791_v20, %v2267_v38 }
 0x80c   : > { %v2278_v63 = vmul.f32 %v2793_v58, %v2277_v45 }
 0x80d   : > { %v2272_v23 = vsel %vm2271_vm10, %v2791_v20, %v2268_v62 }
 0x80e   : > { %v2282_v1 = vsel %vm2281_vm12, %v2793_v58, %v2278_v63  ;;  %v2283_v27 = vperm.slane %v2272_v23, 0 }
 0x80f   : > { %v2284_v21 = vperm.slane %v2282_v1, 0 }
 0x811   : > { %v2287_v0 = vrot.slane %v2284_v21, 4 }
 0x813   : > { %v2288_v13 = vsel %vm810_vm0, %v2283_v27, %v2287_v0 }
 0x814   : > { %v2290_v35 = vmul.f32 %v2288_v13, %v2213_v34 }
 0x816   : > { %v2300_v2 = vmul.f32 %v2298_v8, %v2290_v35 }
 0x818   : > { %v2310_v40 = vadd.f32 %v2308_v12, %v2300_v2 }
 0x81a   : > { %2319 = vst [vmem:[#allocation1] ss:$2 sm:$0xff] %v2310_v40 }
 0x821   : > { %v2320_v56 = vld.sshfl [vmem:[#allocation1] sm:$0xff pattern:$0x75316420]  ;;  %v2321_v49 = vld.sshfl [vmem:[#allocation1 + $0x8] sm:$0xff pattern:$0x75316420] }
 0x822   : > { %2682 = vmatpush.msk.msrb.mxu3 %vm810_vm0, %v2320_v56  ;;  %2684 = vmatpush.msk.msrb.mxu0 %vm810_vm0, %v2321_v49 }
 0x823   : > { %2683 = vmatmul.msk.f32.vlgmr.msrb.gmra.mxu3 %vm806_vm1, %v2311_v26  ;;  %2685 = vmatmul.msk.f32.vlgmr.msrb.gmra.mxu0 %vm806_vm1, %v2311_v26 }
 0x8a0   : > { %v2366_v25 = vpop.f32.mrf.mxu0 }
 0x8a1   : > { %v2367_v32 = vadd.f32 %v2366_v25, %v2316_v59 }
 0x8a3   : > { %v2372_v4 = vrot.slane %v2367_v32, 4 }
 0x8a5   : > { %v2376_v30 = vmul.f32 %v2372_v4, %v2367_v32 }
 0x8a6   : > { %v2346_v52 = vpop.f32.mrf.mxu3 }
 0x8a7   : > { %v2347_v36 = vadd.f32 %v2346_v52, %v2316_v59  ;;  %2688 = vmatpush.msk.msra.mxu2 %vm810_vm0, %v2376_v30 }
 0x8a8   : > { %2689 = vmatmul.msk.f32.vlgmr.msra.gmra.mxu2 %vm806_vm1, %v2377_v31 }
 0x8a9   : > { %v2371_v51 = vrot.slane %v2347_v36, 4 }
 0x8ab   : > { %v2375_v37 = vmul.f32 %v2371_v51, %v2347_v36 }
 0x8ad   : > { %2686 = vmatpush.msk.msrb.mxu1 %vm810_vm0, %v2375_v37 }
 0x8ae   : > { %2687 = vmatmul.msk.f32.vlgmr.msrb.gmra.mxu1 %vm806_vm1, %v2377_v31 }
 0x92b   : > { %v2410_v39 = vpop.f32.mrf.mxu1  ;;  %v2430_v24 = vpop.f32.mrf.mxu2 }
 0x92c   : > { %v2411_v33 = vadd.f32 %v2410_v39, %v2382_v55  ;;  %v2431_v29 = vadd.f32 %v2430_v24, %v2382_v55 }
 0x92e   : > { %v2440_v10 = vmul.f32 %v2437_v3, %v2431_v29  ;;  %v2439_v46 = vmul.f32 %v2437_v3, %v2411_v33 }
 0x930   : > { %v2443_v47 = vrot.slane %v2440_v10, 4 }
 0x932   : > { %v2444_v60 = vsel %vm810_vm0, %v2439_v46, %v2443_v47 }
 0x933   : > { %v2446_v22 = vadd.f32 %v2444_v60, %v4586_v42 }
 0x935   : > { %2447 = vst [vmem:[%s719_s30] sm:$0xff] %v2446_v22 }
 0x936   : > { %2837 = shalt.err (!%p2834_p8)
}
 0x937   : > { %2701 = dma.vmem_to_hbm [thread:$0]  (%p3066_p5), %s2463_s19, 128, %s2465_s8, %s2449_s25  }
 0x938 PF: > { %s5013_s3 = sld [smem:[#allocation12_spill]] }
 0x939   : > { %s5014_s10 = sld [smem:[#allocation9_spill]] }
 0x93e   : > { %p2713_p9 = scmp.ge.s32.totalorder %s5013_s3, 2 }
 0x93f   : > { %s2476_s0 = sand.u32 1, %s5014_s10  }
 0x940   : > { %p2708_p10 = pnand %p2713_p9, %p3070_p6  ;;  %s2477_s28 = scalar_lea.sflag [#allocation4], %s2476_s0 }
 0x942   : > { %p2709_p11 = pneg %p2708_p10 }
 0x944   : > { %2859 = dma.done.wait (%p2709_p11), %s2477_s28, 128  }
 0x945   : > { %2861 = vsyncadd (%p2709_p11), %s2477_s28, 4294967168  ;;  %s5016_s1 = sld [smem:[#allocation14_spill]] }
 0x946   : > { %s5017_s24 = sld [smem:[#allocation10_spill]] }
 0x947   : > { %s5018_s25 = sld [smem:[#allocation11_spill]] }
 0x948   : > { %s5019_s5 = sld [smem:[#allocation15_spill]] }
 0x94b   : > { %p36_p12 = scmp.ge.s32.totalorder %s5016_s1, 4  }
 0x94d   :  { %38 = sbr.rel (!%p36_p12) target bundleno = 28 (0x1c), region = 152 }
 0x952   :  { %2483 = vsyncpa [#allocation4], 1 }
 0x953   :  { %2485 = vsyncpa [#allocation4 + $0x1], 1 }
 0x954   :  { %2486 = vsyncpa [#allocation5], 1 }
 0x955   :  { %2488 = vsyncpa [#allocation5 + $0x1], 1 }

</bundles_post_ra>
